<compile_context>
chip_gen: v5e
topology: v5e:2x2
jax: 0.10.0
libtpu: 0.0.40
codegen_flags: <defaults>
</compile_context>

<pallas_src>
import functools

import jax
import jax.numpy as jnp
from jax import lax
from jax.experimental import pallas as pl
from jax.experimental.pallas import tpu as pltpu


# ----------------------------------------------------------------------------
# Numerics helpers (identical formulas in kernels and reference).
# ----------------------------------------------------------------------------
def _ln(x, gamma, beta, eps=1e-12):
    mu = jnp.mean(x, axis=-1, keepdims=True)
    var = jnp.mean((x - mu) ** 2, axis=-1, keepdims=True)
    return (x - mu) * lax.rsqrt(var + eps) * gamma + beta


def _gelu(x):
    return 0.5 * x * (1.0 + jnp.tanh(0.7978845608028654 * (x + 0.044715 * x * x * x)))


# ----------------------------------------------------------------------------
# Kernel 1: embeddings.  Single grid step: DMA-gather all B*S word rows from
# the HBM-resident vocab table (descriptors reused between start and wait),
# VPU-select token-type rows, add position rows, LayerNorm.
# ----------------------------------------------------------------------------
def _embed_kernel(ids_ref,                    # SMEM scalar prefetch (B, S) int32
                  word_hbm,                   # (V, H) f32 in HBM
                  tt_ref,                     # (B*S, 1) f32 token types (0/1)
                  pos_ref,                    # (S, H) f32 position table
                  type_ref,                   # (2, H) f32 token-type table
                  g_ref, b_ref,               # embedding LN params
                  out_ref,                    # (B*S, H) f32
                  wbuf, sems,                 # scratch: gathered rows + DMA sems
                  *, batch, seq):
    # Issue every row DMA up front (all SMEM index reads happen before any
    # wait), keep the descriptors, then wait on the same objects.
    copies = []
    for b in range(batch):
        for s in range(seq):
            r = b * seq + s
            cp = pltpu.make_async_copy(word_hbm.at[pl.ds(ids_ref[b, s], 1)],
                                       wbuf.at[pl.ds(r, 1)], sems.at[r])
            cp.start()
            copies.append(cp)
    for cp in copies:
        cp.wait()

    # Token-type selection on the VPU (exact: tt is 0.0 or 1.0).
    tt = tt_ref[...]                                  # (B*S, 1)
    type0 = type_ref[pl.ds(0, 1), :]                  # (1, H)
    type1 = type_ref[pl.ds(1, 1), :]                  # (1, H)
    type_sel = type0 * (1.0 - tt) + type1 * tt        # (B*S, H)

    pos_full = jnp.concatenate([pos_ref[...]] * batch, axis=0)   # (B*S, H)
    x = wbuf[...] + pos_full + type_sel
    out_ref[...] = _ln(x, g_ref[...], b_ref[...])


def _embeddings(params, input_ids, token_type_ids):
    B, S = input_ids.shape
    H = params["word_emb"].shape[1]
    tt = token_type_ids.reshape(B * S, 1).astype(jnp.float32)
    kernel = functools.partial(_embed_kernel, batch=B, seq=S)
    return pl.pallas_call(
        kernel,
        out_shape=jax.ShapeDtypeStruct((B * S, H), jnp.float32),
        grid_spec=pltpu.PrefetchScalarGridSpec(
            num_scalar_prefetch=1,
            grid=(1,),
            in_specs=[
                pl.BlockSpec(memory_space=pl.ANY),                 # word table (HBM)
                pl.BlockSpec((B * S, 1), lambda i, ids: (0, 0)),   # token types
                pl.BlockSpec((S, H), lambda i, ids: (0, 0)),       # position table
                pl.BlockSpec((2, H), lambda i, ids: (0, 0)),       # type table
                pl.BlockSpec((1, H), lambda i, ids: (0, 0)),       # LN gamma
                pl.BlockSpec((1, H), lambda i, ids: (0, 0)),       # LN beta
            ],
            out_specs=pl.BlockSpec((B * S, H), lambda i, ids: (0, 0)),
            scratch_shapes=[
                pltpu.VMEM((B * S, H), jnp.float32),
                pltpu.SemaphoreType.DMA((B * S,)),
            ],
        ),
        compiler_params=pltpu.CompilerParams(dimension_semantics=("arbitrary",)),
    )(input_ids.astype(jnp.int32), params["word_emb"], tt,
      params["pos_emb"], params["type_emb"],
      params["emb_ln_g"], params["emb_ln_b"])


# ----------------------------------------------------------------------------
# Kernel 2: full encoder stack + MLM head in ONE pallas_call.
#   grid = (num_layers,)  ["arbitrary"]; stacked bf16 layer weights streamed
#   per layer via index_map; the (B*S, H) residual stream lives in VMEM
#   scratch across all layers; at the last layer the B mask-position rows are
#   gathered from the scratch (dynamic ds, indices from SMEM scalar prefetch)
#   and pushed through the prediction head (dense + GELU + LN + decoder).
# ----------------------------------------------------------------------------
def _encoder_head_kernel(pos_ref,                                    # SMEM (B,)
                         x_ref, mask_ref,
                         wq, bq, wk, bk, wv, bv, wao, bao, ln1g, ln1b,
                         wff1, bff1, wff2, bff2, ln2g, ln2b,
                         hwt, hbt, hlng, hlnb, dw, db,
                         out_ref,                                    # (B, L)
                         h_ref,                                      # (B*S, H) scratch
                         *, num_heads, batch, seq):
    layer = pl.program_id(0)
    n_layers = pl.num_programs(0)

    @pl.when(layer == 0)
    def _():
        h_ref[...] = x_ref[...]

    h = h_ref[...]                                     # (B*S, H) f32
    H = h.shape[1]
    dh = H // num_heads
    scale = 1.0 / float(dh) ** 0.5
    hb = h.astype(jnp.bfloat16)

    # Batched-M GEMMs over the whole (B*S, H) slab, bf16 operands, f32 acc.
    q = jnp.dot(hb, wq[...], preferred_element_type=jnp.float32) + bq[...]
    k = jnp.dot(hb, wk[...], preferred_element_type=jnp.float32) + bk[...]
    v = jnp.dot(hb, wv[...], preferred_element_type=jnp.float32) + bv[...]

    addm = mask_ref[...]                               # (B, 1, S) additive key mask
    wao_f = wao[...]                                   # (H, H) bf16

    # Score/context per (batch, head); each head's context is projected through
    # its W_o row-slab and accumulated straight into the (S, H) attention
    # output (no lane-axis concat of dh-wide heads).
    attn_parts = []
    for b in range(batch):
        rows = slice(b * seq, (b + 1) * seq)
        am = addm[b]                                   # (1, S)
        acc = jnp.zeros((seq, H), jnp.float32)
        for hd in range(num_heads):
            cols = slice(hd * dh, (hd + 1) * dh)
            qh = q[rows, cols].astype(jnp.bfloat16)
            kh = k[rows, cols].astype(jnp.bfloat16)
            vh = v[rows, cols].astype(jnp.bfloat16)
            sc = lax.dot_general(qh, kh, (((1,), (1,)), ((), ())),
                                 preferred_element_type=jnp.float32) * scale + am
            sc = sc - jnp.max(sc, axis=-1, keepdims=True)
            p = jnp.exp(sc)
            p = p / jnp.sum(p, axis=-1, keepdims=True)
            ch = jnp.dot(p.astype(jnp.bfloat16), vh,
                         preferred_element_type=jnp.float32)          # (S, dh)
            acc = acc + jnp.dot(ch.astype(jnp.bfloat16), wao_f[cols, :],
                                preferred_element_type=jnp.float32)   # (S, H)
        attn_parts.append(acc)
    attn = jnp.concatenate(attn_parts, axis=0) + bao[...]             # (B*S, H)

    h1 = _ln(attn + h, ln1g[...], ln1b[...])

    ff = _gelu(jnp.dot(h1.astype(jnp.bfloat16), wff1[...],
                       preferred_element_type=jnp.float32) + bff1[...])
    ff = jnp.dot(ff.astype(jnp.bfloat16), wff2[...],
                 preferred_element_type=jnp.float32) + bff2[...]
    h2 = _ln(ff + h1, ln2g[...], ln2b[...])
    h_ref[...] = h2

    # MLM prediction head on the B gathered mask rows only.
    @pl.when(layer == n_layers - 1)
    def _():
        rows = [h_ref[pl.ds(b * seq + pos_ref[b], 1), :] for b in range(batch)]
        hv = jnp.concatenate(rows, axis=0)                            # (B, H)
        t = jnp.dot(hv.astype(jnp.bfloat16), hwt[...],
                    preferred_element_type=jnp.float32) + hbt[...]
        t = _ln(_gelu(t), hlng[...], hlnb[...])
        out_ref[...] = jnp.dot(t.astype(jnp.bfloat16), dw[...],
                               preferred_element_type=jnp.float32) + db[...]


def _encoder_and_head(params, x0, addmask, positions, num_heads):
    BS, H = x0.shape
    B = addmask.shape[0]
    S = BS // B
    nl = len(params["layers"])
    L = params["dec_w"].shape[1]
    I = params["layers"][0]["w_ff1"].shape[1]

    stk = lambda name: jnp.stack([lp[name] for lp in params["layers"]])
    wq_s, wk_s, wv_s, wao_s = stk("w_q"), stk("w_k"), stk("w_v"), stk("w_ao")
    bq_s, bk_s, bv_s, bao_s = stk("b_q"), stk("b_k"), stk("b_v"), stk("b_ao")
    ln1g_s, ln1b_s = stk("ln1_g"), stk("ln1_b")
    wff1_s, bff1_s = stk("w_ff1"), stk("b_ff1")
    wff2_s, bff2_s = stk("w_ff2"), stk("b_ff2")
    ln2g_s, ln2b_s = stk("ln2_g"), stk("ln2_b")

    kernel = functools.partial(_encoder_head_kernel,
                               num_heads=num_heads, batch=B, seq=S)
    const2 = lambda l, p: (0, 0)
    const3 = lambda l, p: (0, 0, 0)
    lay3 = lambda l, p: (l, 0, 0)

    return pl.pallas_call(
        kernel,
        out_shape=jax.ShapeDtypeStruct((B, L), jnp.float32),
        grid_spec=pltpu.PrefetchScalarGridSpec(
            num_scalar_prefetch=1,
            grid=(nl,),
            in_specs=[
                pl.BlockSpec((BS, H), const2),                             # x0
                pl.BlockSpec((B, 1, S), const3),                           # attn mask
                pl.BlockSpec((None, H, H), lay3), pl.BlockSpec((None, 1, H), lay3),   # Wq, bq
                pl.BlockSpec((None, H, H), lay3), pl.BlockSpec((None, 1, H), lay3),   # Wk, bk
                pl.BlockSpec((None, H, H), lay3), pl.BlockSpec((None, 1, H), lay3),   # Wv, bv
                pl.BlockSpec((None, H, H), lay3), pl.BlockSpec((None, 1, H), lay3),   # Wo, bo
                pl.BlockSpec((None, 1, H), lay3), pl.BlockSpec((None, 1, H), lay3),   # LN1 g,b
                pl.BlockSpec((None, H, I), lay3), pl.BlockSpec((None, 1, I), lay3),   # FF1 W,b
                pl.BlockSpec((None, I, H), lay3), pl.BlockSpec((None, 1, H), lay3),   # FF2 W,b
                pl.BlockSpec((None, 1, H), lay3), pl.BlockSpec((None, 1, H), lay3),   # LN2 g,b
                pl.BlockSpec((H, H), const2), pl.BlockSpec((1, H), const2),           # head W,b
                pl.BlockSpec((1, H), const2), pl.BlockSpec((1, H), const2),           # head LN g,b
                pl.BlockSpec((H, L), const2), pl.BlockSpec((1, L), const2),           # decoder W,b
            ],
            out_specs=pl.BlockSpec((B, L), const2),
            scratch_shapes=[pltpu.VMEM((BS, H), jnp.float32)],
        ),
        compiler_params=pltpu.CompilerParams(dimension_semantics=("arbitrary",)),
    )(positions, x0, addmask,
      wq_s, bq_s, wk_s, bk_s, wv_s, bv_s, wao_s, bao_s, ln1g_s, ln1b_s,
      wff1_s, bff1_s, wff2_s, bff2_s, ln2g_s, ln2b_s,
      params["head_wt"], params["head_bt"],
      params["head_ln_g"], params["head_ln_b"],
      params["dec_w"], params["dec_b"])


# ----------------------------------------------------------------------------
# Full forward (EAE_MODEL_MLM.forward semantics).
# ----------------------------------------------------------------------------
def eae_model_mlm_forward(params, input_ids, token_type_ids, input_mask,
                          *, num_heads, mask_pos=None, mask_id=0):
    B, S = input_ids.shape
    addmask = ((1.0 - input_mask.astype(jnp.float32)) * -1e9).reshape(B, 1, S)
    x0 = _embeddings(params, input_ids.astype(jnp.int32), token_type_ids)
    if mask_pos is not None:
        positions = mask_pos.astype(jnp.int32)          # logits[range(B), mask_pos, :]
    else:
        positions = jnp.full((B,), mask_id, jnp.int32)  # logits[:, mask_id, :]
    return _encoder_and_head(params, x0, addmask, positions, num_heads)


# ----------------------------------------------------------------------------
# Pure-JAX reference with matched numerics (bf16 dot operands, f32 accumulate,
# f32 elementwise) for verification.
# ----------------------------------------------------------------------------
def _reference_forward(params, input_ids, token_type_ids, input_mask,
                       positions, num_heads):
    f32 = jnp.float32
    bf16 = jnp.bfloat16

    def bdot(a, b):
        return jnp.dot(a.astype(bf16), b.astype(bf16), preferred_element_type=f32)

    B, S = input_ids.shape
    H = params["word_emb"].shape[1]
    x = (params["word_emb"][input_ids]
         + params["pos_emb"][None, :, :]
         + params["type_emb"][token_type_ids])
    x = _ln(x, params["emb_ln_g"], params["emb_ln_b"])
    addmask = ((1.0 - input_mask.astype(f32)) * -1e9).reshape(B, 1, 1, S)
    dh = H // num_heads
    scale = 1.0 / (dh ** 0.5)
    for lp in params["layers"]:
        q = bdot(x, lp["w_q"]) + lp["b_q"]
        k = bdot(x, lp["w_k"]) + lp["b_k"]
        v = bdot(x, lp["w_v"]) + lp["b_v"]
        qh = q.reshape(B, S, num_heads, dh).transpose(0, 2, 1, 3).astype(bf16)
        kh = k.reshape(B, S, num_heads, dh).transpose(0, 2, 1, 3).astype(bf16)
        vh = v.reshape(B, S, num_heads, dh).transpose(0, 2, 1, 3).astype(bf16)
        sc = jnp.einsum("bhqd,bhkd->bhqk", qh, kh,
                        preferred_element_type=f32) * scale + addmask
        sc = sc - sc.max(-1, keepdims=True)
        p = jnp.exp(sc)
        p = p / p.sum(-1, keepdims=True)
        ctx = jnp.einsum("bhqk,bhkd->bhqd", p.astype(bf16), vh,
                         preferred_element_type=f32)
        ctx = ctx.transpose(0, 2, 1, 3).reshape(B, S, H)
        attn = bdot(ctx, lp["w_ao"]) + lp["b_ao"]
        h1 = _ln(attn + x, lp["ln1_g"], lp["ln1_b"])
        ff = _gelu(bdot(h1, lp["w_ff1"]) + lp["b_ff1"])
        ff = bdot(ff, lp["w_ff2"]) + lp["b_ff2"]
        x = _ln(ff + h1, lp["ln2_g"], lp["ln2_b"])
    hv = x[jnp.arange(B), positions, :]                # (B, H)
    t = _gelu(bdot(hv, params["head_wt"]) + params["head_bt"])
    t = _ln(t, params["head_ln_g"], params["head_ln_b"])
    return bdot(t, params["dec_w"]) + params["dec_b"]


# ----------------------------------------------------------------------------
# Deterministic small-model construction + test.
# ----------------------------------------------------------------------------
def _init_params(key, V, S, H, I, L, num_layers):
    keys = iter(jax.random.split(key, 128))
    bf16 = jnp.bfloat16

    def nrm(shape, dtype=jnp.float32, scale=0.02):
        return (scale * jax.random.normal(next(keys), shape)).astype(dtype)

    def gamma(n):
        return (1.0 + 0.02 * jax.random.normal(next(keys), (1, n))).astype(jnp.float32)

    params = {
        "word_emb": nrm((V, H)),
        "pos_emb": nrm((S, H)),
        "type_emb": nrm((2, H)),
        "emb_ln_g": gamma(H), "emb_ln_b": nrm((1, H)),
        "layers": [],
        "head_wt": nrm((H, H), bf16), "head_bt": nrm((1, H)),
        "head_ln_g": gamma(H), "head_ln_b": nrm((1, H)),
        "dec_w": nrm((H, L), bf16), "dec_b": nrm((1, L)),
    }
    for _ in range(num_layers):
        params["layers"].append({
            "w_q": nrm((H, H), bf16), "b_q": nrm((1, H)),
            "w_k": nrm((H, H), bf16), "b_k": nrm((1, H)),
            "w_v": nrm((H, H), bf16), "b_v": nrm((1, H)),
            "w_ao": nrm((H, H), bf16), "b_ao": nrm((1, H)),
            "ln1_g": gamma(H), "ln1_b": nrm((1, H)),
            "w_ff1": nrm((H, I), bf16), "b_ff1": nrm((1, I)),
            "w_ff2": nrm((I, H), bf16), "b_ff2": nrm((1, H)),
            "ln2_g": gamma(H), "ln2_b": nrm((1, H)),
        })
    return params


if __name__ == "__main__":
    # Small deterministic configuration (lane-dense H / I / L).
    B, S, H = 2, 16, 128
    V, I, L = 512, 256, 128          # vocab, FFN intermediate, num_labels
    num_heads, num_layers = 2, 2
    mask_id = 3                      # position index used when mask_pos is None

    key = jax.random.PRNGKey(0)
    k_params, k_ids = jax.random.split(key)
    params = _init_params(k_params, V, S, H, I, L, num_layers)

    input_ids = jax.random.randint(k_ids, (B, S), 0, V, dtype=jnp.int32)
    token_type_ids = jnp.broadcast_to(
        (jnp.arange(S) >= S // 2).astype(jnp.int32), (B, S))
    input_mask = jnp.ones((B, S), jnp.float32).at[:, S - 2:].set(0.0)
    mask_pos = jnp.array([4, 7], dtype=jnp.int32)

    # Branch 1: explicit mask positions.
    out1 = jax.block_until_ready(
        eae_model_mlm_forward(params, input_ids, token_type_ids, input_mask,
                              num_heads=num_heads, mask_pos=mask_pos,
                              mask_id=mask_id))
    # Branch 2: mask_pos is None -> logits[:, mask_id, :].
    out2 = jax.block_until_ready(
        eae_model_mlm_forward(params, input_ids, token_type_ids, input_mask,
                              num_heads=num_heads, mask_pos=None,
                              mask_id=mask_id))

    ref1 = _reference_forward(params, input_ids, token_type_ids, input_mask,
                              mask_pos, num_heads)
    ref2 = _reference_forward(params, input_ids, token_type_ids, input_mask,
                              jnp.full((B,), mask_id, jnp.int32), num_heads)

    assert out1.shape == (B, L), out1.shape
    assert out2.shape == (B, L), out2.shape
    assert jnp.allclose(out1, ref1, atol=5e-3, rtol=5e-3), "mismatch (mask_pos branch)"
    assert jnp.allclose(out2, ref2, atol=5e-3, rtol=5e-3), "mismatch (mask_id branch)"

    print("KERNEL_OK")
</pallas_src>

<mosaic_0001>
module attributes {stable_mosaic.version = 11 : i64} {
  func.func @_embed_kernel(%arg0: i32, %arg1: memref<2x16xi32, #tpu.memory_space<smem>>, %arg2: memref<512x128xf32, #tpu.memory_space<any>>, %arg3: memref<32x1xf32, #tpu.memory_space<vmem>>, %arg4: memref<16x128xf32, #tpu.memory_space<vmem>>, %arg5: memref<2x128xf32, #tpu.memory_space<vmem>>, %arg6: memref<1x128xf32, #tpu.memory_space<vmem>>, %arg7: memref<1x128xf32, #tpu.memory_space<vmem>>, %arg8: memref<32x128xf32, #tpu.memory_space<vmem>>, %arg9: memref<32x128xf32, #tpu.memory_space<vmem>>, %arg10: memref<32x!tpu.dma_semaphore, #tpu.memory_space<semaphore_mem>>) attributes {dimension_semantics = [#tpu.dimension_semantics<arbitrary>], iteration_bounds = array<i64: 1>, scalar_prefetch = 1 : i64, scratch_operands = 2 : i64, tpu.core_type = #tpu.core_type<tc>, window_params = [{}, {pipeline_mode = #tpu.pipeline_mode<synchronous>, transform_indices = @transform_1, window_bounds = array<i64: 32, 1>}, {pipeline_mode = #tpu.pipeline_mode<synchronous>, transform_indices = @transform_2, window_bounds = array<i64: 16, 128>}, {pipeline_mode = #tpu.pipeline_mode<synchronous>, transform_indices = @transform_3, window_bounds = array<i64: 2, 128>}, {pipeline_mode = #tpu.pipeline_mode<synchronous>, transform_indices = @transform_4, window_bounds = array<i64: 1, 128>}, {pipeline_mode = #tpu.pipeline_mode<synchronous>, transform_indices = @transform_5, window_bounds = array<i64: 1, 128>}, {pipeline_mode = #tpu.pipeline_mode<synchronous>, transform_indices = @transform_6, window_bounds = array<i64: 32, 128>}]} {
    %c0 = arith.constant 0 : index
    %c0_0 = arith.constant 0 : index
    %0 = memref.load %arg1[%c0, %c0_0] : memref<2x16xi32, #tpu.memory_space<smem>>
    %c0_i32 = arith.constant 0 : i32
    %c0_i32_1 = arith.constant 0 : i32
    %1 = tpu.memref_slice %arg2[%0, %c0_i32_1] : memref<512x128xf32, #tpu.memory_space<any>> -> memref<1x128xf32, #tpu.memory_space<any>>
    %c0_i32_2 = arith.constant 0 : i32
    %c0_i32_3 = arith.constant 0 : i32
    %2 = tpu.memref_slice %arg9[%c0_i32_2, %c0_i32_3] : memref<32x128xf32, #tpu.memory_space<vmem>> -> memref<1x128xf32, #tpu.memory_space<vmem>>
    %3 = tpu.memref_slice %arg10[%c0_i32] : memref<32x!tpu.dma_semaphore, #tpu.memory_space<semaphore_mem>> -> memref<1x!tpu.dma_semaphore, #tpu.memory_space<semaphore_mem>>
    %4 = tpu.memref_squeeze %3 : memref<1x!tpu.dma_semaphore, #tpu.memory_space<semaphore_mem>> -> memref<!tpu.dma_semaphore, #tpu.memory_space<semaphore_mem>>
    tpu.enqueue_dma source(%1 : memref<1x128xf32, #tpu.memory_space<any>>) target(%2 : memref<1x128xf32, #tpu.memory_space<vmem>>) target_semaphore(%4 : memref<!tpu.dma_semaphore, #tpu.memory_space<semaphore_mem>>)
    %c0_4 = arith.constant 0 : index
    %c1 = arith.constant 1 : index
    %5 = memref.load %arg1[%c0_4, %c1] : memref<2x16xi32, #tpu.memory_space<smem>>
    %c1_i32 = arith.constant 1 : i32
    %c0_i32_5 = arith.constant 0 : i32
    %6 = tpu.memref_slice %arg2[%5, %c0_i32_5] : memref<512x128xf32, #tpu.memory_space<any>> -> memref<1x128xf32, #tpu.memory_space<any>>
    %c1_i32_6 = arith.constant 1 : i32
    %c0_i32_7 = arith.constant 0 : i32
    %7 = tpu.memref_slice %arg9[%c1_i32_6, %c0_i32_7] : memref<32x128xf32, #tpu.memory_space<vmem>> -> memref<1x128xf32, #tpu.memory_space<vmem>>
    %8 = tpu.memref_slice %arg10[%c1_i32] : memref<32x!tpu.dma_semaphore, #tpu.memory_space<semaphore_mem>> -> memref<1x!tpu.dma_semaphore, #tpu.memory_space<semaphore_mem>>
    %9 = tpu.memref_squeeze %8 : memref<1x!tpu.dma_semaphore, #tpu.memory_space<semaphore_mem>> -> memref<!tpu.dma_semaphore, #tpu.memory_space<semaphore_mem>>
    tpu.enqueue_dma source(%6 : memref<1x128xf32, #tpu.memory_space<any>>) target(%7 : memref<1x128xf32, #tpu.memory_space<vmem>>) target_semaphore(%9 : memref<!tpu.dma_semaphore, #tpu.memory_space<semaphore_mem>>)
    %c0_8 = arith.constant 0 : index
    %c2 = arith.constant 2 : index
    %10 = memref.load %arg1[%c0_8, %c2] : memref<2x16xi32, #tpu.memory_space<smem>>
    %c2_i32 = arith.constant 2 : i32
    %c0_i32_9 = arith.constant 0 : i32
    %11 = tpu.memref_slice %arg2[%10, %c0_i32_9] : memref<512x128xf32, #tpu.memory_space<any>> -> memref<1x128xf32, #tpu.memory_space<any>>
    %c2_i32_10 = arith.constant 2 : i32
    %c0_i32_11 = arith.constant 0 : i32
    %12 = tpu.memref_slice %arg9[%c2_i32_10, %c0_i32_11] : memref<32x128xf32, #tpu.memory_space<vmem>> -> memref<1x128xf32, #tpu.memory_space<vmem>>
    %13 = tpu.memref_slice %arg10[%c2_i32] : memref<32x!tpu.dma_semaphore, #tpu.memory_space<semaphore_mem>> -> memref<1x!tpu.dma_semaphore, #tpu.memory_space<semaphore_mem>>
    %14 = tpu.memref_squeeze %13 : memref<1x!tpu.dma_semaphore, #tpu.memory_space<semaphore_mem>> -> memref<!tpu.dma_semaphore, #tpu.memory_space<semaphore_mem>>
    tpu.enqueue_dma source(%11 : memref<1x128xf32, #tpu.memory_space<any>>) target(%12 : memref<1x128xf32, #tpu.memory_space<vmem>>) target_semaphore(%14 : memref<!tpu.dma_semaphore, #tpu.memory_space<semaphore_mem>>)
    %c0_12 = arith.constant 0 : index
    %c3 = arith.constant 3 : index
    %15 = memref.load %arg1[%c0_12, %c3] : memref<2x16xi32, #tpu.memory_space<smem>>
    %c3_i32 = arith.constant 3 : i32
    %c0_i32_13 = arith.constant 0 : i32
    %16 = tpu.memref_slice %arg2[%15, %c0_i32_13] : memref<512x128xf32, #tpu.memory_space<any>> -> memref<1x128xf32, #tpu.memory_space<any>>
    %c3_i32_14 = arith.constant 3 : i32
    %c0_i32_15 = arith.constant 0 : i32
    %17 = tpu.memref_slice %arg9[%c3_i32_14, %c0_i32_15] : memref<32x128xf32, #tpu.memory_space<vmem>> -> memref<1x128xf32, #tpu.memory_space<vmem>>
    %18 = tpu.memref_slice %arg10[%c3_i32] : memref<32x!tpu.dma_semaphore, #tpu.memory_space<semaphore_mem>> -> memref<1x!tpu.dma_semaphore, #tpu.memory_space<semaphore_mem>>
    %19 = tpu.memref_squeeze %18 : memref<1x!tpu.dma_semaphore, #tpu.memory_space<semaphore_mem>> -> memref<!tpu.dma_semaphore, #tpu.memory_space<semaphore_mem>>
    tpu.enqueue_dma source(%16 : memref<1x128xf32, #tpu.memory_space<any>>) target(%17 : memref<1x128xf32, #tpu.memory_space<vmem>>) target_semaphore(%19 : memref<!tpu.dma_semaphore, #tpu.memory_space<semaphore_mem>>)
    %c0_16 = arith.constant 0 : index
    %c4 = arith.constant 4 : index
    %20 = memref.load %arg1[%c0_16, %c4] : memref<2x16xi32, #tpu.memory_space<smem>>
    %c4_i32 = arith.constant 4 : i32
    %c0_i32_17 = arith.constant 0 : i32
    %21 = tpu.memref_slice %arg2[%20, %c0_i32_17] : memref<512x128xf32, #tpu.memory_space<any>> -> memref<1x128xf32, #tpu.memory_space<any>>
    %c4_i32_18 = arith.constant 4 : i32
    %c0_i32_19 = arith.constant 0 : i32
    %22 = tpu.memref_slice %arg9[%c4_i32_18, %c0_i32_19] : memref<32x128xf32, #tpu.memory_space<vmem>> -> memref<1x128xf32, #tpu.memory_space<vmem>>
    %23 = tpu.memref_slice %arg10[%c4_i32] : memref<32x!tpu.dma_semaphore, #tpu.memory_space<semaphore_mem>> -> memref<1x!tpu.dma_semaphore, #tpu.memory_space<semaphore_mem>>
    %24 = tpu.memref_squeeze %23 : memref<1x!tpu.dma_semaphore, #tpu.memory_space<semaphore_mem>> -> memref<!tpu.dma_semaphore, #tpu.memory_space<semaphore_mem>>
    tpu.enqueue_dma source(%21 : memref<1x128xf32, #tpu.memory_space<any>>) target(%22 : memref<1x128xf32, #tpu.memory_space<vmem>>) target_semaphore(%24 : memref<!tpu.dma_semaphore, #tpu.memory_space<semaphore_mem>>)
    %c0_20 = arith.constant 0 : index
    %c5 = arith.constant 5 : index
    %25 = memref.load %arg1[%c0_20, %c5] : memref<2x16xi32, #tpu.memory_space<smem>>
    %c5_i32 = arith.constant 5 : i32
    %c0_i32_21 = arith.constant 0 : i32
    %26 = tpu.memref_slice %arg2[%25, %c0_i32_21] : memref<512x128xf32, #tpu.memory_space<any>> -> memref<1x128xf32, #tpu.memory_space<any>>
    %c5_i32_22 = arith.constant 5 : i32
    %c0_i32_23 = arith.constant 0 : i32
    %27 = tpu.memref_slice %arg9[%c5_i32_22, %c0_i32_23] : memref<32x128xf32, #tpu.memory_space<vmem>> -> memref<1x128xf32, #tpu.memory_space<vmem>>
    %28 = tpu.memref_slice %arg10[%c5_i32] : memref<32x!tpu.dma_semaphore, #tpu.memory_space<semaphore_mem>> -> memref<1x!tpu.dma_semaphore, #tpu.memory_space<semaphore_mem>>
    %29 = tpu.memref_squeeze %28 : memref<1x!tpu.dma_semaphore, #tpu.memory_space<semaphore_mem>> -> memref<!tpu.dma_semaphore, #tpu.memory_space<semaphore_mem>>
    tpu.enqueue_dma source(%26 : memref<1x128xf32, #tpu.memory_space<any>>) target(%27 : memref<1x128xf32, #tpu.memory_space<vmem>>) target_semaphore(%29 : memref<!tpu.dma_semaphore, #tpu.memory_space<semaphore_mem>>)
    %c0_24 = arith.constant 0 : index
    %c6 = arith.constant 6 : index
    %30 = memref.load %arg1[%c0_24, %c6] : memref<2x16xi32, #tpu.memory_space<smem>>
    %c6_i32 = arith.constant 6 : i32
    %c0_i32_25 = arith.constant 0 : i32
    %31 = tpu.memref_slice %arg2[%30, %c0_i32_25] : memref<512x128xf32, #tpu.memory_space<any>> -> memref<1x128xf32, #tpu.memory_space<any>>
    %c6_i32_26 = arith.constant 6 : i32
    %c0_i32_27 = arith.constant 0 : i32
    %32 = tpu.memref_slice %arg9[%c6_i32_26, %c0_i32_27] : memref<32x128xf32, #tpu.memory_space<vmem>> -> memref<1x128xf32, #tpu.memory_space<vmem>>
    %33 = tpu.memref_slice %arg10[%c6_i32] : memref<32x!tpu.dma_semaphore, #tpu.memory_space<semaphore_mem>> -> memref<1x!tpu.dma_semaphore, #tpu.memory_space<semaphore_mem>>
    %34 = tpu.memref_squeeze %33 : memref<1x!tpu.dma_semaphore, #tpu.memory_space<semaphore_mem>> -> memref<!tpu.dma_semaphore, #tpu.memory_space<semaphore_mem>>
    tpu.enqueue_dma source(%31 : memref<1x128xf32, #tpu.memory_space<any>>) target(%32 : memref<1x128xf32, #tpu.memory_space<vmem>>) target_semaphore(%34 : memref<!tpu.dma_semaphore, #tpu.memory_space<semaphore_mem>>)
    %c0_28 = arith.constant 0 : index
    %c7 = arith.constant 7 : index
    %35 = memref.load %arg1[%c0_28, %c7] : memref<2x16xi32, #tpu.memory_space<smem>>
    %c7_i32 = arith.constant 7 : i32
    %c0_i32_29 = arith.constant 0 : i32
    %36 = tpu.memref_slice %arg2[%35, %c0_i32_29] : memref<512x128xf32, #tpu.memory_space<any>> -> memref<1x128xf32, #tpu.memory_space<any>>
    %c7_i32_30 = arith.constant 7 : i32
    %c0_i32_31 = arith.constant 0 : i32
    %37 = tpu.memref_slice %arg9[%c7_i32_30, %c0_i32_31] : memref<32x128xf32, #tpu.memory_space<vmem>> -> memref<1x128xf32, #tpu.memory_space<vmem>>
    %38 = tpu.memref_slice %arg10[%c7_i32] : memref<32x!tpu.dma_semaphore, #tpu.memory_space<semaphore_mem>> -> memref<1x!tpu.dma_semaphore, #tpu.memory_space<semaphore_mem>>
    %39 = tpu.memref_squeeze %38 : memref<1x!tpu.dma_semaphore, #tpu.memory_space<semaphore_mem>> -> memref<!tpu.dma_semaphore, #tpu.memory_space<semaphore_mem>>
    tpu.enqueue_dma source(%36 : memref<1x128xf32, #tpu.memory_space<any>>) target(%37 : memref<1x128xf32, #tpu.memory_space<vmem>>) target_semaphore(%39 : memref<!tpu.dma_semaphore, #tpu.memory_space<semaphore_mem>>)
    %c0_32 = arith.constant 0 : index
    %c8 = arith.constant 8 : index
    %40 = memref.load %arg1[%c0_32, %c8] : memref<2x16xi32, #tpu.memory_space<smem>>
    %c8_i32 = arith.constant 8 : i32
    %c0_i32_33 = arith.constant 0 : i32
    %41 = tpu.memref_slice %arg2[%40, %c0_i32_33] : memref<512x128xf32, #tpu.memory_space<any>> -> memref<1x128xf32, #tpu.memory_space<any>>
    %c8_i32_34 = arith.constant 8 : i32
    %c0_i32_35 = arith.constant 0 : i32
    %42 = tpu.memref_slice %arg9[%c8_i32_34, %c0_i32_35] : memref<32x128xf32, #tpu.memory_space<vmem>> -> memref<1x128xf32, #tpu.memory_space<vmem>>
    %43 = tpu.memref_slice %arg10[%c8_i32] : memref<32x!tpu.dma_semaphore, #tpu.memory_space<semaphore_mem>> -> memref<1x!tpu.dma_semaphore, #tpu.memory_space<semaphore_mem>>
    %44 = tpu.memref_squeeze %43 : memref<1x!tpu.dma_semaphore, #tpu.memory_space<semaphore_mem>> -> memref<!tpu.dma_semaphore, #tpu.memory_space<semaphore_mem>>
    tpu.enqueue_dma source(%41 : memref<1x128xf32, #tpu.memory_space<any>>) target(%42 : memref<1x128xf32, #tpu.memory_space<vmem>>) target_semaphore(%44 : memref<!tpu.dma_semaphore, #tpu.memory_space<semaphore_mem>>)
    %c0_36 = arith.constant 0 : index
    %c9 = arith.constant 9 : index
    %45 = memref.load %arg1[%c0_36, %c9] : memref<2x16xi32, #tpu.memory_space<smem>>
    %c9_i32 = arith.constant 9 : i32
    %c0_i32_37 = arith.constant 0 : i32
    %46 = tpu.memref_slice %arg2[%45, %c0_i32_37] : memref<512x128xf32, #tpu.memory_space<any>> -> memref<1x128xf32, #tpu.memory_space<any>>
    %c9_i32_38 = arith.constant 9 : i32
    %c0_i32_39 = arith.constant 0 : i32
    %47 = tpu.memref_slice %arg9[%c9_i32_38, %c0_i32_39] : memref<32x128xf32, #tpu.memory_space<vmem>> -> memref<1x128xf32, #tpu.memory_space<vmem>>
    %48 = tpu.memref_slice %arg10[%c9_i32] : memref<32x!tpu.dma_semaphore, #tpu.memory_space<semaphore_mem>> -> memref<1x!tpu.dma_semaphore, #tpu.memory_space<semaphore_mem>>
    %49 = tpu.memref_squeeze %48 : memref<1x!tpu.dma_semaphore, #tpu.memory_space<semaphore_mem>> -> memref<!tpu.dma_semaphore, #tpu.memory_space<semaphore_mem>>
    tpu.enqueue_dma source(%46 : memref<1x128xf32, #tpu.memory_space<any>>) target(%47 : memref<1x128xf32, #tpu.memory_space<vmem>>) target_semaphore(%49 : memref<!tpu.dma_semaphore, #tpu.memory_space<semaphore_mem>>)
    %c0_40 = arith.constant 0 : index
    %c10 = arith.constant 10 : index
    %50 = memref.load %arg1[%c0_40, %c10] : memref<2x16xi32, #tpu.memory_space<smem>>
    %c10_i32 = arith.constant 10 : i32
    %c0_i32_41 = arith.constant 0 : i32
    %51 = tpu.memref_slice %arg2[%50, %c0_i32_41] : memref<512x128xf32, #tpu.memory_space<any>> -> memref<1x128xf32, #tpu.memory_space<any>>
    %c10_i32_42 = arith.constant 10 : i32
    %c0_i32_43 = arith.constant 0 : i32
    %52 = tpu.memref_slice %arg9[%c10_i32_42, %c0_i32_43] : memref<32x128xf32, #tpu.memory_space<vmem>> -> memref<1x128xf32, #tpu.memory_space<vmem>>
    %53 = tpu.memref_slice %arg10[%c10_i32] : memref<32x!tpu.dma_semaphore, #tpu.memory_space<semaphore_mem>> -> memref<1x!tpu.dma_semaphore, #tpu.memory_space<semaphore_mem>>
    %54 = tpu.memref_squeeze %53 : memref<1x!tpu.dma_semaphore, #tpu.memory_space<semaphore_mem>> -> memref<!tpu.dma_semaphore, #tpu.memory_space<semaphore_mem>>
    tpu.enqueue_dma source(%51 : memref<1x128xf32, #tpu.memory_space<any>>) target(%52 : memref<1x128xf32, #tpu.memory_space<vmem>>) target_semaphore(%54 : memref<!tpu.dma_semaphore, #tpu.memory_space<semaphore_mem>>)
    %c0_44 = arith.constant 0 : index
    %c11 = arith.constant 11 : index
    %55 = memref.load %arg1[%c0_44, %c11] : memref<2x16xi32, #tpu.memory_space<smem>>
    %c11_i32 = arith.constant 11 : i32
    %c0_i32_45 = arith.constant 0 : i32
    %56 = tpu.memref_slice %arg2[%55, %c0_i32_45] : memref<512x128xf32, #tpu.memory_space<any>> -> memref<1x128xf32, #tpu.memory_space<any>>
    %c11_i32_46 = arith.constant 11 : i32
    %c0_i32_47 = arith.constant 0 : i32
    %57 = tpu.memref_slice %arg9[%c11_i32_46, %c0_i32_47] : memref<32x128xf32, #tpu.memory_space<vmem>> -> memref<1x128xf32, #tpu.memory_space<vmem>>
    %58 = tpu.memref_slice %arg10[%c11_i32] : memref<32x!tpu.dma_semaphore, #tpu.memory_space<semaphore_mem>> -> memref<1x!tpu.dma_semaphore, #tpu.memory_space<semaphore_mem>>
    %59 = tpu.memref_squeeze %58 : memref<1x!tpu.dma_semaphore, #tpu.memory_space<semaphore_mem>> -> memref<!tpu.dma_semaphore, #tpu.memory_space<semaphore_mem>>
    tpu.enqueue_dma source(%56 : memref<1x128xf32, #tpu.memory_space<any>>) target(%57 : memref<1x128xf32, #tpu.memory_space<vmem>>) target_semaphore(%59 : memref<!tpu.dma_semaphore, #tpu.memory_space<semaphore_mem>>)
    %c0_48 = arith.constant 0 : index
    %c12 = arith.constant 12 : index
    %60 = memref.load %arg1[%c0_48, %c12] : memref<2x16xi32, #tpu.memory_space<smem>>
    %c12_i32 = arith.constant 12 : i32
    %c0_i32_49 = arith.constant 0 : i32
    %61 = tpu.memref_slice %arg2[%60, %c0_i32_49] : memref<512x128xf32, #tpu.memory_space<any>> -> memref<1x128xf32, #tpu.memory_space<any>>
    %c12_i32_50 = arith.constant 12 : i32
    %c0_i32_51 = arith.constant 0 : i32
    %62 = tpu.memref_slice %arg9[%c12_i32_50, %c0_i32_51] : memref<32x128xf32, #tpu.memory_space<vmem>> -> memref<1x128xf32, #tpu.memory_space<vmem>>
    %63 = tpu.memref_slice %arg10[%c12_i32] : memref<32x!tpu.dma_semaphore, #tpu.memory_space<semaphore_mem>> -> memref<1x!tpu.dma_semaphore, #tpu.memory_space<semaphore_mem>>
    %64 = tpu.memref_squeeze %63 : memref<1x!tpu.dma_semaphore, #tpu.memory_space<semaphore_mem>> -> memref<!tpu.dma_semaphore, #tpu.memory_space<semaphore_mem>>
    tpu.enqueue_dma source(%61 : memref<1x128xf32, #tpu.memory_space<any>>) target(%62 : memref<1x128xf32, #tpu.memory_space<vmem>>) target_semaphore(%64 : memref<!tpu.dma_semaphore, #tpu.memory_space<semaphore_mem>>)
    %c0_52 = arith.constant 0 : index
    %c13 = arith.constant 13 : index
    %65 = memref.load %arg1[%c0_52, %c13] : memref<2x16xi32, #tpu.memory_space<smem>>
    %c13_i32 = arith.constant 13 : i32
    %c0_i32_53 = arith.constant 0 : i32
    %66 = tpu.memref_slice %arg2[%65, %c0_i32_53] : memref<512x128xf32, #tpu.memory_space<any>> -> memref<1x128xf32, #tpu.memory_space<any>>
    %c13_i32_54 = arith.constant 13 : i32
    %c0_i32_55 = arith.constant 0 : i32
    %67 = tpu.memref_slice %arg9[%c13_i32_54, %c0_i32_55] : memref<32x128xf32, #tpu.memory_space<vmem>> -> memref<1x128xf32, #tpu.memory_space<vmem>>
    %68 = tpu.memref_slice %arg10[%c13_i32] : memref<32x!tpu.dma_semaphore, #tpu.memory_space<semaphore_mem>> -> memref<1x!tpu.dma_semaphore, #tpu.memory_space<semaphore_mem>>
    %69 = tpu.memref_squeeze %68 : memref<1x!tpu.dma_semaphore, #tpu.memory_space<semaphore_mem>> -> memref<!tpu.dma_semaphore, #tpu.memory_space<semaphore_mem>>
    tpu.enqueue_dma source(%66 : memref<1x128xf32, #tpu.memory_space<any>>) target(%67 : memref<1x128xf32, #tpu.memory_space<vmem>>) target_semaphore(%69 : memref<!tpu.dma_semaphore, #tpu.memory_space<semaphore_mem>>)
    %c0_56 = arith.constant 0 : index
    %c14 = arith.constant 14 : index
    %70 = memref.load %arg1[%c0_56, %c14] : memref<2x16xi32, #tpu.memory_space<smem>>
    %c14_i32 = arith.constant 14 : i32
    %c0_i32_57 = arith.constant 0 : i32
    %71 = tpu.memref_slice %arg2[%70, %c0_i32_57] : memref<512x128xf32, #tpu.memory_space<any>> -> memref<1x128xf32, #tpu.memory_space<any>>
    %c14_i32_58 = arith.constant 14 : i32
    %c0_i32_59 = arith.constant 0 : i32
    %72 = tpu.memref_slice %arg9[%c14_i32_58, %c0_i32_59] : memref<32x128xf32, #tpu.memory_space<vmem>> -> memref<1x128xf32, #tpu.memory_space<vmem>>
    %73 = tpu.memref_slice %arg10[%c14_i32] : memref<32x!tpu.dma_semaphore, #tpu.memory_space<semaphore_mem>> -> memref<1x!tpu.dma_semaphore, #tpu.memory_space<semaphore_mem>>
    %74 = tpu.memref_squeeze %73 : memref<1x!tpu.dma_semaphore, #tpu.memory_space<semaphore_mem>> -> memref<!tpu.dma_semaphore, #tpu.memory_space<semaphore_mem>>
    tpu.enqueue_dma source(%71 : memref<1x128xf32, #tpu.memory_space<any>>) target(%72 : memref<1x128xf32, #tpu.memory_space<vmem>>) target_semaphore(%74 : memref<!tpu.dma_semaphore, #tpu.memory_space<semaphore_mem>>)
    %c0_60 = arith.constant 0 : index
    %c15 = arith.constant 15 : index
    %75 = memref.load %arg1[%c0_60, %c15] : memref<2x16xi32, #tpu.memory_space<smem>>
    %c15_i32 = arith.constant 15 : i32
    %c0_i32_61 = arith.constant 0 : i32
    %76 = tpu.memref_slice %arg2[%75, %c0_i32_61] : memref<512x128xf32, #tpu.memory_space<any>> -> memref<1x128xf32, #tpu.memory_space<any>>
    %c15_i32_62 = arith.constant 15 : i32
    %c0_i32_63 = arith.constant 0 : i32
    %77 = tpu.memref_slice %arg9[%c15_i32_62, %c0_i32_63] : memref<32x128xf32, #tpu.memory_space<vmem>> -> memref<1x128xf32, #tpu.memory_space<vmem>>
    %78 = tpu.memref_slice %arg10[%c15_i32] : memref<32x!tpu.dma_semaphore, #tpu.memory_space<semaphore_mem>> -> memref<1x!tpu.dma_semaphore, #tpu.memory_space<semaphore_mem>>
    %79 = tpu.memref_squeeze %78 : memref<1x!tpu.dma_semaphore, #tpu.memory_space<semaphore_mem>> -> memref<!tpu.dma_semaphore, #tpu.memory_space<semaphore_mem>>
    tpu.enqueue_dma source(%76 : memref<1x128xf32, #tpu.memory_space<any>>) target(%77 : memref<1x128xf32, #tpu.memory_space<vmem>>) target_semaphore(%79 : memref<!tpu.dma_semaphore, #tpu.memory_space<semaphore_mem>>)
    %c1_64 = arith.constant 1 : index
    %c0_65 = arith.constant 0 : index
    %80 = memref.load %arg1[%c1_64, %c0_65] : memref<2x16xi32, #tpu.memory_space<smem>>
    %c16_i32 = arith.constant 16 : i32
    %c0_i32_66 = arith.constant 0 : i32
    %81 = tpu.memref_slice %arg2[%80, %c0_i32_66] : memref<512x128xf32, #tpu.memory_space<any>> -> memref<1x128xf32, #tpu.memory_space<any>>
    %c16_i32_67 = arith.constant 16 : i32
    %c0_i32_68 = arith.constant 0 : i32
    %82 = tpu.memref_slice %arg9[%c16_i32_67, %c0_i32_68] : memref<32x128xf32, #tpu.memory_space<vmem>> -> memref<1x128xf32, #tpu.memory_space<vmem>>
    %83 = tpu.memref_slice %arg10[%c16_i32] : memref<32x!tpu.dma_semaphore, #tpu.memory_space<semaphore_mem>> -> memref<1x!tpu.dma_semaphore, #tpu.memory_space<semaphore_mem>>
    %84 = tpu.memref_squeeze %83 : memref<1x!tpu.dma_semaphore, #tpu.memory_space<semaphore_mem>> -> memref<!tpu.dma_semaphore, #tpu.memory_space<semaphore_mem>>
    tpu.enqueue_dma source(%81 : memref<1x128xf32, #tpu.memory_space<any>>) target(%82 : memref<1x128xf32, #tpu.memory_space<vmem>>) target_semaphore(%84 : memref<!tpu.dma_semaphore, #tpu.memory_space<semaphore_mem>>)
    %c1_69 = arith.constant 1 : index
    %c1_70 = arith.constant 1 : index
    %85 = memref.load %arg1[%c1_69, %c1_70] : memref<2x16xi32, #tpu.memory_space<smem>>
    %c17_i32 = arith.constant 17 : i32
    %c0_i32_71 = arith.constant 0 : i32
    %86 = tpu.memref_slice %arg2[%85, %c0_i32_71] : memref<512x128xf32, #tpu.memory_space<any>> -> memref<1x128xf32, #tpu.memory_space<any>>
    %c17_i32_72 = arith.constant 17 : i32
    %c0_i32_73 = arith.constant 0 : i32
    %87 = tpu.memref_slice %arg9[%c17_i32_72, %c0_i32_73] : memref<32x128xf32, #tpu.memory_space<vmem>> -> memref<1x128xf32, #tpu.memory_space<vmem>>
    %88 = tpu.memref_slice %arg10[%c17_i32] : memref<32x!tpu.dma_semaphore, #tpu.memory_space<semaphore_mem>> -> memref<1x!tpu.dma_semaphore, #tpu.memory_space<semaphore_mem>>
    %89 = tpu.memref_squeeze %88 : memref<1x!tpu.dma_semaphore, #tpu.memory_space<semaphore_mem>> -> memref<!tpu.dma_semaphore, #tpu.memory_space<semaphore_mem>>
    tpu.enqueue_dma source(%86 : memref<1x128xf32, #tpu.memory_space<any>>) target(%87 : memref<1x128xf32, #tpu.memory_space<vmem>>) target_semaphore(%89 : memref<!tpu.dma_semaphore, #tpu.memory_space<semaphore_mem>>)
    %c1_74 = arith.constant 1 : index
    %c2_75 = arith.constant 2 : index
    %90 = memref.load %arg1[%c1_74, %c2_75] : memref<2x16xi32, #tpu.memory_space<smem>>
    %c18_i32 = arith.constant 18 : i32
    %c0_i32_76 = arith.constant 0 : i32
    %91 = tpu.memref_slice %arg2[%90, %c0_i32_76] : memref<512x128xf32, #tpu.memory_space<any>> -> memref<1x128xf32, #tpu.memory_space<any>>
    %c18_i32_77 = arith.constant 18 : i32
    %c0_i32_78 = arith.constant 0 : i32
    %92 = tpu.memref_slice %arg9[%c18_i32_77, %c0_i32_78] : memref<32x128xf32, #tpu.memory_space<vmem>> -> memref<1x128xf32, #tpu.memory_space<vmem>>
    %93 = tpu.memref_slice %arg10[%c18_i32] : memref<32x!tpu.dma_semaphore, #tpu.memory_space<semaphore_mem>> -> memref<1x!tpu.dma_semaphore, #tpu.memory_space<semaphore_mem>>
    %94 = tpu.memref_squeeze %93 : memref<1x!tpu.dma_semaphore, #tpu.memory_space<semaphore_mem>> -> memref<!tpu.dma_semaphore, #tpu.memory_space<semaphore_mem>>
    tpu.enqueue_dma source(%91 : memref<1x128xf32, #tpu.memory_space<any>>) target(%92 : memref<1x128xf32, #tpu.memory_space<vmem>>) target_semaphore(%94 : memref<!tpu.dma_semaphore, #tpu.memory_space<semaphore_mem>>)
    %c1_79 = arith.constant 1 : index
    %c3_80 = arith.constant 3 : index
    %95 = memref.load %arg1[%c1_79, %c3_80] : memref<2x16xi32, #tpu.memory_space<smem>>
    %c19_i32 = arith.constant 19 : i32
    %c0_i32_81 = arith.constant 0 : i32
    %96 = tpu.memref_slice %arg2[%95, %c0_i32_81] : memref<512x128xf32, #tpu.memory_space<any>> -> memref<1x128xf32, #tpu.memory_space<any>>
    %c19_i32_82 = arith.constant 19 : i32
    %c0_i32_83 = arith.constant 0 : i32
    %97 = tpu.memref_slice %arg9[%c19_i32_82, %c0_i32_83] : memref<32x128xf32, #tpu.memory_space<vmem>> -> memref<1x128xf32, #tpu.memory_space<vmem>>
    %98 = tpu.memref_slice %arg10[%c19_i32] : memref<32x!tpu.dma_semaphore, #tpu.memory_space<semaphore_mem>> -> memref<1x!tpu.dma_semaphore, #tpu.memory_space<semaphore_mem>>
    %99 = tpu.memref_squeeze %98 : memref<1x!tpu.dma_semaphore, #tpu.memory_space<semaphore_mem>> -> memref<!tpu.dma_semaphore, #tpu.memory_space<semaphore_mem>>
    tpu.enqueue_dma source(%96 : memref<1x128xf32, #tpu.memory_space<any>>) target(%97 : memref<1x128xf32, #tpu.memory_space<vmem>>) target_semaphore(%99 : memref<!tpu.dma_semaphore, #tpu.memory_space<semaphore_mem>>)
    %c1_84 = arith.constant 1 : index
    %c4_85 = arith.constant 4 : index
    %100 = memref.load %arg1[%c1_84, %c4_85] : memref<2x16xi32, #tpu.memory_space<smem>>
    %c20_i32 = arith.constant 20 : i32
    %c0_i32_86 = arith.constant 0 : i32
    %101 = tpu.memref_slice %arg2[%100, %c0_i32_86] : memref<512x128xf32, #tpu.memory_space<any>> -> memref<1x128xf32, #tpu.memory_space<any>>
    %c20_i32_87 = arith.constant 20 : i32
    %c0_i32_88 = arith.constant 0 : i32
    %102 = tpu.memref_slice %arg9[%c20_i32_87, %c0_i32_88] : memref<32x128xf32, #tpu.memory_space<vmem>> -> memref<1x128xf32, #tpu.memory_space<vmem>>
    %103 = tpu.memref_slice %arg10[%c20_i32] : memref<32x!tpu.dma_semaphore, #tpu.memory_space<semaphore_mem>> -> memref<1x!tpu.dma_semaphore, #tpu.memory_space<semaphore_mem>>
    %104 = tpu.memref_squeeze %103 : memref<1x!tpu.dma_semaphore, #tpu.memory_space<semaphore_mem>> -> memref<!tpu.dma_semaphore, #tpu.memory_space<semaphore_mem>>
    tpu.enqueue_dma source(%101 : memref<1x128xf32, #tpu.memory_space<any>>) target(%102 : memref<1x128xf32, #tpu.memory_space<vmem>>) target_semaphore(%104 : memref<!tpu.dma_semaphore, #tpu.memory_space<semaphore_mem>>)
    %c1_89 = arith.constant 1 : index
    %c5_90 = arith.constant 5 : index
    %105 = memref.load %arg1[%c1_89, %c5_90] : memref<2x16xi32, #tpu.memory_space<smem>>
    %c21_i32 = arith.constant 21 : i32
    %c0_i32_91 = arith.constant 0 : i32
    %106 = tpu.memref_slice %arg2[%105, %c0_i32_91] : memref<512x128xf32, #tpu.memory_space<any>> -> memref<1x128xf32, #tpu.memory_space<any>>
    %c21_i32_92 = arith.constant 21 : i32
    %c0_i32_93 = arith.constant 0 : i32
    %107 = tpu.memref_slice %arg9[%c21_i32_92, %c0_i32_93] : memref<32x128xf32, #tpu.memory_space<vmem>> -> memref<1x128xf32, #tpu.memory_space<vmem>>
    %108 = tpu.memref_slice %arg10[%c21_i32] : memref<32x!tpu.dma_semaphore, #tpu.memory_space<semaphore_mem>> -> memref<1x!tpu.dma_semaphore, #tpu.memory_space<semaphore_mem>>
    %109 = tpu.memref_squeeze %108 : memref<1x!tpu.dma_semaphore, #tpu.memory_space<semaphore_mem>> -> memref<!tpu.dma_semaphore, #tpu.memory_space<semaphore_mem>>
    tpu.enqueue_dma source(%106 : memref<1x128xf32, #tpu.memory_space<any>>) target(%107 : memref<1x128xf32, #tpu.memory_space<vmem>>) target_semaphore(%109 : memref<!tpu.dma_semaphore, #tpu.memory_space<semaphore_mem>>)
    %c1_94 = arith.constant 1 : index
    %c6_95 = arith.constant 6 : index
    %110 = memref.load %arg1[%c1_94, %c6_95] : memref<2x16xi32, #tpu.memory_space<smem>>
    %c22_i32 = arith.constant 22 : i32
    %c0_i32_96 = arith.constant 0 : i32
    %111 = tpu.memref_slice %arg2[%110, %c0_i32_96] : memref<512x128xf32, #tpu.memory_space<any>> -> memref<1x128xf32, #tpu.memory_space<any>>
    %c22_i32_97 = arith.constant 22 : i32
    %c0_i32_98 = arith.constant 0 : i32
    %112 = tpu.memref_slice %arg9[%c22_i32_97, %c0_i32_98] : memref<32x128xf32, #tpu.memory_space<vmem>> -> memref<1x128xf32, #tpu.memory_space<vmem>>
    %113 = tpu.memref_slice %arg10[%c22_i32] : memref<32x!tpu.dma_semaphore, #tpu.memory_space<semaphore_mem>> -> memref<1x!tpu.dma_semaphore, #tpu.memory_space<semaphore_mem>>
    %114 = tpu.memref_squeeze %113 : memref<1x!tpu.dma_semaphore, #tpu.memory_space<semaphore_mem>> -> memref<!tpu.dma_semaphore, #tpu.memory_space<semaphore_mem>>
    tpu.enqueue_dma source(%111 : memref<1x128xf32, #tpu.memory_space<any>>) target(%112 : memref<1x128xf32, #tpu.memory_space<vmem>>) target_semaphore(%114 : memref<!tpu.dma_semaphore, #tpu.memory_space<semaphore_mem>>)
    %c1_99 = arith.constant 1 : index
    %c7_100 = arith.constant 7 : index
    %115 = memref.load %arg1[%c1_99, %c7_100] : memref<2x16xi32, #tpu.memory_space<smem>>
    %c23_i32 = arith.constant 23 : i32
    %c0_i32_101 = arith.constant 0 : i32
    %116 = tpu.memref_slice %arg2[%115, %c0_i32_101] : memref<512x128xf32, #tpu.memory_space<any>> -> memref<1x128xf32, #tpu.memory_space<any>>
    %c23_i32_102 = arith.constant 23 : i32
    %c0_i32_103 = arith.constant 0 : i32
    %117 = tpu.memref_slice %arg9[%c23_i32_102, %c0_i32_103] : memref<32x128xf32, #tpu.memory_space<vmem>> -> memref<1x128xf32, #tpu.memory_space<vmem>>
    %118 = tpu.memref_slice %arg10[%c23_i32] : memref<32x!tpu.dma_semaphore, #tpu.memory_space<semaphore_mem>> -> memref<1x!tpu.dma_semaphore, #tpu.memory_space<semaphore_mem>>
    %119 = tpu.memref_squeeze %118 : memref<1x!tpu.dma_semaphore, #tpu.memory_space<semaphore_mem>> -> memref<!tpu.dma_semaphore, #tpu.memory_space<semaphore_mem>>
    tpu.enqueue_dma source(%116 : memref<1x128xf32, #tpu.memory_space<any>>) target(%117 : memref<1x128xf32, #tpu.memory_space<vmem>>) target_semaphore(%119 : memref<!tpu.dma_semaphore, #tpu.memory_space<semaphore_mem>>)
    %c1_104 = arith.constant 1 : index
    %c8_105 = arith.constant 8 : index
    %120 = memref.load %arg1[%c1_104, %c8_105] : memref<2x16xi32, #tpu.memory_space<smem>>
    %c24_i32 = arith.constant 24 : i32
    %c0_i32_106 = arith.constant 0 : i32
    %121 = tpu.memref_slice %arg2[%120, %c0_i32_106] : memref<512x128xf32, #tpu.memory_space<any>> -> memref<1x128xf32, #tpu.memory_space<any>>
    %c24_i32_107 = arith.constant 24 : i32
    %c0_i32_108 = arith.constant 0 : i32
    %122 = tpu.memref_slice %arg9[%c24_i32_107, %c0_i32_108] : memref<32x128xf32, #tpu.memory_space<vmem>> -> memref<1x128xf32, #tpu.memory_space<vmem>>
    %123 = tpu.memref_slice %arg10[%c24_i32] : memref<32x!tpu.dma_semaphore, #tpu.memory_space<semaphore_mem>> -> memref<1x!tpu.dma_semaphore, #tpu.memory_space<semaphore_mem>>
    %124 = tpu.memref_squeeze %123 : memref<1x!tpu.dma_semaphore, #tpu.memory_space<semaphore_mem>> -> memref<!tpu.dma_semaphore, #tpu.memory_space<semaphore_mem>>
    tpu.enqueue_dma source(%121 : memref<1x128xf32, #tpu.memory_space<any>>) target(%122 : memref<1x128xf32, #tpu.memory_space<vmem>>) target_semaphore(%124 : memref<!tpu.dma_semaphore, #tpu.memory_space<semaphore_mem>>)
    %c1_109 = arith.constant 1 : index
    %c9_110 = arith.constant 9 : index
    %125 = memref.load %arg1[%c1_109, %c9_110] : memref<2x16xi32, #tpu.memory_space<smem>>
    %c25_i32 = arith.constant 25 : i32
    %c0_i32_111 = arith.constant 0 : i32
    %126 = tpu.memref_slice %arg2[%125, %c0_i32_111] : memref<512x128xf32, #tpu.memory_space<any>> -> memref<1x128xf32, #tpu.memory_space<any>>
    %c25_i32_112 = arith.constant 25 : i32
    %c0_i32_113 = arith.constant 0 : i32
    %127 = tpu.memref_slice %arg9[%c25_i32_112, %c0_i32_113] : memref<32x128xf32, #tpu.memory_space<vmem>> -> memref<1x128xf32, #tpu.memory_space<vmem>>
    %128 = tpu.memref_slice %arg10[%c25_i32] : memref<32x!tpu.dma_semaphore, #tpu.memory_space<semaphore_mem>> -> memref<1x!tpu.dma_semaphore, #tpu.memory_space<semaphore_mem>>
    %129 = tpu.memref_squeeze %128 : memref<1x!tpu.dma_semaphore, #tpu.memory_space<semaphore_mem>> -> memref<!tpu.dma_semaphore, #tpu.memory_space<semaphore_mem>>
    tpu.enqueue_dma source(%126 : memref<1x128xf32, #tpu.memory_space<any>>) target(%127 : memref<1x128xf32, #tpu.memory_space<vmem>>) target_semaphore(%129 : memref<!tpu.dma_semaphore, #tpu.memory_space<semaphore_mem>>)
    %c1_114 = arith.constant 1 : index
    %c10_115 = arith.constant 10 : index
    %130 = memref.load %arg1[%c1_114, %c10_115] : memref<2x16xi32, #tpu.memory_space<smem>>
    %c26_i32 = arith.constant 26 : i32
    %c0_i32_116 = arith.constant 0 : i32
    %131 = tpu.memref_slice %arg2[%130, %c0_i32_116] : memref<512x128xf32, #tpu.memory_space<any>> -> memref<1x128xf32, #tpu.memory_space<any>>
    %c26_i32_117 = arith.constant 26 : i32
    %c0_i32_118 = arith.constant 0 : i32
    %132 = tpu.memref_slice %arg9[%c26_i32_117, %c0_i32_118] : memref<32x128xf32, #tpu.memory_space<vmem>> -> memref<1x128xf32, #tpu.memory_space<vmem>>
    %133 = tpu.memref_slice %arg10[%c26_i32] : memref<32x!tpu.dma_semaphore, #tpu.memory_space<semaphore_mem>> -> memref<1x!tpu.dma_semaphore, #tpu.memory_space<semaphore_mem>>
    %134 = tpu.memref_squeeze %133 : memref<1x!tpu.dma_semaphore, #tpu.memory_space<semaphore_mem>> -> memref<!tpu.dma_semaphore, #tpu.memory_space<semaphore_mem>>
    tpu.enqueue_dma source(%131 : memref<1x128xf32, #tpu.memory_space<any>>) target(%132 : memref<1x128xf32, #tpu.memory_space<vmem>>) target_semaphore(%134 : memref<!tpu.dma_semaphore, #tpu.memory_space<semaphore_mem>>)
    %c1_119 = arith.constant 1 : index
    %c11_120 = arith.constant 11 : index
    %135 = memref.load %arg1[%c1_119, %c11_120] : memref<2x16xi32, #tpu.memory_space<smem>>
    %c27_i32 = arith.constant 27 : i32
    %c0_i32_121 = arith.constant 0 : i32
    %136 = tpu.memref_slice %arg2[%135, %c0_i32_121] : memref<512x128xf32, #tpu.memory_space<any>> -> memref<1x128xf32, #tpu.memory_space<any>>
    %c27_i32_122 = arith.constant 27 : i32
    %c0_i32_123 = arith.constant 0 : i32
    %137 = tpu.memref_slice %arg9[%c27_i32_122, %c0_i32_123] : memref<32x128xf32, #tpu.memory_space<vmem>> -> memref<1x128xf32, #tpu.memory_space<vmem>>
    %138 = tpu.memref_slice %arg10[%c27_i32] : memref<32x!tpu.dma_semaphore, #tpu.memory_space<semaphore_mem>> -> memref<1x!tpu.dma_semaphore, #tpu.memory_space<semaphore_mem>>
    %139 = tpu.memref_squeeze %138 : memref<1x!tpu.dma_semaphore, #tpu.memory_space<semaphore_mem>> -> memref<!tpu.dma_semaphore, #tpu.memory_space<semaphore_mem>>
    tpu.enqueue_dma source(%136 : memref<1x128xf32, #tpu.memory_space<any>>) target(%137 : memref<1x128xf32, #tpu.memory_space<vmem>>) target_semaphore(%139 : memref<!tpu.dma_semaphore, #tpu.memory_space<semaphore_mem>>)
    %c1_124 = arith.constant 1 : index
    %c12_125 = arith.constant 12 : index
    %140 = memref.load %arg1[%c1_124, %c12_125] : memref<2x16xi32, #tpu.memory_space<smem>>
    %c28_i32 = arith.constant 28 : i32
    %c0_i32_126 = arith.constant 0 : i32
    %141 = tpu.memref_slice %arg2[%140, %c0_i32_126] : memref<512x128xf32, #tpu.memory_space<any>> -> memref<1x128xf32, #tpu.memory_space<any>>
    %c28_i32_127 = arith.constant 28 : i32
    %c0_i32_128 = arith.constant 0 : i32
    %142 = tpu.memref_slice %arg9[%c28_i32_127, %c0_i32_128] : memref<32x128xf32, #tpu.memory_space<vmem>> -> memref<1x128xf32, #tpu.memory_space<vmem>>
    %143 = tpu.memref_slice %arg10[%c28_i32] : memref<32x!tpu.dma_semaphore, #tpu.memory_space<semaphore_mem>> -> memref<1x!tpu.dma_semaphore, #tpu.memory_space<semaphore_mem>>
    %144 = tpu.memref_squeeze %143 : memref<1x!tpu.dma_semaphore, #tpu.memory_space<semaphore_mem>> -> memref<!tpu.dma_semaphore, #tpu.memory_space<semaphore_mem>>
    tpu.enqueue_dma source(%141 : memref<1x128xf32, #tpu.memory_space<any>>) target(%142 : memref<1x128xf32, #tpu.memory_space<vmem>>) target_semaphore(%144 : memref<!tpu.dma_semaphore, #tpu.memory_space<semaphore_mem>>)
    %c1_129 = arith.constant 1 : index
    %c13_130 = arith.constant 13 : index
    %145 = memref.load %arg1[%c1_129, %c13_130] : memref<2x16xi32, #tpu.memory_space<smem>>
    %c29_i32 = arith.constant 29 : i32
    %c0_i32_131 = arith.constant 0 : i32
    %146 = tpu.memref_slice %arg2[%145, %c0_i32_131] : memref<512x128xf32, #tpu.memory_space<any>> -> memref<1x128xf32, #tpu.memory_space<any>>
    %c29_i32_132 = arith.constant 29 : i32
    %c0_i32_133 = arith.constant 0 : i32
    %147 = tpu.memref_slice %arg9[%c29_i32_132, %c0_i32_133] : memref<32x128xf32, #tpu.memory_space<vmem>> -> memref<1x128xf32, #tpu.memory_space<vmem>>
    %148 = tpu.memref_slice %arg10[%c29_i32] : memref<32x!tpu.dma_semaphore, #tpu.memory_space<semaphore_mem>> -> memref<1x!tpu.dma_semaphore, #tpu.memory_space<semaphore_mem>>
    %149 = tpu.memref_squeeze %148 : memref<1x!tpu.dma_semaphore, #tpu.memory_space<semaphore_mem>> -> memref<!tpu.dma_semaphore, #tpu.memory_space<semaphore_mem>>
    tpu.enqueue_dma source(%146 : memref<1x128xf32, #tpu.memory_space<any>>) target(%147 : memref<1x128xf32, #tpu.memory_space<vmem>>) target_semaphore(%149 : memref<!tpu.dma_semaphore, #tpu.memory_space<semaphore_mem>>)
    %c1_134 = arith.constant 1 : index
    %c14_135 = arith.constant 14 : index
    %150 = memref.load %arg1[%c1_134, %c14_135] : memref<2x16xi32, #tpu.memory_space<smem>>
    %c30_i32 = arith.constant 30 : i32
    %c0_i32_136 = arith.constant 0 : i32
    %151 = tpu.memref_slice %arg2[%150, %c0_i32_136] : memref<512x128xf32, #tpu.memory_space<any>> -> memref<1x128xf32, #tpu.memory_space<any>>
    %c30_i32_137 = arith.constant 30 : i32
    %c0_i32_138 = arith.constant 0 : i32
    %152 = tpu.memref_slice %arg9[%c30_i32_137, %c0_i32_138] : memref<32x128xf32, #tpu.memory_space<vmem>> -> memref<1x128xf32, #tpu.memory_space<vmem>>
    %153 = tpu.memref_slice %arg10[%c30_i32] : memref<32x!tpu.dma_semaphore, #tpu.memory_space<semaphore_mem>> -> memref<1x!tpu.dma_semaphore, #tpu.memory_space<semaphore_mem>>
    %154 = tpu.memref_squeeze %153 : memref<1x!tpu.dma_semaphore, #tpu.memory_space<semaphore_mem>> -> memref<!tpu.dma_semaphore, #tpu.memory_space<semaphore_mem>>
    tpu.enqueue_dma source(%151 : memref<1x128xf32, #tpu.memory_space<any>>) target(%152 : memref<1x128xf32, #tpu.memory_space<vmem>>) target_semaphore(%154 : memref<!tpu.dma_semaphore, #tpu.memory_space<semaphore_mem>>)
    %c1_139 = arith.constant 1 : index
    %c15_140 = arith.constant 15 : index
    %155 = memref.load %arg1[%c1_139, %c15_140] : memref<2x16xi32, #tpu.memory_space<smem>>
    %c31_i32 = arith.constant 31 : i32
    %c0_i32_141 = arith.constant 0 : i32
    %156 = tpu.memref_slice %arg2[%155, %c0_i32_141] : memref<512x128xf32, #tpu.memory_space<any>> -> memref<1x128xf32, #tpu.memory_space<any>>
    %c31_i32_142 = arith.constant 31 : i32
    %c0_i32_143 = arith.constant 0 : i32
    %157 = tpu.memref_slice %arg9[%c31_i32_142, %c0_i32_143] : memref<32x128xf32, #tpu.memory_space<vmem>> -> memref<1x128xf32, #tpu.memory_space<vmem>>
    %158 = tpu.memref_slice %arg10[%c31_i32] : memref<32x!tpu.dma_semaphore, #tpu.memory_space<semaphore_mem>> -> memref<1x!tpu.dma_semaphore, #tpu.memory_space<semaphore_mem>>
    %159 = tpu.memref_squeeze %158 : memref<1x!tpu.dma_semaphore, #tpu.memory_space<semaphore_mem>> -> memref<!tpu.dma_semaphore, #tpu.memory_space<semaphore_mem>>
    tpu.enqueue_dma source(%156 : memref<1x128xf32, #tpu.memory_space<any>>) target(%157 : memref<1x128xf32, #tpu.memory_space<vmem>>) target_semaphore(%159 : memref<!tpu.dma_semaphore, #tpu.memory_space<semaphore_mem>>)
    %c0_i32_144 = arith.constant 0 : i32
    %c0_i32_145 = arith.constant 0 : i32
    %160 = tpu.memref_slice %arg2[%0, %c0_i32_145] : memref<512x128xf32, #tpu.memory_space<any>> -> memref<1x128xf32, #tpu.memory_space<any>>
    %c0_i32_146 = arith.constant 0 : i32
    %c0_i32_147 = arith.constant 0 : i32
    %161 = tpu.memref_slice %arg9[%c0_i32_146, %c0_i32_147] : memref<32x128xf32, #tpu.memory_space<vmem>> -> memref<1x128xf32, #tpu.memory_space<vmem>>
    %162 = tpu.memref_slice %arg10[%c0_i32_144] : memref<32x!tpu.dma_semaphore, #tpu.memory_space<semaphore_mem>> -> memref<1x!tpu.dma_semaphore, #tpu.memory_space<semaphore_mem>>
    %163 = tpu.memref_squeeze %162 : memref<1x!tpu.dma_semaphore, #tpu.memory_space<semaphore_mem>> -> memref<!tpu.dma_semaphore, #tpu.memory_space<semaphore_mem>>
    tpu.wait_dma2 semaphore(%163 : memref<!tpu.dma_semaphore, #tpu.memory_space<semaphore_mem>>) src(%160 : memref<1x128xf32, #tpu.memory_space<any>>) dst(%161 : memref<1x128xf32, #tpu.memory_space<vmem>>)
    %c1_i32_148 = arith.constant 1 : i32
    %c0_i32_149 = arith.constant 0 : i32
    %164 = tpu.memref_slice %arg2[%5, %c0_i32_149] : memref<512x128xf32, #tpu.memory_space<any>> -> memref<1x128xf32, #tpu.memory_space<any>>
    %c1_i32_150 = arith.constant 1 : i32
    %c0_i32_151 = arith.constant 0 : i32
    %165 = tpu.memref_slice %arg9[%c1_i32_150, %c0_i32_151] : memref<32x128xf32, #tpu.memory_space<vmem>> -> memref<1x128xf32, #tpu.memory_space<vmem>>
    %166 = tpu.memref_slice %arg10[%c1_i32_148] : memref<32x!tpu.dma_semaphore, #tpu.memory_space<semaphore_mem>> -> memref<1x!tpu.dma_semaphore, #tpu.memory_space<semaphore_mem>>
    %167 = tpu.memref_squeeze %166 : memref<1x!tpu.dma_semaphore, #tpu.memory_space<semaphore_mem>> -> memref<!tpu.dma_semaphore, #tpu.memory_space<semaphore_mem>>
    tpu.wait_dma2 semaphore(%167 : memref<!tpu.dma_semaphore, #tpu.memory_space<semaphore_mem>>) src(%164 : memref<1x128xf32, #tpu.memory_space<any>>) dst(%165 : memref<1x128xf32, #tpu.memory_space<vmem>>)
    %c2_i32_152 = arith.constant 2 : i32
    %c0_i32_153 = arith.constant 0 : i32
    %168 = tpu.memref_slice %arg2[%10, %c0_i32_153] : memref<512x128xf32, #tpu.memory_space<any>> -> memref<1x128xf32, #tpu.memory_space<any>>
    %c2_i32_154 = arith.constant 2 : i32
    %c0_i32_155 = arith.constant 0 : i32
    %169 = tpu.memref_slice %arg9[%c2_i32_154, %c0_i32_155] : memref<32x128xf32, #tpu.memory_space<vmem>> -> memref<1x128xf32, #tpu.memory_space<vmem>>
    %170 = tpu.memref_slice %arg10[%c2_i32_152] : memref<32x!tpu.dma_semaphore, #tpu.memory_space<semaphore_mem>> -> memref<1x!tpu.dma_semaphore, #tpu.memory_space<semaphore_mem>>
    %171 = tpu.memref_squeeze %170 : memref<1x!tpu.dma_semaphore, #tpu.memory_space<semaphore_mem>> -> memref<!tpu.dma_semaphore, #tpu.memory_space<semaphore_mem>>
    tpu.wait_dma2 semaphore(%171 : memref<!tpu.dma_semaphore, #tpu.memory_space<semaphore_mem>>) src(%168 : memref<1x128xf32, #tpu.memory_space<any>>) dst(%169 : memref<1x128xf32, #tpu.memory_space<vmem>>)
    %c3_i32_156 = arith.constant 3 : i32
    %c0_i32_157 = arith.constant 0 : i32
    %172 = tpu.memref_slice %arg2[%15, %c0_i32_157] : memref<512x128xf32, #tpu.memory_space<any>> -> memref<1x128xf32, #tpu.memory_space<any>>
    %c3_i32_158 = arith.constant 3 : i32
    %c0_i32_159 = arith.constant 0 : i32
    %173 = tpu.memref_slice %arg9[%c3_i32_158, %c0_i32_159] : memref<32x128xf32, #tpu.memory_space<vmem>> -> memref<1x128xf32, #tpu.memory_space<vmem>>
    %174 = tpu.memref_slice %arg10[%c3_i32_156] : memref<32x!tpu.dma_semaphore, #tpu.memory_space<semaphore_mem>> -> memref<1x!tpu.dma_semaphore, #tpu.memory_space<semaphore_mem>>
    %175 = tpu.memref_squeeze %174 : memref<1x!tpu.dma_semaphore, #tpu.memory_space<semaphore_mem>> -> memref<!tpu.dma_semaphore, #tpu.memory_space<semaphore_mem>>
    tpu.wait_dma2 semaphore(%175 : memref<!tpu.dma_semaphore, #tpu.memory_space<semaphore_mem>>) src(%172 : memref<1x128xf32, #tpu.memory_space<any>>) dst(%173 : memref<1x128xf32, #tpu.memory_space<vmem>>)
    %c4_i32_160 = arith.constant 4 : i32
    %c0_i32_161 = arith.constant 0 : i32
    %176 = tpu.memref_slice %arg2[%20, %c0_i32_161] : memref<512x128xf32, #tpu.memory_space<any>> -> memref<1x128xf32, #tpu.memory_space<any>>
    %c4_i32_162 = arith.constant 4 : i32
    %c0_i32_163 = arith.constant 0 : i32
    %177 = tpu.memref_slice %arg9[%c4_i32_162, %c0_i32_163] : memref<32x128xf32, #tpu.memory_space<vmem>> -> memref<1x128xf32, #tpu.memory_space<vmem>>
    %178 = tpu.memref_slice %arg10[%c4_i32_160] : memref<32x!tpu.dma_semaphore, #tpu.memory_space<semaphore_mem>> -> memref<1x!tpu.dma_semaphore, #tpu.memory_space<semaphore_mem>>
    %179 = tpu.memref_squeeze %178 : memref<1x!tpu.dma_semaphore, #tpu.memory_space<semaphore_mem>> -> memref<!tpu.dma_semaphore, #tpu.memory_space<semaphore_mem>>
    tpu.wait_dma2 semaphore(%179 : memref<!tpu.dma_semaphore, #tpu.memory_space<semaphore_mem>>) src(%176 : memref<1x128xf32, #tpu.memory_space<any>>) dst(%177 : memref<1x128xf32, #tpu.memory_space<vmem>>)
    %c5_i32_164 = arith.constant 5 : i32
    %c0_i32_165 = arith.constant 0 : i32
    %180 = tpu.memref_slice %arg2[%25, %c0_i32_165] : memref<512x128xf32, #tpu.memory_space<any>> -> memref<1x128xf32, #tpu.memory_space<any>>
    %c5_i32_166 = arith.constant 5 : i32
    %c0_i32_167 = arith.constant 0 : i32
    %181 = tpu.memref_slice %arg9[%c5_i32_166, %c0_i32_167] : memref<32x128xf32, #tpu.memory_space<vmem>> -> memref<1x128xf32, #tpu.memory_space<vmem>>
    %182 = tpu.memref_slice %arg10[%c5_i32_164] : memref<32x!tpu.dma_semaphore, #tpu.memory_space<semaphore_mem>> -> memref<1x!tpu.dma_semaphore, #tpu.memory_space<semaphore_mem>>
    %183 = tpu.memref_squeeze %182 : memref<1x!tpu.dma_semaphore, #tpu.memory_space<semaphore_mem>> -> memref<!tpu.dma_semaphore, #tpu.memory_space<semaphore_mem>>
    tpu.wait_dma2 semaphore(%183 : memref<!tpu.dma_semaphore, #tpu.memory_space<semaphore_mem>>) src(%180 : memref<1x128xf32, #tpu.memory_space<any>>) dst(%181 : memref<1x128xf32, #tpu.memory_space<vmem>>)
    %c6_i32_168 = arith.constant 6 : i32
    %c0_i32_169 = arith.constant 0 : i32
    %184 = tpu.memref_slice %arg2[%30, %c0_i32_169] : memref<512x128xf32, #tpu.memory_space<any>> -> memref<1x128xf32, #tpu.memory_space<any>>
    %c6_i32_170 = arith.constant 6 : i32
    %c0_i32_171 = arith.constant 0 : i32
    %185 = tpu.memref_slice %arg9[%c6_i32_170, %c0_i32_171] : memref<32x128xf32, #tpu.memory_space<vmem>> -> memref<1x128xf32, #tpu.memory_space<vmem>>
    %186 = tpu.memref_slice %arg10[%c6_i32_168] : memref<32x!tpu.dma_semaphore, #tpu.memory_space<semaphore_mem>> -> memref<1x!tpu.dma_semaphore, #tpu.memory_space<semaphore_mem>>
    %187 = tpu.memref_squeeze %186 : memref<1x!tpu.dma_semaphore, #tpu.memory_space<semaphore_mem>> -> memref<!tpu.dma_semaphore, #tpu.memory_space<semaphore_mem>>
    tpu.wait_dma2 semaphore(%187 : memref<!tpu.dma_semaphore, #tpu.memory_space<semaphore_mem>>) src(%184 : memref<1x128xf32, #tpu.memory_space<any>>) dst(%185 : memref<1x128xf32, #tpu.memory_space<vmem>>)
    %c7_i32_172 = arith.constant 7 : i32
    %c0_i32_173 = arith.constant 0 : i32
    %188 = tpu.memref_slice %arg2[%35, %c0_i32_173] : memref<512x128xf32, #tpu.memory_space<any>> -> memref<1x128xf32, #tpu.memory_space<any>>
    %c7_i32_174 = arith.constant 7 : i32
    %c0_i32_175 = arith.constant 0 : i32
    %189 = tpu.memref_slice %arg9[%c7_i32_174, %c0_i32_175] : memref<32x128xf32, #tpu.memory_space<vmem>> -> memref<1x128xf32, #tpu.memory_space<vmem>>
    %190 = tpu.memref_slice %arg10[%c7_i32_172] : memref<32x!tpu.dma_semaphore, #tpu.memory_space<semaphore_mem>> -> memref<1x!tpu.dma_semaphore, #tpu.memory_space<semaphore_mem>>
    %191 = tpu.memref_squeeze %190 : memref<1x!tpu.dma_semaphore, #tpu.memory_space<semaphore_mem>> -> memref<!tpu.dma_semaphore, #tpu.memory_space<semaphore_mem>>
    tpu.wait_dma2 semaphore(%191 : memref<!tpu.dma_semaphore, #tpu.memory_space<semaphore_mem>>) src(%188 : memref<1x128xf32, #tpu.memory_space<any>>) dst(%189 : memref<1x128xf32, #tpu.memory_space<vmem>>)
    %c8_i32_176 = arith.constant 8 : i32
    %c0_i32_177 = arith.constant 0 : i32
    %192 = tpu.memref_slice %arg2[%40, %c0_i32_177] : memref<512x128xf32, #tpu.memory_space<any>> -> memref<1x128xf32, #tpu.memory_space<any>>
    %c8_i32_178 = arith.constant 8 : i32
    %c0_i32_179 = arith.constant 0 : i32
    %193 = tpu.memref_slice %arg9[%c8_i32_178, %c0_i32_179] : memref<32x128xf32, #tpu.memory_space<vmem>> -> memref<1x128xf32, #tpu.memory_space<vmem>>
    %194 = tpu.memref_slice %arg10[%c8_i32_176] : memref<32x!tpu.dma_semaphore, #tpu.memory_space<semaphore_mem>> -> memref<1x!tpu.dma_semaphore, #tpu.memory_space<semaphore_mem>>
    %195 = tpu.memref_squeeze %194 : memref<1x!tpu.dma_semaphore, #tpu.memory_space<semaphore_mem>> -> memref<!tpu.dma_semaphore, #tpu.memory_space<semaphore_mem>>
    tpu.wait_dma2 semaphore(%195 : memref<!tpu.dma_semaphore, #tpu.memory_space<semaphore_mem>>) src(%192 : memref<1x128xf32, #tpu.memory_space<any>>) dst(%193 : memref<1x128xf32, #tpu.memory_space<vmem>>)
    %c9_i32_180 = arith.constant 9 : i32
    %c0_i32_181 = arith.constant 0 : i32
    %196 = tpu.memref_slice %arg2[%45, %c0_i32_181] : memref<512x128xf32, #tpu.memory_space<any>> -> memref<1x128xf32, #tpu.memory_space<any>>
    %c9_i32_182 = arith.constant 9 : i32
    %c0_i32_183 = arith.constant 0 : i32
    %197 = tpu.memref_slice %arg9[%c9_i32_182, %c0_i32_183] : memref<32x128xf32, #tpu.memory_space<vmem>> -> memref<1x128xf32, #tpu.memory_space<vmem>>
    %198 = tpu.memref_slice %arg10[%c9_i32_180] : memref<32x!tpu.dma_semaphore, #tpu.memory_space<semaphore_mem>> -> memref<1x!tpu.dma_semaphore, #tpu.memory_space<semaphore_mem>>
    %199 = tpu.memref_squeeze %198 : memref<1x!tpu.dma_semaphore, #tpu.memory_space<semaphore_mem>> -> memref<!tpu.dma_semaphore, #tpu.memory_space<semaphore_mem>>
    tpu.wait_dma2 semaphore(%199 : memref<!tpu.dma_semaphore, #tpu.memory_space<semaphore_mem>>) src(%196 : memref<1x128xf32, #tpu.memory_space<any>>) dst(%197 : memref<1x128xf32, #tpu.memory_space<vmem>>)
    %c10_i32_184 = arith.constant 10 : i32
    %c0_i32_185 = arith.constant 0 : i32
    %200 = tpu.memref_slice %arg2[%50, %c0_i32_185] : memref<512x128xf32, #tpu.memory_space<any>> -> memref<1x128xf32, #tpu.memory_space<any>>
    %c10_i32_186 = arith.constant 10 : i32
    %c0_i32_187 = arith.constant 0 : i32
    %201 = tpu.memref_slice %arg9[%c10_i32_186, %c0_i32_187] : memref<32x128xf32, #tpu.memory_space<vmem>> -> memref<1x128xf32, #tpu.memory_space<vmem>>
    %202 = tpu.memref_slice %arg10[%c10_i32_184] : memref<32x!tpu.dma_semaphore, #tpu.memory_space<semaphore_mem>> -> memref<1x!tpu.dma_semaphore, #tpu.memory_space<semaphore_mem>>
    %203 = tpu.memref_squeeze %202 : memref<1x!tpu.dma_semaphore, #tpu.memory_space<semaphore_mem>> -> memref<!tpu.dma_semaphore, #tpu.memory_space<semaphore_mem>>
    tpu.wait_dma2 semaphore(%203 : memref<!tpu.dma_semaphore, #tpu.memory_space<semaphore_mem>>) src(%200 : memref<1x128xf32, #tpu.memory_space<any>>) dst(%201 : memref<1x128xf32, #tpu.memory_space<vmem>>)
    %c11_i32_188 = arith.constant 11 : i32
    %c0_i32_189 = arith.constant 0 : i32
    %204 = tpu.memref_slice %arg2[%55, %c0_i32_189] : memref<512x128xf32, #tpu.memory_space<any>> -> memref<1x128xf32, #tpu.memory_space<any>>
    %c11_i32_190 = arith.constant 11 : i32
    %c0_i32_191 = arith.constant 0 : i32
    %205 = tpu.memref_slice %arg9[%c11_i32_190, %c0_i32_191] : memref<32x128xf32, #tpu.memory_space<vmem>> -> memref<1x128xf32, #tpu.memory_space<vmem>>
    %206 = tpu.memref_slice %arg10[%c11_i32_188] : memref<32x!tpu.dma_semaphore, #tpu.memory_space<semaphore_mem>> -> memref<1x!tpu.dma_semaphore, #tpu.memory_space<semaphore_mem>>
    %207 = tpu.memref_squeeze %206 : memref<1x!tpu.dma_semaphore, #tpu.memory_space<semaphore_mem>> -> memref<!tpu.dma_semaphore, #tpu.memory_space<semaphore_mem>>
    tpu.wait_dma2 semaphore(%207 : memref<!tpu.dma_semaphore, #tpu.memory_space<semaphore_mem>>) src(%204 : memref<1x128xf32, #tpu.memory_space<any>>) dst(%205 : memref<1x128xf32, #tpu.memory_space<vmem>>)
    %c12_i32_192 = arith.constant 12 : i32
    %c0_i32_193 = arith.constant 0 : i32
    %208 = tpu.memref_slice %arg2[%60, %c0_i32_193] : memref<512x128xf32, #tpu.memory_space<any>> -> memref<1x128xf32, #tpu.memory_space<any>>
    %c12_i32_194 = arith.constant 12 : i32
    %c0_i32_195 = arith.constant 0 : i32
    %209 = tpu.memref_slice %arg9[%c12_i32_194, %c0_i32_195] : memref<32x128xf32, #tpu.memory_space<vmem>> -> memref<1x128xf32, #tpu.memory_space<vmem>>
    %210 = tpu.memref_slice %arg10[%c12_i32_192] : memref<32x!tpu.dma_semaphore, #tpu.memory_space<semaphore_mem>> -> memref<1x!tpu.dma_semaphore, #tpu.memory_space<semaphore_mem>>
    %211 = tpu.memref_squeeze %210 : memref<1x!tpu.dma_semaphore, #tpu.memory_space<semaphore_mem>> -> memref<!tpu.dma_semaphore, #tpu.memory_space<semaphore_mem>>
    tpu.wait_dma2 semaphore(%211 : memref<!tpu.dma_semaphore, #tpu.memory_space<semaphore_mem>>) src(%208 : memref<1x128xf32, #tpu.memory_space<any>>) dst(%209 : memref<1x128xf32, #tpu.memory_space<vmem>>)
    %c13_i32_196 = arith.constant 13 : i32
    %c0_i32_197 = arith.constant 0 : i32
    %212 = tpu.memref_slice %arg2[%65, %c0_i32_197] : memref<512x128xf32, #tpu.memory_space<any>> -> memref<1x128xf32, #tpu.memory_space<any>>
    %c13_i32_198 = arith.constant 13 : i32
    %c0_i32_199 = arith.constant 0 : i32
    %213 = tpu.memref_slice %arg9[%c13_i32_198, %c0_i32_199] : memref<32x128xf32, #tpu.memory_space<vmem>> -> memref<1x128xf32, #tpu.memory_space<vmem>>
    %214 = tpu.memref_slice %arg10[%c13_i32_196] : memref<32x!tpu.dma_semaphore, #tpu.memory_space<semaphore_mem>> -> memref<1x!tpu.dma_semaphore, #tpu.memory_space<semaphore_mem>>
    %215 = tpu.memref_squeeze %214 : memref<1x!tpu.dma_semaphore, #tpu.memory_space<semaphore_mem>> -> memref<!tpu.dma_semaphore, #tpu.memory_space<semaphore_mem>>
    tpu.wait_dma2 semaphore(%215 : memref<!tpu.dma_semaphore, #tpu.memory_space<semaphore_mem>>) src(%212 : memref<1x128xf32, #tpu.memory_space<any>>) dst(%213 : memref<1x128xf32, #tpu.memory_space<vmem>>)
    %c14_i32_200 = arith.constant 14 : i32
    %c0_i32_201 = arith.constant 0 : i32
    %216 = tpu.memref_slice %arg2[%70, %c0_i32_201] : memref<512x128xf32, #tpu.memory_space<any>> -> memref<1x128xf32, #tpu.memory_space<any>>
    %c14_i32_202 = arith.constant 14 : i32
    %c0_i32_203 = arith.constant 0 : i32
    %217 = tpu.memref_slice %arg9[%c14_i32_202, %c0_i32_203] : memref<32x128xf32, #tpu.memory_space<vmem>> -> memref<1x128xf32, #tpu.memory_space<vmem>>
    %218 = tpu.memref_slice %arg10[%c14_i32_200] : memref<32x!tpu.dma_semaphore, #tpu.memory_space<semaphore_mem>> -> memref<1x!tpu.dma_semaphore, #tpu.memory_space<semaphore_mem>>
    %219 = tpu.memref_squeeze %218 : memref<1x!tpu.dma_semaphore, #tpu.memory_space<semaphore_mem>> -> memref<!tpu.dma_semaphore, #tpu.memory_space<semaphore_mem>>
    tpu.wait_dma2 semaphore(%219 : memref<!tpu.dma_semaphore, #tpu.memory_space<semaphore_mem>>) src(%216 : memref<1x128xf32, #tpu.memory_space<any>>) dst(%217 : memref<1x128xf32, #tpu.memory_space<vmem>>)
    %c15_i32_204 = arith.constant 15 : i32
    %c0_i32_205 = arith.constant 0 : i32
    %220 = tpu.memref_slice %arg2[%75, %c0_i32_205] : memref<512x128xf32, #tpu.memory_space<any>> -> memref<1x128xf32, #tpu.memory_space<any>>
    %c15_i32_206 = arith.constant 15 : i32
    %c0_i32_207 = arith.constant 0 : i32
    %221 = tpu.memref_slice %arg9[%c15_i32_206, %c0_i32_207] : memref<32x128xf32, #tpu.memory_space<vmem>> -> memref<1x128xf32, #tpu.memory_space<vmem>>
    %222 = tpu.memref_slice %arg10[%c15_i32_204] : memref<32x!tpu.dma_semaphore, #tpu.memory_space<semaphore_mem>> -> memref<1x!tpu.dma_semaphore, #tpu.memory_space<semaphore_mem>>
    %223 = tpu.memref_squeeze %222 : memref<1x!tpu.dma_semaphore, #tpu.memory_space<semaphore_mem>> -> memref<!tpu.dma_semaphore, #tpu.memory_space<semaphore_mem>>
    tpu.wait_dma2 semaphore(%223 : memref<!tpu.dma_semaphore, #tpu.memory_space<semaphore_mem>>) src(%220 : memref<1x128xf32, #tpu.memory_space<any>>) dst(%221 : memref<1x128xf32, #tpu.memory_space<vmem>>)
    %c16_i32_208 = arith.constant 16 : i32
    %c0_i32_209 = arith.constant 0 : i32
    %224 = tpu.memref_slice %arg2[%80, %c0_i32_209] : memref<512x128xf32, #tpu.memory_space<any>> -> memref<1x128xf32, #tpu.memory_space<any>>
    %c16_i32_210 = arith.constant 16 : i32
    %c0_i32_211 = arith.constant 0 : i32
    %225 = tpu.memref_slice %arg9[%c16_i32_210, %c0_i32_211] : memref<32x128xf32, #tpu.memory_space<vmem>> -> memref<1x128xf32, #tpu.memory_space<vmem>>
    %226 = tpu.memref_slice %arg10[%c16_i32_208] : memref<32x!tpu.dma_semaphore, #tpu.memory_space<semaphore_mem>> -> memref<1x!tpu.dma_semaphore, #tpu.memory_space<semaphore_mem>>
    %227 = tpu.memref_squeeze %226 : memref<1x!tpu.dma_semaphore, #tpu.memory_space<semaphore_mem>> -> memref<!tpu.dma_semaphore, #tpu.memory_space<semaphore_mem>>
    tpu.wait_dma2 semaphore(%227 : memref<!tpu.dma_semaphore, #tpu.memory_space<semaphore_mem>>) src(%224 : memref<1x128xf32, #tpu.memory_space<any>>) dst(%225 : memref<1x128xf32, #tpu.memory_space<vmem>>)
    %c17_i32_212 = arith.constant 17 : i32
    %c0_i32_213 = arith.constant 0 : i32
    %228 = tpu.memref_slice %arg2[%85, %c0_i32_213] : memref<512x128xf32, #tpu.memory_space<any>> -> memref<1x128xf32, #tpu.memory_space<any>>
    %c17_i32_214 = arith.constant 17 : i32
    %c0_i32_215 = arith.constant 0 : i32
    %229 = tpu.memref_slice %arg9[%c17_i32_214, %c0_i32_215] : memref<32x128xf32, #tpu.memory_space<vmem>> -> memref<1x128xf32, #tpu.memory_space<vmem>>
    %230 = tpu.memref_slice %arg10[%c17_i32_212] : memref<32x!tpu.dma_semaphore, #tpu.memory_space<semaphore_mem>> -> memref<1x!tpu.dma_semaphore, #tpu.memory_space<semaphore_mem>>
    %231 = tpu.memref_squeeze %230 : memref<1x!tpu.dma_semaphore, #tpu.memory_space<semaphore_mem>> -> memref<!tpu.dma_semaphore, #tpu.memory_space<semaphore_mem>>
    tpu.wait_dma2 semaphore(%231 : memref<!tpu.dma_semaphore, #tpu.memory_space<semaphore_mem>>) src(%228 : memref<1x128xf32, #tpu.memory_space<any>>) dst(%229 : memref<1x128xf32, #tpu.memory_space<vmem>>)
    %c18_i32_216 = arith.constant 18 : i32
    %c0_i32_217 = arith.constant 0 : i32
    %232 = tpu.memref_slice %arg2[%90, %c0_i32_217] : memref<512x128xf32, #tpu.memory_space<any>> -> memref<1x128xf32, #tpu.memory_space<any>>
    %c18_i32_218 = arith.constant 18 : i32
    %c0_i32_219 = arith.constant 0 : i32
    %233 = tpu.memref_slice %arg9[%c18_i32_218, %c0_i32_219] : memref<32x128xf32, #tpu.memory_space<vmem>> -> memref<1x128xf32, #tpu.memory_space<vmem>>
    %234 = tpu.memref_slice %arg10[%c18_i32_216] : memref<32x!tpu.dma_semaphore, #tpu.memory_space<semaphore_mem>> -> memref<1x!tpu.dma_semaphore, #tpu.memory_space<semaphore_mem>>
    %235 = tpu.memref_squeeze %234 : memref<1x!tpu.dma_semaphore, #tpu.memory_space<semaphore_mem>> -> memref<!tpu.dma_semaphore, #tpu.memory_space<semaphore_mem>>
    tpu.wait_dma2 semaphore(%235 : memref<!tpu.dma_semaphore, #tpu.memory_space<semaphore_mem>>) src(%232 : memref<1x128xf32, #tpu.memory_space<any>>) dst(%233 : memref<1x128xf32, #tpu.memory_space<vmem>>)
    %c19_i32_220 = arith.constant 19 : i32
    %c0_i32_221 = arith.constant 0 : i32
    %236 = tpu.memref_slice %arg2[%95, %c0_i32_221] : memref<512x128xf32, #tpu.memory_space<any>> -> memref<1x128xf32, #tpu.memory_space<any>>
    %c19_i32_222 = arith.constant 19 : i32
    %c0_i32_223 = arith.constant 0 : i32
    %237 = tpu.memref_slice %arg9[%c19_i32_222, %c0_i32_223] : memref<32x128xf32, #tpu.memory_space<vmem>> -> memref<1x128xf32, #tpu.memory_space<vmem>>
    %238 = tpu.memref_slice %arg10[%c19_i32_220] : memref<32x!tpu.dma_semaphore, #tpu.memory_space<semaphore_mem>> -> memref<1x!tpu.dma_semaphore, #tpu.memory_space<semaphore_mem>>
    %239 = tpu.memref_squeeze %238 : memref<1x!tpu.dma_semaphore, #tpu.memory_space<semaphore_mem>> -> memref<!tpu.dma_semaphore, #tpu.memory_space<semaphore_mem>>
    tpu.wait_dma2 semaphore(%239 : memref<!tpu.dma_semaphore, #tpu.memory_space<semaphore_mem>>) src(%236 : memref<1x128xf32, #tpu.memory_space<any>>) dst(%237 : memref<1x128xf32, #tpu.memory_space<vmem>>)
    %c20_i32_224 = arith.constant 20 : i32
    %c0_i32_225 = arith.constant 0 : i32
    %240 = tpu.memref_slice %arg2[%100, %c0_i32_225] : memref<512x128xf32, #tpu.memory_space<any>> -> memref<1x128xf32, #tpu.memory_space<any>>
    %c20_i32_226 = arith.constant 20 : i32
    %c0_i32_227 = arith.constant 0 : i32
    %241 = tpu.memref_slice %arg9[%c20_i32_226, %c0_i32_227] : memref<32x128xf32, #tpu.memory_space<vmem>> -> memref<1x128xf32, #tpu.memory_space<vmem>>
    %242 = tpu.memref_slice %arg10[%c20_i32_224] : memref<32x!tpu.dma_semaphore, #tpu.memory_space<semaphore_mem>> -> memref<1x!tpu.dma_semaphore, #tpu.memory_space<semaphore_mem>>
    %243 = tpu.memref_squeeze %242 : memref<1x!tpu.dma_semaphore, #tpu.memory_space<semaphore_mem>> -> memref<!tpu.dma_semaphore, #tpu.memory_space<semaphore_mem>>
    tpu.wait_dma2 semaphore(%243 : memref<!tpu.dma_semaphore, #tpu.memory_space<semaphore_mem>>) src(%240 : memref<1x128xf32, #tpu.memory_space<any>>) dst(%241 : memref<1x128xf32, #tpu.memory_space<vmem>>)
    %c21_i32_228 = arith.constant 21 : i32
    %c0_i32_229 = arith.constant 0 : i32
    %244 = tpu.memref_slice %arg2[%105, %c0_i32_229] : memref<512x128xf32, #tpu.memory_space<any>> -> memref<1x128xf32, #tpu.memory_space<any>>
    %c21_i32_230 = arith.constant 21 : i32
    %c0_i32_231 = arith.constant 0 : i32
    %245 = tpu.memref_slice %arg9[%c21_i32_230, %c0_i32_231] : memref<32x128xf32, #tpu.memory_space<vmem>> -> memref<1x128xf32, #tpu.memory_space<vmem>>
    %246 = tpu.memref_slice %arg10[%c21_i32_228] : memref<32x!tpu.dma_semaphore, #tpu.memory_space<semaphore_mem>> -> memref<1x!tpu.dma_semaphore, #tpu.memory_space<semaphore_mem>>
    %247 = tpu.memref_squeeze %246 : memref<1x!tpu.dma_semaphore, #tpu.memory_space<semaphore_mem>> -> memref<!tpu.dma_semaphore, #tpu.memory_space<semaphore_mem>>
    tpu.wait_dma2 semaphore(%247 : memref<!tpu.dma_semaphore, #tpu.memory_space<semaphore_mem>>) src(%244 : memref<1x128xf32, #tpu.memory_space<any>>) dst(%245 : memref<1x128xf32, #tpu.memory_space<vmem>>)
    %c22_i32_232 = arith.constant 22 : i32
    %c0_i32_233 = arith.constant 0 : i32
    %248 = tpu.memref_slice %arg2[%110, %c0_i32_233] : memref<512x128xf32, #tpu.memory_space<any>> -> memref<1x128xf32, #tpu.memory_space<any>>
    %c22_i32_234 = arith.constant 22 : i32
    %c0_i32_235 = arith.constant 0 : i32
    %249 = tpu.memref_slice %arg9[%c22_i32_234, %c0_i32_235] : memref<32x128xf32, #tpu.memory_space<vmem>> -> memref<1x128xf32, #tpu.memory_space<vmem>>
    %250 = tpu.memref_slice %arg10[%c22_i32_232] : memref<32x!tpu.dma_semaphore, #tpu.memory_space<semaphore_mem>> -> memref<1x!tpu.dma_semaphore, #tpu.memory_space<semaphore_mem>>
    %251 = tpu.memref_squeeze %250 : memref<1x!tpu.dma_semaphore, #tpu.memory_space<semaphore_mem>> -> memref<!tpu.dma_semaphore, #tpu.memory_space<semaphore_mem>>
    tpu.wait_dma2 semaphore(%251 : memref<!tpu.dma_semaphore, #tpu.memory_space<semaphore_mem>>) src(%248 : memref<1x128xf32, #tpu.memory_space<any>>) dst(%249 : memref<1x128xf32, #tpu.memory_space<vmem>>)
    %c23_i32_236 = arith.constant 23 : i32
    %c0_i32_237 = arith.constant 0 : i32
    %252 = tpu.memref_slice %arg2[%115, %c0_i32_237] : memref<512x128xf32, #tpu.memory_space<any>> -> memref<1x128xf32, #tpu.memory_space<any>>
    %c23_i32_238 = arith.constant 23 : i32
    %c0_i32_239 = arith.constant 0 : i32
    %253 = tpu.memref_slice %arg9[%c23_i32_238, %c0_i32_239] : memref<32x128xf32, #tpu.memory_space<vmem>> -> memref<1x128xf32, #tpu.memory_space<vmem>>
    %254 = tpu.memref_slice %arg10[%c23_i32_236] : memref<32x!tpu.dma_semaphore, #tpu.memory_space<semaphore_mem>> -> memref<1x!tpu.dma_semaphore, #tpu.memory_space<semaphore_mem>>
    %255 = tpu.memref_squeeze %254 : memref<1x!tpu.dma_semaphore, #tpu.memory_space<semaphore_mem>> -> memref<!tpu.dma_semaphore, #tpu.memory_space<semaphore_mem>>
    tpu.wait_dma2 semaphore(%255 : memref<!tpu.dma_semaphore, #tpu.memory_space<semaphore_mem>>) src(%252 : memref<1x128xf32, #tpu.memory_space<any>>) dst(%253 : memref<1x128xf32, #tpu.memory_space<vmem>>)
    %c24_i32_240 = arith.constant 24 : i32
    %c0_i32_241 = arith.constant 0 : i32
    %256 = tpu.memref_slice %arg2[%120, %c0_i32_241] : memref<512x128xf32, #tpu.memory_space<any>> -> memref<1x128xf32, #tpu.memory_space<any>>
    %c24_i32_242 = arith.constant 24 : i32
    %c0_i32_243 = arith.constant 0 : i32
    %257 = tpu.memref_slice %arg9[%c24_i32_242, %c0_i32_243] : memref<32x128xf32, #tpu.memory_space<vmem>> -> memref<1x128xf32, #tpu.memory_space<vmem>>
    %258 = tpu.memref_slice %arg10[%c24_i32_240] : memref<32x!tpu.dma_semaphore, #tpu.memory_space<semaphore_mem>> -> memref<1x!tpu.dma_semaphore, #tpu.memory_space<semaphore_mem>>
    %259 = tpu.memref_squeeze %258 : memref<1x!tpu.dma_semaphore, #tpu.memory_space<semaphore_mem>> -> memref<!tpu.dma_semaphore, #tpu.memory_space<semaphore_mem>>
    tpu.wait_dma2 semaphore(%259 : memref<!tpu.dma_semaphore, #tpu.memory_space<semaphore_mem>>) src(%256 : memref<1x128xf32, #tpu.memory_space<any>>) dst(%257 : memref<1x128xf32, #tpu.memory_space<vmem>>)
    %c25_i32_244 = arith.constant 25 : i32
    %c0_i32_245 = arith.constant 0 : i32
    %260 = tpu.memref_slice %arg2[%125, %c0_i32_245] : memref<512x128xf32, #tpu.memory_space<any>> -> memref<1x128xf32, #tpu.memory_space<any>>
    %c25_i32_246 = arith.constant 25 : i32
    %c0_i32_247 = arith.constant 0 : i32
    %261 = tpu.memref_slice %arg9[%c25_i32_246, %c0_i32_247] : memref<32x128xf32, #tpu.memory_space<vmem>> -> memref<1x128xf32, #tpu.memory_space<vmem>>
    %262 = tpu.memref_slice %arg10[%c25_i32_244] : memref<32x!tpu.dma_semaphore, #tpu.memory_space<semaphore_mem>> -> memref<1x!tpu.dma_semaphore, #tpu.memory_space<semaphore_mem>>
    %263 = tpu.memref_squeeze %262 : memref<1x!tpu.dma_semaphore, #tpu.memory_space<semaphore_mem>> -> memref<!tpu.dma_semaphore, #tpu.memory_space<semaphore_mem>>
    tpu.wait_dma2 semaphore(%263 : memref<!tpu.dma_semaphore, #tpu.memory_space<semaphore_mem>>) src(%260 : memref<1x128xf32, #tpu.memory_space<any>>) dst(%261 : memref<1x128xf32, #tpu.memory_space<vmem>>)
    %c26_i32_248 = arith.constant 26 : i32
    %c0_i32_249 = arith.constant 0 : i32
    %264 = tpu.memref_slice %arg2[%130, %c0_i32_249] : memref<512x128xf32, #tpu.memory_space<any>> -> memref<1x128xf32, #tpu.memory_space<any>>
    %c26_i32_250 = arith.constant 26 : i32
    %c0_i32_251 = arith.constant 0 : i32
    %265 = tpu.memref_slice %arg9[%c26_i32_250, %c0_i32_251] : memref<32x128xf32, #tpu.memory_space<vmem>> -> memref<1x128xf32, #tpu.memory_space<vmem>>
    %266 = tpu.memref_slice %arg10[%c26_i32_248] : memref<32x!tpu.dma_semaphore, #tpu.memory_space<semaphore_mem>> -> memref<1x!tpu.dma_semaphore, #tpu.memory_space<semaphore_mem>>
    %267 = tpu.memref_squeeze %266 : memref<1x!tpu.dma_semaphore, #tpu.memory_space<semaphore_mem>> -> memref<!tpu.dma_semaphore, #tpu.memory_space<semaphore_mem>>
    tpu.wait_dma2 semaphore(%267 : memref<!tpu.dma_semaphore, #tpu.memory_space<semaphore_mem>>) src(%264 : memref<1x128xf32, #tpu.memory_space<any>>) dst(%265 : memref<1x128xf32, #tpu.memory_space<vmem>>)
    %c27_i32_252 = arith.constant 27 : i32
    %c0_i32_253 = arith.constant 0 : i32
    %268 = tpu.memref_slice %arg2[%135, %c0_i32_253] : memref<512x128xf32, #tpu.memory_space<any>> -> memref<1x128xf32, #tpu.memory_space<any>>
    %c27_i32_254 = arith.constant 27 : i32
    %c0_i32_255 = arith.constant 0 : i32
    %269 = tpu.memref_slice %arg9[%c27_i32_254, %c0_i32_255] : memref<32x128xf32, #tpu.memory_space<vmem>> -> memref<1x128xf32, #tpu.memory_space<vmem>>
    %270 = tpu.memref_slice %arg10[%c27_i32_252] : memref<32x!tpu.dma_semaphore, #tpu.memory_space<semaphore_mem>> -> memref<1x!tpu.dma_semaphore, #tpu.memory_space<semaphore_mem>>
    %271 = tpu.memref_squeeze %270 : memref<1x!tpu.dma_semaphore, #tpu.memory_space<semaphore_mem>> -> memref<!tpu.dma_semaphore, #tpu.memory_space<semaphore_mem>>
    tpu.wait_dma2 semaphore(%271 : memref<!tpu.dma_semaphore, #tpu.memory_space<semaphore_mem>>) src(%268 : memref<1x128xf32, #tpu.memory_space<any>>) dst(%269 : memref<1x128xf32, #tpu.memory_space<vmem>>)
    %c28_i32_256 = arith.constant 28 : i32
    %c0_i32_257 = arith.constant 0 : i32
    %272 = tpu.memref_slice %arg2[%140, %c0_i32_257] : memref<512x128xf32, #tpu.memory_space<any>> -> memref<1x128xf32, #tpu.memory_space<any>>
    %c28_i32_258 = arith.constant 28 : i32
    %c0_i32_259 = arith.constant 0 : i32
    %273 = tpu.memref_slice %arg9[%c28_i32_258, %c0_i32_259] : memref<32x128xf32, #tpu.memory_space<vmem>> -> memref<1x128xf32, #tpu.memory_space<vmem>>
    %274 = tpu.memref_slice %arg10[%c28_i32_256] : memref<32x!tpu.dma_semaphore, #tpu.memory_space<semaphore_mem>> -> memref<1x!tpu.dma_semaphore, #tpu.memory_space<semaphore_mem>>
    %275 = tpu.memref_squeeze %274 : memref<1x!tpu.dma_semaphore, #tpu.memory_space<semaphore_mem>> -> memref<!tpu.dma_semaphore, #tpu.memory_space<semaphore_mem>>
    tpu.wait_dma2 semaphore(%275 : memref<!tpu.dma_semaphore, #tpu.memory_space<semaphore_mem>>) src(%272 : memref<1x128xf32, #tpu.memory_space<any>>) dst(%273 : memref<1x128xf32, #tpu.memory_space<vmem>>)
    %c29_i32_260 = arith.constant 29 : i32
    %c0_i32_261 = arith.constant 0 : i32
    %276 = tpu.memref_slice %arg2[%145, %c0_i32_261] : memref<512x128xf32, #tpu.memory_space<any>> -> memref<1x128xf32, #tpu.memory_space<any>>
    %c29_i32_262 = arith.constant 29 : i32
    %c0_i32_263 = arith.constant 0 : i32
    %277 = tpu.memref_slice %arg9[%c29_i32_262, %c0_i32_263] : memref<32x128xf32, #tpu.memory_space<vmem>> -> memref<1x128xf32, #tpu.memory_space<vmem>>
    %278 = tpu.memref_slice %arg10[%c29_i32_260] : memref<32x!tpu.dma_semaphore, #tpu.memory_space<semaphore_mem>> -> memref<1x!tpu.dma_semaphore, #tpu.memory_space<semaphore_mem>>
    %279 = tpu.memref_squeeze %278 : memref<1x!tpu.dma_semaphore, #tpu.memory_space<semaphore_mem>> -> memref<!tpu.dma_semaphore, #tpu.memory_space<semaphore_mem>>
    tpu.wait_dma2 semaphore(%279 : memref<!tpu.dma_semaphore, #tpu.memory_space<semaphore_mem>>) src(%276 : memref<1x128xf32, #tpu.memory_space<any>>) dst(%277 : memref<1x128xf32, #tpu.memory_space<vmem>>)
    %c30_i32_264 = arith.constant 30 : i32
    %c0_i32_265 = arith.constant 0 : i32
    %280 = tpu.memref_slice %arg2[%150, %c0_i32_265] : memref<512x128xf32, #tpu.memory_space<any>> -> memref<1x128xf32, #tpu.memory_space<any>>
    %c30_i32_266 = arith.constant 30 : i32
    %c0_i32_267 = arith.constant 0 : i32
    %281 = tpu.memref_slice %arg9[%c30_i32_266, %c0_i32_267] : memref<32x128xf32, #tpu.memory_space<vmem>> -> memref<1x128xf32, #tpu.memory_space<vmem>>
    %282 = tpu.memref_slice %arg10[%c30_i32_264] : memref<32x!tpu.dma_semaphore, #tpu.memory_space<semaphore_mem>> -> memref<1x!tpu.dma_semaphore, #tpu.memory_space<semaphore_mem>>
    %283 = tpu.memref_squeeze %282 : memref<1x!tpu.dma_semaphore, #tpu.memory_space<semaphore_mem>> -> memref<!tpu.dma_semaphore, #tpu.memory_space<semaphore_mem>>
    tpu.wait_dma2 semaphore(%283 : memref<!tpu.dma_semaphore, #tpu.memory_space<semaphore_mem>>) src(%280 : memref<1x128xf32, #tpu.memory_space<any>>) dst(%281 : memref<1x128xf32, #tpu.memory_space<vmem>>)
    %c31_i32_268 = arith.constant 31 : i32
    %c0_i32_269 = arith.constant 0 : i32
    %284 = tpu.memref_slice %arg2[%155, %c0_i32_269] : memref<512x128xf32, #tpu.memory_space<any>> -> memref<1x128xf32, #tpu.memory_space<any>>
    %c31_i32_270 = arith.constant 31 : i32
    %c0_i32_271 = arith.constant 0 : i32
    %285 = tpu.memref_slice %arg9[%c31_i32_270, %c0_i32_271] : memref<32x128xf32, #tpu.memory_space<vmem>> -> memref<1x128xf32, #tpu.memory_space<vmem>>
    %286 = tpu.memref_slice %arg10[%c31_i32_268] : memref<32x!tpu.dma_semaphore, #tpu.memory_space<semaphore_mem>> -> memref<1x!tpu.dma_semaphore, #tpu.memory_space<semaphore_mem>>
    %287 = tpu.memref_squeeze %286 : memref<1x!tpu.dma_semaphore, #tpu.memory_space<semaphore_mem>> -> memref<!tpu.dma_semaphore, #tpu.memory_space<semaphore_mem>>
    tpu.wait_dma2 semaphore(%287 : memref<!tpu.dma_semaphore, #tpu.memory_space<semaphore_mem>>) src(%284 : memref<1x128xf32, #tpu.memory_space<any>>) dst(%285 : memref<1x128xf32, #tpu.memory_space<vmem>>)
    %c0_272 = arith.constant 0 : index
    %c0_273 = arith.constant 0 : index
    %288 = vector.load %arg3[%c0_272, %c0_273] : memref<32x1xf32, #tpu.memory_space<vmem>>, vector<32x1xf32>
    %c0_274 = arith.constant 0 : index
    %c0_275 = arith.constant 0 : index
    %289 = vector.load %arg5[%c0_274, %c0_275] : memref<2x128xf32, #tpu.memory_space<vmem>>, vector<1x128xf32>
    %c1_276 = arith.constant 1 : index
    %c0_277 = arith.constant 0 : index
    %290 = vector.load %arg5[%c1_276, %c0_277] : memref<2x128xf32, #tpu.memory_space<vmem>>, vector<1x128xf32>
    %cst = arith.constant 1.000000e+00 : f32
    %291 = vector.broadcast %cst : f32 to vector<32x1xf32>
    %292 = arith.subf %291, %288 : vector<32x1xf32>
    %293 = vector.broadcast %289 : vector<1x128xf32> to vector<32x128xf32>
    %294 = vector.broadcast %292 : vector<32x1xf32> to vector<32x128xf32>
    %295 = arith.mulf %293, %294 : vector<32x128xf32>
    %296 = vector.broadcast %290 : vector<1x128xf32> to vector<32x128xf32>
    %297 = vector.broadcast %288 : vector<32x1xf32> to vector<32x128xf32>
    %298 = arith.mulf %296, %297 : vector<32x128xf32>
    %299 = arith.addf %295, %298 : vector<32x128xf32>
    %c0_278 = arith.constant 0 : index
    %c0_279 = arith.constant 0 : index
    %300 = vector.load %arg4[%c0_278, %c0_279] : memref<16x128xf32, #tpu.memory_space<vmem>>, vector<16x128xf32>
    %301 = tpu.concatenate %300, %300 in 0 : vector<16x128xf32>, vector<16x128xf32> -> vector<32x128xf32>
    %c0_280 = arith.constant 0 : index
    %c0_281 = arith.constant 0 : index
    %302 = vector.load %arg9[%c0_280, %c0_281] : memref<32x128xf32, #tpu.memory_space<vmem>>, vector<32x128xf32>
    %303 = arith.addf %302, %301 : vector<32x128xf32>
    %304 = arith.addf %303, %299 : vector<32x128xf32>
    %c0_282 = arith.constant 0 : index
    %c0_283 = arith.constant 0 : index
    %305 = vector.load %arg6[%c0_282, %c0_283] : memref<1x128xf32, #tpu.memory_space<vmem>>, vector<1x128xf32>
    %c0_284 = arith.constant 0 : index
    %c0_285 = arith.constant 0 : index
    %306 = vector.load %arg7[%c0_284, %c0_285] : memref<1x128xf32, #tpu.memory_space<vmem>>, vector<1x128xf32>
    %cst_286 = arith.constant dense<0.000000e+00> : vector<32xf32>
    %307 = vector.multi_reduction <add>, %304, %cst_286 [1] : vector<32x128xf32> to vector<32xf32>
    %308 = vector.shape_cast %307 : vector<32xf32> to vector<32x1xf32>
    %cst_287 = arith.constant 1.280000e+02 : f32
    %309 = vector.broadcast %cst_287 : f32 to vector<32x1xf32>
    %310 = arith.divf %308, %309 : vector<32x1xf32>
    %311 = vector.broadcast %310 : vector<32x1xf32> to vector<32x128xf32>
    %312 = arith.subf %304, %311 : vector<32x128xf32>
    %313 = arith.mulf %312, %312 : vector<32x128xf32>
    %cst_288 = arith.constant dense<0.000000e+00> : vector<32xf32>
    %314 = vector.multi_reduction <add>, %313, %cst_288 [1] : vector<32x128xf32> to vector<32xf32>
    %315 = vector.shape_cast %314 : vector<32xf32> to vector<32x1xf32>
    %cst_289 = arith.constant 1.280000e+02 : f32
    %316 = vector.broadcast %cst_289 : f32 to vector<32x1xf32>
    %317 = arith.divf %315, %316 : vector<32x1xf32>
    %318 = vector.broadcast %310 : vector<32x1xf32> to vector<32x128xf32>
    %319 = arith.subf %304, %318 : vector<32x128xf32>
    %cst_290 = arith.constant 9.99999996E-13 : f32
    %320 = vector.broadcast %cst_290 : f32 to vector<32x1xf32>
    %321 = arith.addf %317, %320 : vector<32x1xf32>
    %322 = math.rsqrt %321 : vector<32x1xf32>
    %323 = vector.broadcast %322 : vector<32x1xf32> to vector<32x128xf32>
    %324 = arith.mulf %319, %323 : vector<32x128xf32>
    %325 = vector.broadcast %305 : vector<1x128xf32> to vector<32x128xf32>
    %326 = arith.mulf %324, %325 : vector<32x128xf32>
    %327 = vector.broadcast %306 : vector<1x128xf32> to vector<32x128xf32>
    %328 = arith.addf %326, %327 : vector<32x128xf32>
    %c0_291 = arith.constant 0 : index
    %c0_292 = arith.constant 0 : index
    %329 = vector.load %arg8[%c0_291, %c0_292] : memref<32x128xf32, #tpu.memory_space<vmem>>, vector<32x128xf32>
    tpu.vector_store %arg8[%c0_291, %c0_292], %328 {strides = array<i32>} : memref<32x128xf32, #tpu.memory_space<vmem>>, vector<32x128xf32>,
    return
  }
  func.func @transform_1(%arg0: i32, %arg1: memref<2x16xi32, #tpu.memory_space<smem>>) -> (i32, i32) {
    %c0_i32 = arith.constant 0 : i32
    %c0_i32_0 = arith.constant 0 : i32
    %c0_i32_1 = arith.constant 0 : i32
    return %c0_i32, %c0_i32_0 : i32, i32
  }
  func.func @transform_2(%arg0: i32, %arg1: memref<2x16xi32, #tpu.memory_space<smem>>) -> (i32, i32) {
    %c0_i32 = arith.constant 0 : i32
    %c0_i32_0 = arith.constant 0 : i32
    %c0_i32_1 = arith.constant 0 : i32
    return %c0_i32, %c0_i32_0 : i32, i32
  }
  func.func @transform_3(%arg0: i32, %arg1: memref<2x16xi32, #tpu.memory_space<smem>>) -> (i32, i32) {
    %c0_i32 = arith.constant 0 : i32
    %c0_i32_0 = arith.constant 0 : i32
    %c0_i32_1 = arith.constant 0 : i32
    return %c0_i32, %c0_i32_0 : i32, i32
  }
  func.func @transform_4(%arg0: i32, %arg1: memref<2x16xi32, #tpu.memory_space<smem>>) -> (i32, i32) {
    %c0_i32 = arith.constant 0 : i32
    %c0_i32_0 = arith.constant 0 : i32
    %c0_i32_1 = arith.constant 0 : i32
    return %c0_i32, %c0_i32_0 : i32, i32
  }
  func.func @transform_5(%arg0: i32, %arg1: memref<2x16xi32, #tpu.memory_space<smem>>) -> (i32, i32) {
    %c0_i32 = arith.constant 0 : i32
    %c0_i32_0 = arith.constant 0 : i32
    %c0_i32_1 = arith.constant 0 : i32
    return %c0_i32, %c0_i32_0 : i32, i32
  }
  func.func @transform_6(%arg0: i32, %arg1: memref<2x16xi32, #tpu.memory_space<smem>>) -> (i32, i32) {
    %c0_i32 = arith.constant 0 : i32
    %c0_i32_0 = arith.constant 0 : i32
    %c0_i32_1 = arith.constant 0 : i32
    return %c0_i32, %c0_i32_0 : i32, i32
  }
}

</mosaic_0001>

<bundles_post_ra>
// kernel: tpu_custom_call.1
= control target key start
LH: loop header
LB: loop body
LE: loop exit
PB: predicated region body
PF: predicated region fallthrough
CT: control target
= control target key end

     0   :  { %s2086_s27 = smov [#allocation5]   ;;  %s2539_s0 = inlined_call_operand.vmem [shape: s32[2,16], index: 0, kind: input, shape index: {}]   ;;  %s2540_s1 = inlined_call_operand.hbm [shape: f32[512,128], index: 1, kind: input, shape index: {}]   ;;  %s2541_s2 = inlined_call_operand.vmem [shape: f32[32,1], index: 2, kind: input, shape index: {}]   ;;  %s2542_s3 = inlined_call_operand.vmem [shape: f32[16,128], index: 3, kind: input, shape index: {}]   ;;  %s2543_s4 = inlined_call_operand.vmem [shape: f32[2,128], index: 4, kind: input, shape index: {}]   ;;  %s2544_s5 = inlined_call_operand.vmem [shape: f32[1,128], index: 5, kind: input, shape index: {}]   ;;  %s2545_s6 = inlined_call_operand.vmem [shape: f32[1,128], index: 6, kind: input, shape index: {}]   ;;  %s2546_s7 = inlined_call_operand.hbm [shape: f32[32,128], index: 7, kind: output, shape index: {}]  }
   0x1   :  { %s13_s26 = sshll.u32 %s2539_s0, 4  ;;  %s14_s26 = int_to_ptr.vmem [resolvable:$true] %s13_s26 }
   0x2   :  { %16 = dma.vmem_to_smem %s14_s26, 32, %s2086_s27, [#allocation4] }
   0x3   :  { %2018 = dma.done.wait [#allocation4], 32 }
   0x4   :  { %2019 = vsyncadd [#allocation4], 4294967264 }
   0x5   :  { %19 = sfence }
   0x6   :  { %20 = vsyncpa [#allocation7], 0  ;;  %s31_s28 = sld [smem:[#allocation5]]  ;;  %s2087_s29 = smov [#allocation2]  }
   0x7   :  { %s42_s30 = sshll.u32 %s2087_s29, 4  ;;  %s1096_s8 = sld [smem:[#allocation5 + $0x1]]  ;;  %s43_s30 = int_to_ptr.vmem [resolvable:$true] %s42_s30 }
   0x8   :  { %s2088_s9 = smov [#allocation2 + $0x1]   ;;  %s2169_s11 = sld [smem:[#allocation5 + $0x2]] }
   0x9   :  { %s2167_s10 = sshll.u32 %s2088_s9, 4  ;;  %s2089_s0 = smov [#allocation2 + $0x2]   ;;  %s60_s10 = int_to_ptr.vmem [resolvable:$true] %s2167_s10 }
   0xa   :  { %s2172_s12 = sshll.u32 %s2089_s0, 4  ;;  %s2174_s13 = sld [smem:[#allocation5 + $0x3]]  ;;  %s77_s12 = int_to_ptr.vmem [resolvable:$true] %s2172_s12 }
   0xb   :  { %s2186_s26 = scalar_lea.hbm %s2540_s1, 512 }
   0xc   :  { %s32_s16 = scalar_lea.hbm %s2540_s1, %s31_s28 }
   0xd   :  { %s40_s17 = sshll.u32 %s32_s16, 4  ;;  %s47_s20 = scalar_lea.hbm %s2540_s1, %s1096_s8  ;;  %s41_s17 = int_to_ptr.hbm [resolvable:$true] %s40_s17 }
   0xe   :  { %s57_s21 = sshll.u32 %s47_s20, 4  ;;  %s1226_s22 = sshra.s32 %s41_s17, 4  ;;  %s1227_s22 = int_to_ptr.hbm [resolvable:$true] %s1226_s22  ;;  %s58_s21 = int_to_ptr.hbm [resolvable:$true] %s57_s21 }
   0xf   :  { %s1228_s23 = scalar_lea.hbm %s1227_s22, 1  ;;  %p1231_p1 = scmp.lt.s32.totalorder %s1227_s22, %s2540_s1 }
  0x10   :  { %p1229_p0 = scmp.ne.s32.totalorder %s1227_s22, %s1228_s23  ;;  %p1232_p2 = scmp.lt.s32.totalorder %s2186_s26, %s1228_s23 }
  0x12   :  { %p1233_p3 = por %p1232_p2, %p1231_p1 }
  0x14   :  { %p1234_p4 = pnand %p1233_p3, %p1229_p0 }
  0x16   :  { %1237 = shalt.err (!%p1234_p4)  }
  0x17   :  { %45 = dma.hbm_to_vmem [thread:$0]  %s41_s17, 16, %s43_s30, [#allocation3] }
  0x18   :  { %s64_s9 = scalar_lea.hbm %s2540_s1, %s2169_s11  ;;  %s1250_s0 = sshra.s32 %s58_s21, 4  ;;  %s1251_s0 = int_to_ptr.hbm [resolvable:$true] %s1250_s0 }
  0x19   :  { %s1252_s14 = scalar_lea.hbm %s1251_s0, 1  ;;  %p1255_p6 = scmp.lt.s32.totalorder %s1251_s0, %s2540_s1 }
  0x1a   :  { %p1253_p5 = scmp.ne.s32.totalorder %s1251_s0, %s1252_s14  ;;  %p1256_p7 = scmp.lt.s32.totalorder %s2186_s26, %s1252_s14 }
  0x1c   :  { %p1257_p8 = por %p1256_p7, %p1255_p6 }
  0x1e   :  { %p1258_p9 = pnand %p1257_p8, %p1253_p5 }
  0x20   :  { %1261 = shalt.err (!%p1258_p9)  }
  0x21   :  { %62 = dma.hbm_to_vmem [thread:$0]  %s58_s21, 16, %s60_s10, [#allocation3 + $0x1] }
  0x22   :  { %s74_s30 = sshll.u32 %s64_s9, 4  ;;  %s81_s18 = scalar_lea.hbm %s2540_s1, %s2174_s13  ;;  %s75_s30 = int_to_ptr.hbm [resolvable:$true] %s74_s30 }
  0x23   :  { %s91_s19 = sshll.u32 %s81_s18, 4  ;;  %s1274_s20 = sshra.s32 %s75_s30, 4  ;;  %s1275_s20 = int_to_ptr.hbm [resolvable:$true] %s1274_s20  ;;  %s92_s19 = int_to_ptr.hbm [resolvable:$true] %s91_s19 }
  0x24   :  { %s1276_s22 = scalar_lea.hbm %s1275_s20, 1  ;;  %p1279_p11 = scmp.lt.s32.totalorder %s1275_s20, %s2540_s1 }
  0x25   :  { %p1277_p10 = scmp.ne.s32.totalorder %s1275_s20, %s1276_s22  ;;  %p1280_p12 = scmp.lt.s32.totalorder %s2186_s26, %s1276_s22 }
  0x27   :  { %p1281_p13 = por %p1280_p12, %p1279_p11 }
  0x29   :  { %p1282_p0 = pnand %p1281_p13, %p1277_p10 }
  0x2b   :  { %1285 = shalt.err (!%p1282_p0)  }
  0x2c   :  { %79 = dma.hbm_to_vmem [thread:$0]  %s75_s30, 16, %s77_s12, [#allocation3 + $0x2] }
  0x2d   :  { %s2090_s10 = smov [#allocation2 + $0x3]   ;;  %s1099_s21 = sld [smem:[#allocation5 + $0x4]] }
  0x2e   :  { %s93_s13 = sshll.u32 %s2090_s10, 4  ;;  %s1298_s25 = sshra.s32 %s92_s19, 4  ;;  %s94_s13 = int_to_ptr.vmem [resolvable:$true] %s93_s13  ;;  %s1299_s25 = int_to_ptr.hbm [resolvable:$true] %s1298_s25 }
  0x2f   :  { %s1300_s27 = scalar_lea.hbm %s1299_s25, 1  ;;  %p1303_p2 = scmp.lt.s32.totalorder %s1299_s25, %s2540_s1 }
  0x30   :  { %p1301_p1 = scmp.ne.s32.totalorder %s1299_s25, %s1300_s27  ;;  %p1304_p3 = scmp.lt.s32.totalorder %s2186_s26, %s1300_s27 }
  0x32   :  { %p1305_p4 = por %p1304_p3, %p1303_p2 }
  0x34   :  { %p1306_p5 = pnand %p1305_p4, %p1301_p1 }
  0x36   :  { %1309 = shalt.err (!%p1306_p5)  }
  0x37   :  { %96 = dma.hbm_to_vmem [thread:$0]  %s92_s19, 16, %s94_s13, [#allocation3 + $0x3] }
  0x38   :  { %s2091_s8 = smov [#allocation2 + $0x4]   ;;  %s1100_s9 = sld [smem:[#allocation5 + $0x5]] }
  0x39   :  { %s110_s12 = sshll.u32 %s2091_s8, 4  ;;  %s2092_s0 = smov [#allocation2 + $0x5]   ;;  %s111_s12 = int_to_ptr.vmem [resolvable:$true] %s110_s12 }
  0x3a   :  { %s2216_s14 = sshll.u32 %s2092_s0, 4  ;;  %s1101_s15 = sld [smem:[#allocation5 + $0x6]]  ;;  %s128_s14 = int_to_ptr.vmem [resolvable:$true] %s2216_s14 }
  0x3b   :  { %s98_s17 = scalar_lea.hbm %s2540_s1, %s1099_s21  ;;  %s2093_s18 = smov [#allocation2 + $0x6]  }
  0x3c   :  { %s108_s11 = sshll.u32 %s98_s17, 4  ;;  %s2222_s20 = sshll.u32 %s2093_s18, 4  ;;  %s109_s11 = int_to_ptr.hbm [resolvable:$true] %s108_s11  ;;  %s145_s20 = int_to_ptr.vmem [resolvable:$true] %s2222_s20 }
  0x3d   :  { %s1322_s19 = sshra.s32 %s109_s11, 4  ;;  %s1323_s19 = int_to_ptr.hbm [resolvable:$true] %s1322_s19 }
  0x3e   :  { %s1324_s22 = scalar_lea.hbm %s1323_s19, 1  ;;  %p1327_p7 = scmp.lt.s32.totalorder %s1323_s19, %s2540_s1 }
  0x3f   :  { %p1325_p6 = scmp.ne.s32.totalorder %s1323_s19, %s1324_s22  ;;  %p1328_p8 = scmp.lt.s32.totalorder %s2186_s26, %s1324_s22 }
  0x41   :  { %p1329_p9 = por %p1328_p8, %p1327_p7 }
  0x43   :  { %p1330_p10 = pnand %p1329_p9, %p1325_p6 }
  0x45   :  { %1333 = shalt.err (!%p1330_p10)  }
  0x46   :  { %113 = dma.hbm_to_vmem [thread:$0]  %s109_s11, 16, %s111_s12, [#allocation3 + $0x4] }
  0x47   :  { %s115_s21 = scalar_lea.hbm %s2540_s1, %s1100_s9  ;;  %s132_s28 = scalar_lea.hbm %s2540_s1, %s1101_s15 }
  0x48   :  { %s125_s25 = sshll.u32 %s115_s21, 4  ;;  %s142_s8 = sshll.u32 %s132_s28, 4  ;;  %s126_s25 = int_to_ptr.hbm [resolvable:$true] %s125_s25  ;;  %s143_s8 = int_to_ptr.hbm [resolvable:$true] %s142_s8 }
  0x49   :  { %s1346_s0 = sshra.s32 %s126_s25, 4  ;;  %s1347_s0 = int_to_ptr.hbm [resolvable:$true] %s1346_s0 }
  0x4a   :  { %s1348_s16 = scalar_lea.hbm %s1347_s0, 1  ;;  %p1351_p12 = scmp.lt.s32.totalorder %s1347_s0, %s2540_s1 }
  0x4b   :  { %p1349_p11 = scmp.ne.s32.totalorder %s1347_s0, %s1348_s16  ;;  %p1352_p13 = scmp.lt.s32.totalorder %s2186_s26, %s1348_s16 }
  0x4d   :  { %p1353_p0 = por %p1352_p13, %p1351_p12 }
  0x4f   :  { %p1354_p1 = pnand %p1353_p0, %p1349_p11 }
  0x51   :  { %1357 = shalt.err (!%p1354_p1)  }
  0x52   :  { %130 = dma.hbm_to_vmem [thread:$0]  %s126_s25, 16, %s128_s14, [#allocation3 + $0x5] }
  0x53   :  { %s1102_s9 = sld [smem:[#allocation5 + $0x7]]  ;;  %s1370_s15 = sshra.s32 %s143_s8, 4  ;;  %s1371_s15 = int_to_ptr.hbm [resolvable:$true] %s1370_s15 }
  0x54   :  { %s1372_s17 = scalar_lea.hbm %s1371_s15, 1  ;;  %p1375_p3 = scmp.lt.s32.totalorder %s1371_s15, %s2540_s1 }
  0x55   :  { %p1373_p2 = scmp.ne.s32.totalorder %s1371_s15, %s1372_s17  ;;  %p1376_p4 = scmp.lt.s32.totalorder %s2186_s26, %s1372_s17 }
  0x57   :  { %p1377_p5 = por %p1376_p4, %p1375_p3 }
  0x59   :  { %p1378_p6 = pnand %p1377_p5, %p1373_p2 }
  0x5b   :  { %1381 = shalt.err (!%p1378_p6)  }
  0x5c   :  { %147 = dma.hbm_to_vmem [thread:$0]  %s143_s8, 16, %s145_s20, [#allocation3 + $0x6] }
  0x5d   :  { %s1103_s19 = sld [smem:[#allocation5 + $0x8]]  ;;  %s2094_s22 = smov [#allocation2 + $0x7]  }
  0x5e   :  { %s161_s23 = sshll.u32 %s2094_s22, 4  ;;  %s2095_s14 = smov [#allocation2 + $0x8]   ;;  %s162_s23 = int_to_ptr.vmem [resolvable:$true] %s161_s23 }
  0x5f   :  { %s2245_s24 = sshll.u32 %s2095_s14, 4  ;;  %s2248_s10 = sld [smem:[#allocation5 + $0x9]]  ;;  %s179_s24 = int_to_ptr.vmem [resolvable:$true] %s2245_s24 }
  0x60   :  { %s149_s25 = scalar_lea.hbm %s2540_s1, %s1102_s9  ;;  %s2096_s29 = smov [#allocation2 + $0x9]  }
  0x61   :  { %s159_s27 = sshll.u32 %s149_s25, 4  ;;  %s2253_s28 = sshll.u32 %s2096_s29, 4  ;;  %s160_s27 = int_to_ptr.hbm [resolvable:$true] %s159_s27  ;;  %s196_s28 = int_to_ptr.vmem [resolvable:$true] %s2253_s28 }
  0x62   :  { %s1394_s16 = sshra.s32 %s160_s27, 4  ;;  %s1395_s16 = int_to_ptr.hbm [resolvable:$true] %s1394_s16 }
  0x63   :  { %s166_s0 = scalar_lea.hbm %s2540_s1, %s1103_s19  ;;  %s1396_s30 = scalar_lea.hbm %s1395_s16, 1 }
  0x64   :  { %p1397_p7 = scmp.ne.s32.totalorder %s1395_s16, %s1396_s30  ;;  %p1399_p8 = scmp.lt.s32.totalorder %s1395_s16, %s2540_s1 }
  0x65   :  { %p1400_p9 = scmp.lt.s32.totalorder %s2186_s26, %s1396_s30 }
  0x67   :  { %p1401_p10 = por %p1400_p9, %p1399_p8 }
  0x69   :  { %p1402_p11 = pnand %p1401_p10, %p1397_p7 }
  0x6b   :  { %1405 = shalt.err (!%p1402_p11)  }
  0x6c   :  { %164 = dma.hbm_to_vmem [thread:$0]  %s160_s27, 16, %s162_s23, [#allocation3 + $0x7] }
  0x6d   :  { %s176_s9 = sshll.u32 %s166_s0, 4  ;;  %s183_s18 = scalar_lea.hbm %s2540_s1, %s2248_s10  ;;  %s177_s9 = int_to_ptr.hbm [resolvable:$true] %s176_s9 }
  0x6e   :  { %s1418_s19 = sshra.s32 %s177_s9, 4  ;;  %s1419_s19 = int_to_ptr.hbm [resolvable:$true] %s1418_s19 }
  0x6f   :  { %s1420_s22 = scalar_lea.hbm %s1419_s19, 1  ;;  %p1423_p13 = scmp.lt.s32.totalorder %s1419_s19, %s2540_s1 }
  0x70   :  { %p1421_p12 = scmp.ne.s32.totalorder %s1419_s19, %s1420_s22  ;;  %p1424_p0 = scmp.lt.s32.totalorder %s2186_s26, %s1420_s22 }
  0x72   :  { %p1425_p1 = por %p1424_p0, %p1423_p13 }
  0x74   :  { %p1426_p2 = pnand %p1425_p1, %p1421_p12 }
  0x76   :  { %1429 = shalt.err (!%p1426_p2)  }
  0x77   :  { %181 = dma.hbm_to_vmem [thread:$0]  %s177_s9, 16, %s179_s24, [#allocation3 + $0x8] }
  0x78   :  { %s193_s23 = sshll.u32 %s183_s18, 4  ;;  %s1105_s21 = sld [smem:[#allocation5 + $0xa]]  ;;  %s194_s23 = int_to_ptr.hbm [resolvable:$true] %s193_s23 }
  0x79   :  { %s1442_s10 = sshra.s32 %s194_s23, 4  ;;  %s1443_s10 = int_to_ptr.hbm [resolvable:$true] %s1442_s10 }
  0x7a   :  { %s1444_s25 = scalar_lea.hbm %s1443_s10, 1  ;;  %p1447_p4 = scmp.lt.s32.totalorder %s1443_s10, %s2540_s1 }
  0x7b   :  { %p1445_p3 = scmp.ne.s32.totalorder %s1443_s10, %s1444_s25  ;;  %p1448_p5 = scmp.lt.s32.totalorder %s2186_s26, %s1444_s25 }
  0x7d   :  { %p1449_p6 = por %p1448_p5, %p1447_p4 }
  0x7f   :  { %p1450_p7 = pnand %p1449_p6, %p1445_p3 }
  0x81   :  { %1453 = shalt.err (!%p1450_p7)  }
  0x82   :  { %198 = dma.hbm_to_vmem [thread:$0]  %s194_s23, 16, %s196_s28, [#allocation3 + $0x9] }
  0x83   :  { %s2097_s20 = smov [#allocation2 + $0xa]   ;;  %s1106_s0 = sld [smem:[#allocation5 + $0xb]] }
  0x84   :  { %s212_s8 = sshll.u32 %s2097_s20, 4  ;;  %s2098_s24 = smov [#allocation2 + $0xb]   ;;  %s213_s8 = int_to_ptr.vmem [resolvable:$true] %s212_s8 }
  0x85   :  { %s2277_s16 = sshll.u32 %s2098_s24, 4  ;;  %s1107_s30 = sld [smem:[#allocation5 + $0xc]]  ;;  %s230_s16 = int_to_ptr.vmem [resolvable:$true] %s2277_s16 }
  0x86   :  { %s200_s9 = scalar_lea.hbm %s2540_s1, %s1105_s21  ;;  %s2099_s11 = smov [#allocation2 + $0xc]  }
  0x87   :  { %s210_s17 = sshll.u32 %s200_s9, 4  ;;  %s2283_s18 = sshll.u32 %s2099_s11, 4  ;;  %s211_s17 = int_to_ptr.hbm [resolvable:$true] %s210_s17  ;;  %s247_s18 = int_to_ptr.vmem [resolvable:$true] %s2283_s18 }
  0x88   :  { %s1466_s28 = sshra.s32 %s211_s17, 4  ;;  %s1467_s28 = int_to_ptr.hbm [resolvable:$true] %s1466_s28 }
  0x89   :  { %s1468_s19 = scalar_lea.hbm %s1467_s28, 1  ;;  %p1471_p9 = scmp.lt.s32.totalorder %s1467_s28, %s2540_s1 }
  0x8a   :  { %p1469_p8 = scmp.ne.s32.totalorder %s1467_s28, %s1468_s19  ;;  %p1472_p10 = scmp.lt.s32.totalorder %s2186_s26, %s1468_s19 }
  0x8c   :  { %p1473_p11 = por %p1472_p10, %p1471_p9 }
  0x8e   :  { %p1474_p12 = pnand %p1473_p11, %p1469_p8 }
  0x90   :  { %1477 = shalt.err (!%p1474_p12)  }
  0x91   :  { %215 = dma.hbm_to_vmem [thread:$0]  %s211_s17, 16, %s213_s8, [#allocation3 + $0xa] }
  0x92   :  { %s217_s21 = scalar_lea.hbm %s2540_s1, %s1106_s0  ;;  %s234_s29 = scalar_lea.hbm %s2540_s1, %s1107_s30 }
  0x93   :  { %s227_s10 = sshll.u32 %s217_s21, 4  ;;  %s244_s20 = sshll.u32 %s234_s29, 4  ;;  %s228_s10 = int_to_ptr.hbm [resolvable:$true] %s227_s10  ;;  %s245_s20 = int_to_ptr.hbm [resolvable:$true] %s244_s20 }
  0x94   :  { %s1490_s24 = sshra.s32 %s228_s10, 4  ;;  %s1491_s24 = int_to_ptr.hbm [resolvable:$true] %s1490_s24 }
  0x95   :  { %s1492_s12 = scalar_lea.hbm %s1491_s24, 1  ;;  %p1495_p0 = scmp.lt.s32.totalorder %s1491_s24, %s2540_s1 }
  0x96   :  { %p1493_p13 = scmp.ne.s32.totalorder %s1491_s24, %s1492_s12  ;;  %p1496_p1 = scmp.lt.s32.totalorder %s2186_s26, %s1492_s12 }
  0x98   :  { %p1497_p2 = por %p1496_p1, %p1495_p0 }
  0x9a   :  { %p1498_p3 = pnand %p1497_p2, %p1493_p13 }
  0x9c   :  { %1501 = shalt.err (!%p1498_p3)  }
  0x9d   :  { %232 = dma.hbm_to_vmem [thread:$0]  %s228_s10, 16, %s230_s16, [#allocation3 + $0xb] }
  0x9e   :  { %s1108_s0 = sld [smem:[#allocation5 + $0xd]]  ;;  %s1514_s30 = sshra.s32 %s245_s20, 4  ;;  %s1515_s30 = int_to_ptr.hbm [resolvable:$true] %s1514_s30 }
  0x9f   :  { %s1516_s9 = scalar_lea.hbm %s1515_s30, 1  ;;  %p1519_p5 = scmp.lt.s32.totalorder %s1515_s30, %s2540_s1 }
  0xa0   :  { %p1517_p4 = scmp.ne.s32.totalorder %s1515_s30, %s1516_s9  ;;  %p1520_p6 = scmp.lt.s32.totalorder %s2186_s26, %s1516_s9 }
  0xa2   :  { %p1521_p7 = por %p1520_p6, %p1519_p5 }
  0xa4   :  { %p1522_p8 = pnand %p1521_p7, %p1517_p4 }
  0xa6   :  { %1525 = shalt.err (!%p1522_p8)  }
  0xa7   :  { %249 = dma.hbm_to_vmem [thread:$0]  %s245_s20, 16, %s247_s18, [#allocation3 + $0xc] }
  0xa8   :  { %s1109_s28 = sld [smem:[#allocation5 + $0xe]]  ;;  %s2100_s19 = smov [#allocation2 + $0xd]  }
  0xa9   :  { %s263_s22 = sshll.u32 %s2100_s19, 4  ;;  %s2101_s16 = smov [#allocation2 + $0xe]   ;;  %s264_s22 = int_to_ptr.vmem [resolvable:$true] %s263_s22 }
  0xaa   :  { %s2306_s14 = sshll.u32 %s2101_s16, 4  ;;  %s2309_s13 = sld [smem:[#allocation5 + $0xf]]  ;;  %s281_s14 = int_to_ptr.vmem [resolvable:$true] %s2306_s14 }
  0xab   :  { %s251_s10 = scalar_lea.hbm %s2540_s1, %s1108_s0  ;;  %s2102_s27 = smov [#allocation2 + $0xf]  }
  0xac   :  { %s261_s25 = sshll.u32 %s251_s10, 4  ;;  %s2314_s29 = sshll.u32 %s2102_s27, 4  ;;  %s262_s25 = int_to_ptr.hbm [resolvable:$true] %s261_s25  ;;  %s298_s29 = int_to_ptr.vmem [resolvable:$true] %s2314_s29 }
  0xad   :  { %s1538_s12 = sshra.s32 %s262_s25, 4  ;;  %s1539_s12 = int_to_ptr.hbm [resolvable:$true] %s1538_s12 }
  0xae   :  { %s268_s24 = scalar_lea.hbm %s2540_s1, %s1109_s28  ;;  %s1540_s15 = scalar_lea.hbm %s1539_s12, 1 }
  0xaf   :  { %p1541_p9 = scmp.ne.s32.totalorder %s1539_s12, %s1540_s15  ;;  %p1543_p10 = scmp.lt.s32.totalorder %s1539_s12, %s2540_s1 }
  0xb0   :  { %p1544_p11 = scmp.lt.s32.totalorder %s2186_s26, %s1540_s15 }
  0xb2   :  { %p1545_p12 = por %p1544_p11, %p1543_p10 }
  0xb4   :  { %p1546_p13 = pnand %p1545_p12, %p1541_p9 }
  0xb6   :  { %1549 = shalt.err (!%p1546_p13)  }
  0xb7   :  { %266 = dma.hbm_to_vmem [thread:$0]  %s262_s25, 16, %s264_s22, [#allocation3 + $0xd] }
  0xb8   :  { %s278_s0 = sshll.u32 %s268_s24, 4  ;;  %s285_s11 = scalar_lea.hbm %s2540_s1, %s2309_s13  ;;  %s279_s0 = int_to_ptr.hbm [resolvable:$true] %s278_s0 }
  0xb9   :  { %s1562_s28 = sshra.s32 %s279_s0, 4  ;;  %s1563_s28 = int_to_ptr.hbm [resolvable:$true] %s1562_s28 }
  0xba   :  { %s1564_s19 = scalar_lea.hbm %s1563_s28, 1  ;;  %p1567_p1 = scmp.lt.s32.totalorder %s1563_s28, %s2540_s1 }
  0xbb   :  { %p1565_p0 = scmp.ne.s32.totalorder %s1563_s28, %s1564_s19  ;;  %p1568_p2 = scmp.lt.s32.totalorder %s2186_s26, %s1564_s19 }
  0xbd   :  { %p1569_p3 = por %p1568_p2, %p1567_p1 }
  0xbf   :  { %p1570_p4 = pnand %p1569_p3, %p1565_p0 }
  0xc1   :  { %1573 = shalt.err (!%p1570_p4)  }
  0xc2   :  { %283 = dma.hbm_to_vmem [thread:$0]  %s279_s0, 16, %s281_s14, [#allocation3 + $0xe] }
  0xc3   :  { %s295_s22 = sshll.u32 %s285_s11, 4  ;;  %s1111_s21 = sld [smem:[#allocation5 + $0x80]]  ;;  %s296_s22 = int_to_ptr.hbm [resolvable:$true] %s295_s22 }
  0xc4   :  { %s1586_s13 = sshra.s32 %s296_s22, 4  ;;  %s1587_s13 = int_to_ptr.hbm [resolvable:$true] %s1586_s13 }
  0xc5   :  { %s1588_s10 = scalar_lea.hbm %s1587_s13, 1  ;;  %p1591_p6 = scmp.lt.s32.totalorder %s1587_s13, %s2540_s1 }
  0xc6   :  { %p1589_p5 = scmp.ne.s32.totalorder %s1587_s13, %s1588_s10  ;;  %p1592_p7 = scmp.lt.s32.totalorder %s2186_s26, %s1588_s10 }
  0xc8   :  { %p1593_p8 = por %p1592_p7, %p1591_p6 }
  0xca   :  { %p1594_p9 = pnand %p1593_p8, %p1589_p5 }
  0xcc   :  { %1597 = shalt.err (!%p1594_p9)  }
  0xcd   :  { %300 = dma.hbm_to_vmem [thread:$0]  %s296_s22, 16, %s298_s29, [#allocation3 + $0xf] }
  0xce   :  { %s2103_s18 = smov [#allocation2 + $0x10]   ;;  %s1112_s24 = sld [smem:[#allocation5 + $0x81]] }
  0xcf   :  { %s314_s20 = sshll.u32 %s2103_s18, 4  ;;  %s2104_s14 = smov [#allocation2 + $0x11]   ;;  %s315_s20 = int_to_ptr.vmem [resolvable:$true] %s314_s20 }
  0xd0   :  { %s2338_s12 = sshll.u32 %s2104_s14, 4  ;;  %s1113_s15 = sld [smem:[#allocation5 + $0x82]]  ;;  %s332_s12 = int_to_ptr.vmem [resolvable:$true] %s2338_s12 }
  0xd1   :  { %s302_s0 = scalar_lea.hbm %s2540_s1, %s1111_s21  ;;  %s2105_s17 = smov [#allocation2 + $0x12]  }
  0xd2   :  { %s312_s9 = sshll.u32 %s302_s0, 4  ;;  %s2344_s11 = sshll.u32 %s2105_s17, 4  ;;  %s313_s9 = int_to_ptr.hbm [resolvable:$true] %s312_s9  ;;  %s349_s11 = int_to_ptr.vmem [resolvable:$true] %s2344_s11 }
  0xd3   :  { %s1610_s29 = sshra.s32 %s313_s9, 4  ;;  %s1611_s29 = int_to_ptr.hbm [resolvable:$true] %s1610_s29 }
  0xd4   :  { %s1612_s28 = scalar_lea.hbm %s1611_s29, 1  ;;  %p1615_p11 = scmp.lt.s32.totalorder %s1611_s29, %s2540_s1 }
  0xd5   :  { %p1613_p10 = scmp.ne.s32.totalorder %s1611_s29, %s1612_s28  ;;  %p1616_p12 = scmp.lt.s32.totalorder %s2186_s26, %s1612_s28 }
  0xd7   :  { %p1617_p13 = por %p1616_p12, %p1615_p11 }
  0xd9   :  { %p1618_p0 = pnand %p1617_p13, %p1613_p10 }
  0xdb   :  { %1621 = shalt.err (!%p1618_p0)  }
  0xdc   :  { %317 = dma.hbm_to_vmem [thread:$0]  %s313_s9, 16, %s315_s20, [#allocation3 + $0x10] }
  0xdd   :  { %s319_s21 = scalar_lea.hbm %s2540_s1, %s1112_s24  ;;  %s336_s27 = scalar_lea.hbm %s2540_s1, %s1113_s15 }
  0xde   :  { %s329_s13 = sshll.u32 %s319_s21, 4  ;;  %s346_s18 = sshll.u32 %s336_s27, 4  ;;  %s330_s13 = int_to_ptr.hbm [resolvable:$true] %s329_s13  ;;  %s347_s18 = int_to_ptr.hbm [resolvable:$true] %s346_s18 }
  0xdf   :  { %s1634_s14 = sshra.s32 %s330_s13, 4  ;;  %s1635_s14 = int_to_ptr.hbm [resolvable:$true] %s1634_s14 }
  0xe0   :  { %s1636_s8 = scalar_lea.hbm %s1635_s14, 1  ;;  %p1639_p2 = scmp.lt.s32.totalorder %s1635_s14, %s2540_s1 }
  0xe1   :  { %p1637_p1 = scmp.ne.s32.totalorder %s1635_s14, %s1636_s8  ;;  %p1640_p3 = scmp.lt.s32.totalorder %s2186_s26, %s1636_s8 }
  0xe3   :  { %p1641_p4 = por %p1640_p3, %p1639_p2 }
  0xe5   :  { %p1642_p5 = pnand %p1641_p4, %p1637_p1 }
  0xe7   :  { %1645 = shalt.err (!%p1642_p5)  }
  0xe8   :  { %334 = dma.hbm_to_vmem [thread:$0]  %s330_s13, 16, %s332_s12, [#allocation3 + $0x11] }
  0xe9   :  { %s1114_s24 = sld [smem:[#allocation5 + $0x83]]  ;;  %s1658_s15 = sshra.s32 %s347_s18, 4  ;;  %s1659_s15 = int_to_ptr.hbm [resolvable:$true] %s1658_s15 }
  0xea   :  { %s1660_s0 = scalar_lea.hbm %s1659_s15, 1  ;;  %p1663_p7 = scmp.lt.s32.totalorder %s1659_s15, %s2540_s1 }
  0xeb   :  { %p1661_p6 = scmp.ne.s32.totalorder %s1659_s15, %s1660_s0  ;;  %p1664_p8 = scmp.lt.s32.totalorder %s2186_s26, %s1660_s0 }
  0xed   :  { %p1665_p9 = por %p1664_p8, %p1663_p7 }
  0xef   :  { %p1666_p10 = pnand %p1665_p9, %p1661_p6 }
  0xf1   :  { %1669 = shalt.err (!%p1666_p10)  }
  0xf2   :  { %351 = dma.hbm_to_vmem [thread:$0]  %s347_s18, 16, %s349_s11, [#allocation3 + $0x12] }
  0xf3   :  { %s1115_s29 = sld [smem:[#allocation5 + $0x84]]  ;;  %s2106_s28 = smov [#allocation2 + $0x13]  }
  0xf4   :  { %s365_s19 = sshll.u32 %s2106_s28, 4  ;;  %s2107_s12 = smov [#allocation2 + $0x14]   ;;  %s366_s19 = int_to_ptr.vmem [resolvable:$true] %s365_s19 }
  0xf5   :  { %s2367_s16 = sshll.u32 %s2107_s12, 4  ;;  %s2370_s23 = sld [smem:[#allocation5 + $0x85]]  ;;  %s383_s16 = int_to_ptr.vmem [resolvable:$true] %s2367_s16 }
  0xf6   :  { %s353_s13 = scalar_lea.hbm %s2540_s1, %s1114_s24  ;;  %s2108_s25 = smov [#allocation2 + $0x15]  }
  0xf7   :  { %s363_s10 = sshll.u32 %s353_s13, 4  ;;  %s2375_s27 = sshll.u32 %s2108_s25, 4  ;;  %s364_s10 = int_to_ptr.hbm [resolvable:$true] %s363_s10  ;;  %s400_s27 = int_to_ptr.vmem [resolvable:$true] %s2375_s27 }
  0xf8   :  { %s1682_s8 = sshra.s32 %s364_s10, 4  ;;  %s1683_s8 = int_to_ptr.hbm [resolvable:$true] %s1682_s8 }
  0xf9   :  { %s370_s14 = scalar_lea.hbm %s2540_s1, %s1115_s29  ;;  %s1684_s30 = scalar_lea.hbm %s1683_s8, 1 }
  0xfa   :  { %p1685_p11 = scmp.ne.s32.totalorder %s1683_s8, %s1684_s30  ;;  %p1687_p12 = scmp.lt.s32.totalorder %s1683_s8, %s2540_s1 }
  0xfb   :  { %p1688_p13 = scmp.lt.s32.totalorder %s2186_s26, %s1684_s30 }
  0xfd   :  { %p1689_p0 = por %p1688_p13, %p1687_p12 }
  0xff   :  { %p1690_p1 = pnand %p1689_p0, %p1685_p11 }
 0x101   :  { %1693 = shalt.err (!%p1690_p1)  }
 0x102   :  { %368 = dma.hbm_to_vmem [thread:$0]  %s364_s10, 16, %s366_s19, [#allocation3 + $0x13] }
 0x103   :  { %s380_s24 = sshll.u32 %s370_s14, 4  ;;  %s387_s17 = scalar_lea.hbm %s2540_s1, %s2370_s23  ;;  %s381_s24 = int_to_ptr.hbm [resolvable:$true] %s380_s24 }
 0x104   :  { %s1706_s29 = sshra.s32 %s381_s24, 4  ;;  %s1707_s29 = int_to_ptr.hbm [resolvable:$true] %s1706_s29 }
 0x105   :  { %s1708_s28 = scalar_lea.hbm %s1707_s29, 1  ;;  %p1711_p3 = scmp.lt.s32.totalorder %s1707_s29, %s2540_s1 }
 0x106   :  { %p1709_p2 = scmp.ne.s32.totalorder %s1707_s29, %s1708_s28  ;;  %p1712_p4 = scmp.lt.s32.totalorder %s2186_s26, %s1708_s28 }
 0x108   :  { %p1713_p5 = por %p1712_p4, %p1711_p3 }
 0x10a   :  { %p1714_p6 = pnand %p1713_p5, %p1709_p2 }
 0x10c   :  { %1717 = shalt.err (!%p1714_p6)  }
 0x10d   :  { %385 = dma.hbm_to_vmem [thread:$0]  %s381_s24, 16, %s383_s16, [#allocation3 + $0x14] }
 0x10e   :  { %s397_s19 = sshll.u32 %s387_s17, 4  ;;  %s1117_s21 = sld [smem:[#allocation5 + $0x86]]  ;;  %s398_s19 = int_to_ptr.hbm [resolvable:$true] %s397_s19 }
 0x10f   :  { %s1730_s23 = sshra.s32 %s398_s19, 4  ;;  %s1731_s23 = int_to_ptr.hbm [resolvable:$true] %s1730_s23 }
 0x110   :  { %s1732_s13 = scalar_lea.hbm %s1731_s23, 1  ;;  %p1735_p8 = scmp.lt.s32.totalorder %s1731_s23, %s2540_s1 }
 0x111   :  { %p1733_p7 = scmp.ne.s32.totalorder %s1731_s23, %s1732_s13  ;;  %p1736_p9 = scmp.lt.s32.totalorder %s2186_s26, %s1732_s13 }
 0x113   :  { %p1737_p10 = por %p1736_p9, %p1735_p8 }
 0x115   :  { %p1738_p11 = pnand %p1737_p10, %p1733_p7 }
 0x117   :  { %1741 = shalt.err (!%p1738_p11)  }
 0x118   :  { %402 = dma.hbm_to_vmem [thread:$0]  %s398_s19, 16, %s400_s27, [#allocation3 + $0x15] }
 0x119   :  { %s2109_s11 = smov [#allocation2 + $0x16]   ;;  %s1118_s14 = sld [smem:[#allocation5 + $0x87]] }
 0x11a   :  { %s416_s18 = sshll.u32 %s2109_s11, 4  ;;  %s2110_s16 = smov [#allocation2 + $0x17]   ;;  %s417_s18 = int_to_ptr.vmem [resolvable:$true] %s416_s18 }
 0x11b   :  { %s2399_s8 = sshll.u32 %s2110_s16, 4  ;;  %s1119_s30 = sld [smem:[#allocation5 + $0x88]]  ;;  %s434_s8 = int_to_ptr.vmem [resolvable:$true] %s2399_s8 }
 0x11c   :  { %s404_s24 = scalar_lea.hbm %s2540_s1, %s1117_s21  ;;  %s2111_s9 = smov [#allocation2 + $0x18]  }
 0x11d   :  { %s414_s0 = sshll.u32 %s404_s24, 4  ;;  %s2405_s17 = sshll.u32 %s2111_s9, 4  ;;  %s415_s0 = int_to_ptr.hbm [resolvable:$true] %s414_s0  ;;  %s451_s17 = int_to_ptr.vmem [resolvable:$true] %s2405_s17 }
 0x11e   :  { %s1754_s27 = sshra.s32 %s415_s0, 4  ;;  %s1755_s27 = int_to_ptr.hbm [resolvable:$true] %s1754_s27 }
 0x11f   :  { %s1756_s29 = scalar_lea.hbm %s1755_s27, 1  ;;  %p1759_p13 = scmp.lt.s32.totalorder %s1755_s27, %s2540_s1 }
 0x120   :  { %p1757_p12 = scmp.ne.s32.totalorder %s1755_s27, %s1756_s29  ;;  %p1760_p0 = scmp.lt.s32.totalorder %s2186_s26, %s1756_s29 }
 0x122   :  { %p1761_p1 = por %p1760_p0, %p1759_p13 }
 0x124   :  { %p1762_p2 = pnand %p1761_p1, %p1757_p12 }
 0x126   :  { %1765 = shalt.err (!%p1762_p2)  }
 0x127   :  { %419 = dma.hbm_to_vmem [thread:$0]  %s415_s0, 16, %s417_s18, [#allocation3 + $0x16] }
 0x128   :  { %s421_s21 = scalar_lea.hbm %s2540_s1, %s1118_s14  ;;  %s438_s25 = scalar_lea.hbm %s2540_s1, %s1119_s30 }
 0x129   :  { %s431_s23 = sshll.u32 %s421_s21, 4  ;;  %s448_s11 = sshll.u32 %s438_s25, 4  ;;  %s432_s23 = int_to_ptr.hbm [resolvable:$true] %s431_s23  ;;  %s449_s11 = int_to_ptr.hbm [resolvable:$true] %s448_s11 }
 0x12a   :  { %s1778_s16 = sshra.s32 %s432_s23, 4  ;;  %s1779_s16 = int_to_ptr.hbm [resolvable:$true] %s1778_s16 }
 0x12b   :  { %s1780_s20 = scalar_lea.hbm %s1779_s16, 1  ;;  %p1783_p4 = scmp.lt.s32.totalorder %s1779_s16, %s2540_s1 }
 0x12c   :  { %p1781_p3 = scmp.ne.s32.totalorder %s1779_s16, %s1780_s20  ;;  %p1784_p5 = scmp.lt.s32.totalorder %s2186_s26, %s1780_s20 }
 0x12e   :  { %p1785_p6 = por %p1784_p5, %p1783_p4 }
 0x130   :  { %p1786_p7 = pnand %p1785_p6, %p1781_p3 }
 0x132   :  { %1789 = shalt.err (!%p1786_p7)  }
 0x133   :  { %436 = dma.hbm_to_vmem [thread:$0]  %s432_s23, 16, %s434_s8, [#allocation3 + $0x17] }
 0x134   :  { %s1120_s14 = sld [smem:[#allocation5 + $0x89]]  ;;  %s1802_s30 = sshra.s32 %s449_s11, 4  ;;  %s1803_s30 = int_to_ptr.hbm [resolvable:$true] %s1802_s30 }
 0x135   :  { %s1804_s24 = scalar_lea.hbm %s1803_s30, 1  ;;  %p1807_p9 = scmp.lt.s32.totalorder %s1803_s30, %s2540_s1 }
 0x136   :  { %p1805_p8 = scmp.ne.s32.totalorder %s1803_s30, %s1804_s24  ;;  %p1808_p10 = scmp.lt.s32.totalorder %s2186_s26, %s1804_s24 }
 0x138   :  { %p1809_p11 = por %p1808_p10, %p1807_p9 }
 0x13a   :  { %p1810_p12 = pnand %p1809_p11, %p1805_p8 }
 0x13c   :  { %1813 = shalt.err (!%p1810_p12)  }
 0x13d   :  { %453 = dma.hbm_to_vmem [thread:$0]  %s449_s11, 16, %s451_s17, [#allocation3 + $0x18] }
 0x13e   :  { %s1121_s27 = sld [smem:[#allocation5 + $0x8a]]  ;;  %s2112_s29 = smov [#allocation2 + $0x19]  }
 0x13f   :  { %s467_s28 = sshll.u32 %s2112_s29, 4  ;;  %s2113_s8 = smov [#allocation2 + $0x1a]   ;;  %s468_s28 = int_to_ptr.vmem [resolvable:$true] %s467_s28 }
 0x140   :  { %s2428_s12 = sshll.u32 %s2113_s8, 4  ;;  %s2431_s22 = sld [smem:[#allocation5 + $0x8b]]  ;;  %s485_s12 = int_to_ptr.vmem [resolvable:$true] %s2428_s12 }
 0x141   :  { %s455_s23 = scalar_lea.hbm %s2540_s1, %s1120_s14  ;;  %s2114_s10 = smov [#allocation2 + $0x1b]  }
 0x142   :  { %s465_s13 = sshll.u32 %s455_s23, 4  ;;  %s2436_s25 = sshll.u32 %s2114_s10, 4  ;;  %s466_s13 = int_to_ptr.hbm [resolvable:$true] %s465_s13  ;;  %s502_s25 = int_to_ptr.vmem [resolvable:$true] %s2436_s25 }
 0x143   :  { %s1826_s20 = sshra.s32 %s466_s13, 4  ;;  %s1827_s20 = int_to_ptr.hbm [resolvable:$true] %s1826_s20 }
 0x144   :  { %s472_s16 = scalar_lea.hbm %s2540_s1, %s1121_s27  ;;  %s1828_s15 = scalar_lea.hbm %s1827_s20, 1 }
 0x145   :  { %p1829_p13 = scmp.ne.s32.totalorder %s1827_s20, %s1828_s15  ;;  %p1831_p0 = scmp.lt.s32.totalorder %s1827_s20, %s2540_s1 }
 0x146   :  { %p1832_p1 = scmp.lt.s32.totalorder %s2186_s26, %s1828_s15 }
 0x148   :  { %p1833_p2 = por %p1832_p1, %p1831_p0 }
 0x14a   :  { %p1834_p3 = pnand %p1833_p2, %p1829_p13 }
 0x14c   :  { %1837 = shalt.err (!%p1834_p3)  }
 0x14d   :  { %470 = dma.hbm_to_vmem [thread:$0]  %s466_s13, 16, %s468_s28, [#allocation3 + $0x19] }
 0x14e   :  { %s482_s14 = sshll.u32 %s472_s16, 4  ;;  %s489_s9 = scalar_lea.hbm %s2540_s1, %s2431_s22  ;;  %s483_s14 = int_to_ptr.hbm [resolvable:$true] %s482_s14 }
 0x14f   :  { %s1850_s27 = sshra.s32 %s483_s14, 4  ;;  %s1851_s27 = int_to_ptr.hbm [resolvable:$true] %s1850_s27 }
 0x150   :  { %s1852_s29 = scalar_lea.hbm %s1851_s27, 1  ;;  %p1855_p5 = scmp.lt.s32.totalorder %s1851_s27, %s2540_s1 }
 0x151   :  { %p1853_p4 = scmp.ne.s32.totalorder %s1851_s27, %s1852_s29  ;;  %p1856_p6 = scmp.lt.s32.totalorder %s2186_s26, %s1852_s29 }
 0x153   :  { %p1857_p7 = por %p1856_p6, %p1855_p5 }
 0x155   :  { %p1858_p8 = pnand %p1857_p7, %p1853_p4 }
 0x157   :  { %1861 = shalt.err (!%p1858_p8)  }
 0x158   :  { %487 = dma.hbm_to_vmem [thread:$0]  %s483_s14, 16, %s485_s12, [#allocation3 + $0x1a] }
 0x159   :  { %s499_s28 = sshll.u32 %s489_s9, 4  ;;  %s1123_s21 = sld [smem:[#allocation5 + $0x8c]]  ;;  %s500_s28 = int_to_ptr.hbm [resolvable:$true] %s499_s28 }
 0x15a   :  { %s1874_s22 = sshra.s32 %s500_s28, 4  ;;  %s1875_s22 = int_to_ptr.hbm [resolvable:$true] %s1874_s22 }
 0x15b   :  { %s1876_s23 = scalar_lea.hbm %s1875_s22, 1  ;;  %p1879_p10 = scmp.lt.s32.totalorder %s1875_s22, %s2540_s1 }
 0x15c   :  { %p1877_p9 = scmp.ne.s32.totalorder %s1875_s22, %s1876_s23  ;;  %p1880_p11 = scmp.lt.s32.totalorder %s2186_s26, %s1876_s23 }
 0x15e   :  { %p1881_p12 = por %p1880_p11, %p1879_p10 }
 0x160   :  { %p1882_p13 = pnand %p1881_p12, %p1877_p9 }
 0x162   :  { %1885 = shalt.err (!%p1882_p13)  }
 0x163   :  { %504 = dma.hbm_to_vmem [thread:$0]  %s500_s28, 16, %s502_s25, [#allocation3 + $0x1b] }
 0x164   :  { %s2115_s17 = smov [#allocation2 + $0x1c]   ;;  %s1124_s16 = sld [smem:[#allocation5 + $0x8d]] }
 0x165   :  { %s518_s11 = sshll.u32 %s2115_s17, 4  ;;  %s2116_s12 = smov [#allocation2 + $0x1d]   ;;  %s519_s11 = int_to_ptr.vmem [resolvable:$true] %s518_s11 }
 0x166   :  { %s2460_s20 = sshll.u32 %s2116_s12, 4  ;;  %s1125_s15 = sld [smem:[#allocation5 + $0x8e]]  ;;  %s536_s20 = int_to_ptr.vmem [resolvable:$true] %s2460_s20 }
 0x167   :  { %s506_s14 = scalar_lea.hbm %s2540_s1, %s1123_s21  ;;  %s2117_s0 = smov [#allocation2 + $0x1e]  }
 0x168   :  { %s516_s24 = sshll.u32 %s506_s14, 4  ;;  %s2466_s9 = sshll.u32 %s2117_s0, 4  ;;  %s517_s24 = int_to_ptr.hbm [resolvable:$true] %s516_s24  ;;  %s553_s9 = int_to_ptr.vmem [resolvable:$true] %s2466_s9 }
 0x169   :  { %s1898_s25 = sshra.s32 %s517_s24, 4  ;;  %s1899_s25 = int_to_ptr.hbm [resolvable:$true] %s1898_s25 }
 0x16a   :  { %s1900_s27 = scalar_lea.hbm %s1899_s25, 1  ;;  %p1903_p1 = scmp.lt.s32.totalorder %s1899_s25, %s2540_s1 }
 0x16b   :  { %p1901_p0 = scmp.ne.s32.totalorder %s1899_s25, %s1900_s27  ;;  %p1904_p2 = scmp.lt.s32.totalorder %s2186_s26, %s1900_s27 }
 0x16d   :  { %p1905_p3 = por %p1904_p2, %p1903_p1 }
 0x16f   :  { %p1906_p4 = pnand %p1905_p3, %p1901_p0 }
 0x171   :  { %1909 = shalt.err (!%p1906_p4)  }
 0x172   :  { %521 = dma.hbm_to_vmem [thread:$0]  %s517_s24, 16, %s519_s11, [#allocation3 + $0x1c] }
 0x173   :  { %s523_s21 = scalar_lea.hbm %s2540_s1, %s1124_s16  ;;  %s540_s10 = scalar_lea.hbm %s2540_s1, %s1125_s15 }
 0x174   :  { %s533_s22 = sshll.u32 %s523_s21, 4  ;;  %s550_s17 = sshll.u32 %s540_s10, 4  ;;  %s534_s22 = int_to_ptr.hbm [resolvable:$true] %s533_s22  ;;  %s551_s17 = int_to_ptr.hbm [resolvable:$true] %s550_s17 }
 0x175   :  { %s1922_s12 = sshra.s32 %s534_s22, 4  ;;  %s1923_s12 = int_to_ptr.hbm [resolvable:$true] %s1922_s12 }
 0x176   :  { %s1924_s18 = scalar_lea.hbm %s1923_s12, 1  ;;  %p1927_p6 = scmp.lt.s32.totalorder %s1923_s12, %s2540_s1 }
 0x177   :  { %p1925_p5 = scmp.ne.s32.totalorder %s1923_s12, %s1924_s18  ;;  %p1928_p7 = scmp.lt.s32.totalorder %s2186_s26, %s1924_s18 }
 0x179   :  { %p1929_p8 = por %p1928_p7, %p1927_p6 }
 0x17b   :  { %p1930_p9 = pnand %p1929_p8, %p1925_p5 }
 0x17d   :  { %1933 = shalt.err (!%p1930_p9)  }
 0x17e   :  { %538 = dma.hbm_to_vmem [thread:$0]  %s534_s22, 16, %s536_s20, [#allocation3 + $0x1d] }
 0x17f   :  { %s1126_s16 = sld [smem:[#allocation5 + $0x8f]]  ;;  %s1946_s15 = sshra.s32 %s551_s17, 4  ;;  %s1947_s15 = int_to_ptr.hbm [resolvable:$true] %s1946_s15 }
 0x180   :  { %s1948_s14 = scalar_lea.hbm %s1947_s15, 1  ;;  %p1951_p11 = scmp.lt.s32.totalorder %s1947_s15, %s2540_s1 }
 0x181   :  { %p1949_p10 = scmp.ne.s32.totalorder %s1947_s15, %s1948_s14  ;;  %p1952_p12 = scmp.lt.s32.totalorder %s2186_s26, %s1948_s14 }
 0x183   :  { %p1953_p13 = por %p1952_p12, %p1951_p11 }
 0x185   :  { %p1954_p0 = pnand %p1953_p13, %p1949_p10 }
 0x187   :  { %1957 = shalt.err (!%p1954_p0)  }
 0x188   :  { %555 = dma.hbm_to_vmem [thread:$0]  %s551_s17, 16, %s553_s9, [#allocation3 + $0x1e] }
 0x189   :  { %s2118_s25 = smov [#allocation2 + $0x1f]   ;;  %s557_s8 = scalar_lea.hbm %s2540_s1, %s1126_s16 }
 0x18a   :  { %s569_s27 = sshll.u32 %s2118_s25, 4  ;;  %s567_s19 = sshll.u32 %s557_s8, 4  ;;  %s570_s27 = int_to_ptr.vmem [resolvable:$true] %s569_s27  ;;  %s568_s19 = int_to_ptr.hbm [resolvable:$true] %s567_s19 }
 0x18b   :  { %s1970_s28 = sshra.s32 %s568_s19, 4  ;;  %s1971_s28 = int_to_ptr.hbm [resolvable:$true] %s1970_s28 }
 0x18c   :  { %s1972_s21 = scalar_lea.hbm %s1971_s28, 1  ;;  %p1975_p2 = scmp.lt.s32.totalorder %s1971_s28, %s2540_s1 }
 0x18d   :  { %p1973_p1 = scmp.ne.s32.totalorder %s1971_s28, %s1972_s21  ;;  %p1976_p3 = scmp.lt.s32.totalorder %s2186_s26, %s1972_s21 }
 0x18f   :  { %p1977_p4 = por %p1976_p3, %p1975_p2 }
 0x191   :  { %p1978_p5 = pnand %p1977_p4, %p1973_p1 }
 0x193   :  { %1981 = shalt.err (!%p1978_p5)  }
 0x194   :  { %572 = dma.hbm_to_vmem [thread:$0]  %s568_s19, 16, %s570_s27, [#allocation3 + $0x1f] }
 0x195   :  { %2020 = dma.done.wait [#allocation3], 16 }
 0x196   :  { %2021 = vsyncadd [#allocation3], 4294967280 }
 0x197   :  { %2022 = dma.done.wait [#allocation3 + $0x1], 16 }
 0x198   :  { %2023 = vsyncadd [#allocation3 + $0x1], 4294967280 }
 0x199   :  { %2024 = dma.done.wait [#allocation3 + $0x2], 16 }
 0x19a   :  { %2025 = vsyncadd [#allocation3 + $0x2], 4294967280 }
 0x19b   :  { %2026 = dma.done.wait [#allocation3 + $0x3], 16 }
 0x19c   :  { %2027 = vsyncadd [#allocation3 + $0x3], 4294967280 }
 0x19d   :  { %2028 = dma.done.wait [#allocation3 + $0x4], 16 }
 0x19e   :  { %2029 = vsyncadd [#allocation3 + $0x4], 4294967280 }
 0x19f   :  { %2030 = dma.done.wait [#allocation3 + $0x5], 16 }
 0x1a0   :  { %2031 = vsyncadd [#allocation3 + $0x5], 4294967280 }
 0x1a1   :  { %2032 = dma.done.wait [#allocation3 + $0x6], 16 }
 0x1a2   :  { %2033 = vsyncadd [#allocation3 + $0x6], 4294967280 }
 0x1a3   :  { %2034 = dma.done.wait [#allocation3 + $0x7], 16 }
 0x1a4   :  { %2035 = vsyncadd [#allocation3 + $0x7], 4294967280 }
 0x1a5   :  { %2036 = dma.done.wait [#allocation3 + $0x8], 16 }
 0x1a6   :  { %2037 = vsyncadd [#allocation3 + $0x8], 4294967280 }
 0x1a7   :  { %2038 = dma.done.wait [#allocation3 + $0x9], 16 }
 0x1a8   :  { %2039 = vsyncadd [#allocation3 + $0x9], 4294967280 }
 0x1a9   :  { %2040 = dma.done.wait [#allocation3 + $0xa], 16 }
 0x1aa   :  { %2041 = vsyncadd [#allocation3 + $0xa], 4294967280 }
 0x1ab   :  { %2042 = dma.done.wait [#allocation3 + $0xb], 16 }
 0x1ac   :  { %2043 = vsyncadd [#allocation3 + $0xb], 4294967280 }
 0x1ad   :  { %2044 = dma.done.wait [#allocation3 + $0xc], 16 }
 0x1ae   :  { %2045 = vsyncadd [#allocation3 + $0xc], 4294967280 }
 0x1af   :  { %2046 = dma.done.wait [#allocation3 + $0xd], 16 }
 0x1b0   :  { %2047 = vsyncadd [#allocation3 + $0xd], 4294967280 }
 0x1b1   :  { %2048 = dma.done.wait [#allocation3 + $0xe], 16 }
 0x1b2   :  { %2049 = vsyncadd [#allocation3 + $0xe], 4294967280 }
 0x1b3   :  { %2050 = dma.done.wait [#allocation3 + $0xf], 16 }
 0x1b4   :  { %2051 = vsyncadd [#allocation3 + $0xf], 4294967280 }
 0x1b5   :  { %2052 = dma.done.wait [#allocation3 + $0x10], 16 }
 0x1b6   :  { %2053 = vsyncadd [#allocation3 + $0x10], 4294967280 }
 0x1b7   :  { %2054 = dma.done.wait [#allocation3 + $0x11], 16 }
 0x1b8   :  { %2055 = vsyncadd [#allocation3 + $0x11], 4294967280 }
 0x1b9   :  { %2056 = dma.done.wait [#allocation3 + $0x12], 16 }
 0x1ba   :  { %2057 = vsyncadd [#allocation3 + $0x12], 4294967280 }
 0x1bb   :  { %2058 = dma.done.wait [#allocation3 + $0x13], 16 }
 0x1bc   :  { %2059 = vsyncadd [#allocation3 + $0x13], 4294967280 }
 0x1bd   :  { %2060 = dma.done.wait [#allocation3 + $0x14], 16 }
 0x1be   :  { %2061 = vsyncadd [#allocation3 + $0x14], 4294967280 }
 0x1bf   :  { %2062 = dma.done.wait [#allocation3 + $0x15], 16 }
 0x1c0   :  { %2063 = vsyncadd [#allocation3 + $0x15], 4294967280 }
 0x1c1   :  { %2064 = dma.done.wait [#allocation3 + $0x16], 16 }
 0x1c2   :  { %2065 = vsyncadd [#allocation3 + $0x16], 4294967280 }
 0x1c3   :  { %2066 = dma.done.wait [#allocation3 + $0x17], 16 }
 0x1c4   :  { %2067 = vsyncadd [#allocation3 + $0x17], 4294967280 }
 0x1c5   :  { %2068 = dma.done.wait [#allocation3 + $0x18], 16 }
 0x1c6   :  { %2069 = vsyncadd [#allocation3 + $0x18], 4294967280 }
 0x1c7   :  { %2070 = dma.done.wait [#allocation3 + $0x19], 16 }
 0x1c8   :  { %2071 = vsyncadd [#allocation3 + $0x19], 4294967280 }
 0x1c9   :  { %2072 = dma.done.wait [#allocation3 + $0x1a], 16 }
 0x1ca   :  { %2073 = vsyncadd [#allocation3 + $0x1a], 4294967280 }
 0x1cb   :  { %2074 = dma.done.wait [#allocation3 + $0x1b], 16 }
 0x1cc   :  { %2075 = vsyncadd [#allocation3 + $0x1b], 4294967280 }
 0x1cd   :  { %2076 = dma.done.wait [#allocation3 + $0x1c], 16 }
 0x1ce   :  { %2077 = vsyncadd [#allocation3 + $0x1c], 4294967280 }
 0x1cf   :  { %2078 = dma.done.wait [#allocation3 + $0x1d], 16 }
 0x1d0   :  { %2079 = vsyncadd [#allocation3 + $0x1d], 4294967280 }
 0x1d1   :  { %2080 = dma.done.wait [#allocation3 + $0x1e], 16 }
 0x1d2   :  { %2081 = vsyncadd [#allocation3 + $0x1e], 4294967280 }
 0x1d3   :  { %2082 = dma.done.wait [#allocation3 + $0x1f], 16 }
 0x1d4   :  { %2083 = vsyncadd [#allocation3 + $0x1f], 4294967280  ;;  %v2119_v0 = vmov 0   ;;  %v640_v1 = vld [vmem:[%s2541_s2 + $0x10] sm:$0xff]  ;;  %v638_v2 = vld [vmem:[%s2541_s2] sm:$0xff]  ;;  %v2120_v45 = vmov 128.0  }
 0x1d5   :  { %1199 = vset.pattern.permute.xlu1 %v2119_v0  ;;  %1198 = vset.pattern.permute.xlu0 %v2119_v0  ;;  %v646_v3 = vsub.f32 1.0, %v640_v1  ;;  %v644_v4 = vsub.f32 1.0, %v638_v2  ;;  %v641_v5 = vld [vmem:[%s2541_s2 + $0x18] sm:$0xff]  ;;  %v639_v6 = vld [vmem:[%s2541_s2 + $0x8] sm:$0xff]  ;;  %v1201_v10 = vld [vmem:[%s2543_s4 + $0x1] ss:$0 sm:$0xff]  ;;  %1204 = vrcp.f32 %v2120_v45 }
 0x1d6   :  { %1197 = vset.pattern.permute.xlu2 %v2119_v0  ;;  %v647_v7 = vsub.f32 1.0, %v641_v5  ;;  %v645_v8 = vsub.f32 1.0, %v639_v6  ;;  %v1200_v11 = vld [vmem:[%s2543_s4] ss:$0 sm:$0xff]  ;;  %v703_v22 = vld [vmem:[%s2542_s3 + $0x8] sm:$0xff]  ;;  %v707_v31 = vld [vmem:[#allocation2 + $0x18] sm:$0xff] }
 0x1d7   :  { %676 = vperm.xlu2 %1197, %v638_v2   ;;  %661 = vperm.xlu1 %1199, %v646_v3   ;;  %v702_v12 = vld [vmem:[%s2542_s3] sm:$0xff]  ;;  %v705_v23 = vld [vmem:[#allocation2 + $0x8] sm:$0xff]  ;;  %v706_v32 = vld [vmem:[#allocation2 + $0x10] sm:$0xff]  ;;  %v711_v35 = vadd.f32 %v707_v31, %v703_v22  ;;  %s829_s8 = sshll.u32 %s2546_s7, 4  ;;  %s2122_s19 = smov 128   ;;  %s830_s8 = int_to_ptr.hbm [resolvable:$true] %s829_s8 }
 0x1d8   :  { %651 = vperm.xlu0 %1198, %v644_v4   ;;  %v704_v13 = vld [vmem:[#allocation2] sm:$0xff]  ;;  %v709_v28 = vadd.f32 %v705_v23, %v703_v22  ;;  %v710_v36 = vadd.f32 %v706_v32, %v702_v12  ;;  %s2123_s28 = smov 8  }
 0x1d9   :  { %v708_v18 = vadd.f32 %v704_v13, %v702_v12 }
 0x1db   :  { %v1205_v46 = vpop.eup %1204 }
 0x1dc   :  { %v727_v47 = vmul.f32 128.0, %v1205_v46  ;;  %vm731_vm0 = vweird.f32 %v1205_v46 }
 0x1de   :  { %v728_v48 = vsub.f32 1.0, %v727_v47 }
 0x1df   :  { %681 = vperm.xlu2 %1197, %v639_v6   ;;  %666 = vperm.xlu1 %1199, %v647_v7  }
 0x1e0   :  { %656 = vperm.xlu0 %1198, %v645_v8   ;;  %v729_v49 = vmul.f32 %v1205_v46, %v728_v48 }
 0x1e2   :  { %v730_v50 = vadd.f32 %v1205_v46, %v729_v49 }
 0x1e4   :  { %v732_v51 = vsel %vm731_vm0, %v1205_v46, %v730_v50 }
 0x1e7   :  { %691 = vperm.xlu1 %1199, %v641_v5  }
 0x1e8   :  { %686 = vperm.xlu0 %1198, %v640_v1  }
 0x231   :  { %v677_v9 = vpop.permute.xlu2 %676 }
 0x232   :  { %v694_v14 = vmul.f32 %v1201_v10, %v677_v9 }
 0x239   :  { %v682_v20 = vpop.permute.xlu2 %681 }
 0x23a   :  { %v695_v24 = vmul.f32 %v1201_v10, %v682_v20 }
 0x249   :  { %v662_v15 = vpop.permute.xlu1 %661 }
 0x24a   :  { %v652_v16 = vpop.permute.xlu0 %651  ;;  %v671_v37 = vmul.f32 %v1200_v11, %v662_v15 }
 0x24b   :  { %v669_v17 = vmul.f32 %v1200_v11, %v652_v16 }
 0x24d   :  { %v698_v19 = vadd.f32 %v694_v14, %v669_v17 }
 0x24f   :  { %v712_v21 = vadd.f32 %v708_v18, %v698_v19 }
 0x251   :  { %718 = vadd.xlane.f32.xlu2 %v712_v21  ;;  %v667_v25 = vpop.permute.xlu1 %666 }
 0x252   :  { %v657_v26 = vpop.permute.xlu0 %656  ;;  %v672_v38 = vmul.f32 %v1200_v11, %v667_v25 }
 0x253   :  { %v670_v27 = vmul.f32 %v1200_v11, %v657_v26 }
 0x255   :  { %v699_v29 = vadd.f32 %v695_v24, %v670_v27  ;;  %v1202_v24 = vld [vmem:[%s2544_s5] ss:$0 sm:$0xff]  ;;  %s2121_s5 = smov [#allocation6]  }
 0x256   :  { %v1203_v27 = vld [vmem:[%s2545_s6] ss:$0 sm:$0xff]  ;;  %s827_s6 = sshll.u32 %s2121_s5, 4  ;;  %s828_s6 = int_to_ptr.vmem [resolvable:$true] %s827_s6 }
 0x257   :  { %v713_v30 = vadd.f32 %v709_v28, %v699_v29 }
 0x259   :  { %720 = vadd.xlane.f32.xlu0 %v713_v30  ;;  %v692_v33 = vpop.permute.xlu1 %691 }
 0x25a   :  { %v687_v34 = vpop.permute.xlu0 %686  ;;  %v697_v39 = vmul.f32 %v1201_v10, %v692_v33 }
 0x25b   :  { %v696_v40 = vmul.f32 %v1201_v10, %v687_v34 }
 0x25c   :  { %v701_v41 = vadd.f32 %v697_v39, %v672_v38 }
 0x25d   :  { %v700_v42 = vadd.f32 %v696_v40, %v671_v37 }
 0x25e   :  { %v715_v43 = vadd.f32 %v711_v35, %v701_v41 }
 0x25f   :  { %v714_v44 = vadd.f32 %v710_v36, %v700_v42 }
 0x260   :  { %724 = vadd.xlane.f32.xlu2 %v715_v43 }
 0x261   :  { %722 = vadd.xlane.f32.xlu1 %v714_v44 }
 0x2c4   :  { %v719_v52 = vpop.xlane.xlu2 %718 }
 0x2c5   :  { %v733_v53 = vmul.f32 %v732_v51, %v719_v52 }
 0x2c7   :  { %v737_v54 = vsub.f32 %v712_v21, %v733_v53 }
 0x2c9   :  { %v741_v55 = vmul.f32 %v737_v54, %v737_v54 }
 0x2cb   :  { %745 = vadd.xlane.f32.xlu2 %v741_v55 }
 0x2cc   :  { %v721_v56 = vpop.xlane.xlu0 %720 }
 0x2cd   :  { %v734_v57 = vmul.f32 %v732_v51, %v721_v56 }
 0x2cf   :  { %v738_v58 = vsub.f32 %v713_v30, %v734_v57 }
 0x2d1   :  { %v742_v59 = vmul.f32 %v738_v58, %v738_v58 }
 0x2d3   :  { %747 = vadd.xlane.f32.xlu0 %v742_v59  ;;  %v725_v60 = vpop.xlane.xlu2 %724 }
 0x2d4   :  { %v723_v61 = vpop.xlane.xlu1 %722  ;;  %v736_v62 = vmul.f32 %v732_v51, %v725_v60 }
 0x2d5   :  { %v735_v63 = vmul.f32 %v732_v51, %v723_v61 }
 0x2d6   :  { %v2520_v0 = vsub.f32 %v715_v43, %v736_v62 }
 0x2d7   :  { %v2522_v1 = vsub.f32 %v714_v44, %v735_v63 }
 0x2d8   :  { %v744_v2 = vmul.f32 %v2520_v0, %v2520_v0 }
 0x2d9   :  { %v743_v3 = vmul.f32 %v2522_v1, %v2522_v1 }
 0x2da   :  { %751 = vadd.xlane.f32.xlu2 %v744_v2 }
 0x2db   :  { %749 = vadd.xlane.f32.xlu1 %v743_v3 }
 0x33e   :  { %v746_v4 = vpop.xlane.xlu2 %745 }
 0x33f   :  { %v753_v5 = vmul.f32 %v746_v4, %v732_v51 }
 0x341   :  { %v757_v6 = vadd.f32 1e-12, %v753_v5 }
 0x343   :  { %1206 = vrsqrt.f32 %v757_v6  ;;  %vm767_vm2 = vweird.f32 %v757_v6 }
 0x346   :  { %v748_v7 = vpop.xlane.xlu0 %747 }
 0x347   :  { %v754_v8 = vmul.f32 %v748_v7, %v732_v51 }
 0x349   :  { %v1207_v9 = vpop.eup %1206  ;;  %v758_v10 = vadd.f32 1e-12, %v754_v8 }
 0x34a   :  { %v762_v11 = vmul.f32 %v1207_v9, %v757_v6  ;;  %vm768_vm1 = vweird.f32 %v1207_v9 }
 0x34b   :  { %1208 = vrsqrt.f32 %v758_v10  ;;  %vm769_vm3 = vmor %vm767_vm2, %vm768_vm1  ;;  %vm777_vm5 = vweird.f32 %v758_v10 }
 0x34c   :  { %v763_v12 = vmul.f32 %v1207_v9, %v762_v11 }
 0x34d   :  { %v752_v14 = vpop.xlane.xlu2 %751 }
 0x34e   :  { %v764_v13 = vmul.f32 0.5, %v763_v12  ;;  %v750_v15 = vpop.xlane.xlu1 %749  ;;  %v756_v16 = vmul.f32 %v752_v14, %v732_v51 }
 0x34f   :  { %v755_v17 = vmul.f32 %v750_v15, %v732_v51 }
 0x350   :  { %v765_v18 = vsub.f32 1.5, %v764_v13  ;;  %v760_v20 = vadd.f32 1e-12, %v756_v16 }
 0x351   :  { %v1209_v19 = vpop.eup %1208  ;;  %v759_v21 = vadd.f32 1e-12, %v755_v17 }
 0x352   :  { %v766_v22 = vmul.f32 %v1207_v9, %v765_v18  ;;  %v772_v23 = vmul.f32 %v1209_v19, %v758_v10  ;;  %1210 = vrsqrt.f32 %v760_v20  ;;  %vm778_vm4 = vweird.f32 %v1209_v19 }
 0x353   :  { %1212 = vrsqrt.f32 %v759_v21  ;;  %vm779_vm6 = vmor %vm777_vm5, %vm778_vm4  ;;  %vm797_vm9 = vweird.f32 %v760_v20  ;;  %vm787_vm11 = vweird.f32 %v759_v21 }
 0x354   :  { %v770_v25 = vsel %vm769_vm3, %v1207_v9, %v766_v22  ;;  %v773_v26 = vmul.f32 %v1209_v19, %v772_v23 }
 0x355   :  { %v801_v28 = vmul.f32 %v770_v25, %v737_v54 }
 0x356   :  { %v774_v29 = vmul.f32 0.5, %v773_v26 }
 0x357   :  { %v808_v30 = vmul.f32 %v1202_v24, %v801_v28 }
 0x358   :  { %v775_v31 = vsub.f32 1.5, %v774_v29  ;;  %v1211_v32 = vpop.eup %1210 }
 0x359   :  { %v815_v33 = vadd.f32 %v1203_v27, %v808_v30  ;;  %v1213_v34 = vpop.eup %1212  ;;  %v792_v36 = vmul.f32 %v1211_v32, %v760_v20  ;;  %vm798_vm7 = vweird.f32 %v1211_v32 }
 0x35a   :  { %v776_v35 = vmul.f32 %v1209_v19, %v775_v31  ;;  %v782_v37 = vmul.f32 %v1213_v34, %v759_v21  ;;  %vm788_vm8 = vweird.f32 %v1213_v34  ;;  %vm799_vm10 = vmor %vm797_vm9, %vm798_vm7 }
 0x35b   :  { %819 = vst [vmem:[#allocation6] sm:$0xff] %v815_v33  ;;  %v793_v39 = vmul.f32 %v1211_v32, %v792_v36  ;;  %vm789_vm12 = vmor %vm787_vm11, %vm788_vm8 }
 0x35c   :  { %v780_v38 = vsel %vm779_vm6, %v1209_v19, %v776_v35  ;;  %v783_v41 = vmul.f32 %v1213_v34, %v782_v37 }
 0x35d   :  { %v802_v40 = vmul.f32 %v780_v38, %v738_v58  ;;  %v794_v42 = vmul.f32 0.5, %v793_v39 }
 0x35e   :  { %v784_v44 = vmul.f32 0.5, %v783_v41 }
 0x35f   :  { %v809_v43 = vmul.f32 %v1202_v24, %v802_v40  ;;  %v795_v45 = vsub.f32 1.5, %v794_v42 }
 0x360   :  { %v785_v47 = vsub.f32 1.5, %v784_v44 }
 0x361   :  { %v816_v46 = vadd.f32 %v1203_v27, %v809_v43  ;;  %v796_v48 = vmul.f32 %v1211_v32, %v795_v45 }
 0x362   :  { %v786_v49 = vmul.f32 %v1213_v34, %v785_v47 }
 0x363   :  { %820 = vst [vmem:[#allocation6 + $0x8] sm:$0xff] %v816_v46  ;;  %v800_v50 = vsel %vm799_vm10, %v1211_v32, %v796_v48 }
 0x364   :  { %v804_v51 = vmul.f32 %v800_v50, %v2520_v0  ;;  %v790_v52 = vsel %vm789_vm12, %v1213_v34, %v786_v49 }
 0x365   :  { %v803_v53 = vmul.f32 %v790_v52, %v2522_v1 }
 0x366   :  { %v811_v54 = vmul.f32 %v1202_v24, %v804_v51 }
 0x367   :  { %v810_v55 = vmul.f32 %v1202_v24, %v803_v53 }
 0x368   :  { %v818_v56 = vadd.f32 %v1203_v27, %v811_v54 }
 0x369   :  { %v817_v57 = vadd.f32 %v1203_v27, %v810_v55 }
 0x36a   :  { %822 = vst [vmem:[#allocation6 + $0x18] sm:$0xff] %v818_v56 }
 0x36b   :  { %821 = vst [vmem:[#allocation6 + $0x10] sm:$0xff] %v817_v57 }
 0x36c   :  { %835 = dma.vmem_to_hbm [thread:$0]  %s828_s6, 512, %s830_s8, [#allocation7], %s2122_s19, %s2122_s19, %s2123_s28  }
 0x36d   :  { %2084 = dma.done.wait [#allocation7], 512  }
 0x36e   :  { %2085 = vsyncadd [#allocation7], 4294966784 }
 0x36f   :  { %840 = vsyncpa [#allocation7], 1 }
 0x370   :  { %841 = vsyncmov [#allocation3] }
 0x373   :  { %s842_s21 = vpop.sfrf %841 }
 0x374   :  { %p1127_p6 = scmp.ne.s32.totalorder %s842_s21, 0 }
 0x376   :  { %846 = shalt.err (%p1127_p6)  }
 0x377   :  { %848 = vsyncmov [#allocation3 + $0x1] }
 0x37a   :  { %s849_s7 = vpop.sfrf %848 }
 0x37b   :  { %p1128_p7 = scmp.ne.s32.totalorder %s849_s7, 0 }
 0x37d   :  { %853 = shalt.err (%p1128_p7)  }
 0x37e   :  { %855 = vsyncmov [#allocation3 + $0x2] }
 0x381   :  { %s856_s22 = vpop.sfrf %855 }
 0x382   :  { %p1129_p8 = scmp.ne.s32.totalorder %s856_s22, 0 }
 0x384   :  { %860 = shalt.err (%p1129_p8)  }
 0x385   :  { %862 = vsyncmov [#allocation3 + $0x3] }
 0x388   :  { %s863_s23 = vpop.sfrf %862 }
 0x389   :  { %p1130_p9 = scmp.ne.s32.totalorder %s863_s23, 0 }
 0x38b   :  { %867 = shalt.err (%p1130_p9)  }
 0x38c   :  { %869 = vsyncmov [#allocation3 + $0x4] }
 0x38f   :  { %s870_s1 = vpop.sfrf %869 }
 0x390   :  { %p1131_p10 = scmp.ne.s32.totalorder %s870_s1, 0 }
 0x392   :  { %874 = shalt.err (%p1131_p10)  }
 0x393   :  { %876 = vsyncmov [#allocation3 + $0x5] }
 0x396   :  { %s877_s26 = vpop.sfrf %876 }
 0x397   :  { %p1132_p11 = scmp.ne.s32.totalorder %s877_s26, 0 }
 0x399   :  { %881 = shalt.err (%p1132_p11)  }
 0x39a   :  { %883 = vsyncmov [#allocation3 + $0x6] }
 0x39d   :  { %s884_s9 = vpop.sfrf %883 }
 0x39e   :  { %p1133_p12 = scmp.ne.s32.totalorder %s884_s9, 0 }
 0x3a0   :  { %888 = shalt.err (%p1133_p12)  }
 0x3a1   :  { %890 = vsyncmov [#allocation3 + $0x7] }
 0x3a4   :  { %s891_s13 = vpop.sfrf %890 }
 0x3a5   :  { %p1134_p13 = scmp.ne.s32.totalorder %s891_s13, 0 }
 0x3a7   :  { %895 = shalt.err (%p1134_p13)  }
 0x3a8   :  { %897 = vsyncmov [#allocation3 + $0x8] }
 0x3ab   :  { %s898_s10 = vpop.sfrf %897 }
 0x3ac   :  { %p1135_p0 = scmp.ne.s32.totalorder %s898_s10, 0 }
 0x3ae   :  { %902 = shalt.err (%p1135_p0)  }
 0x3af   :  { %904 = vsyncmov [#allocation3 + $0x9] }
 0x3b2   :  { %s905_s17 = vpop.sfrf %904 }
 0x3b3   :  { %p1136_p1 = scmp.ne.s32.totalorder %s905_s17, 0 }
 0x3b5   :  { %909 = shalt.err (%p1136_p1)  }
 0x3b6   :  { %911 = vsyncmov [#allocation3 + $0xa] }
 0x3b9   :  { %s912_s12 = vpop.sfrf %911 }
 0x3ba   :  { %p1137_p2 = scmp.ne.s32.totalorder %s912_s12, 0 }
 0x3bc   :  { %916 = shalt.err (%p1137_p2)  }
 0x3bd   :  { %918 = vsyncmov [#allocation3 + $0xb] }
 0x3c0   :  { %s919_s18 = vpop.sfrf %918 }
 0x3c1   :  { %p1138_p3 = scmp.ne.s32.totalorder %s919_s18, 0 }
 0x3c3   :  { %923 = shalt.err (%p1138_p3)  }
 0x3c4   :  { %925 = vsyncmov [#allocation3 + $0xc] }
 0x3c7   :  { %s926_s30 = vpop.sfrf %925 }
 0x3c8   :  { %p1139_p4 = scmp.ne.s32.totalorder %s926_s30, 0 }
 0x3ca   :  { %930 = shalt.err (%p1139_p4)  }
 0x3cb   :  { %932 = vsyncmov [#allocation3 + $0xd] }
 0x3ce   :  { %s933_s11 = vpop.sfrf %932 }
 0x3cf   :  { %p1140_p5 = scmp.ne.s32.totalorder %s933_s11, 0 }
 0x3d1   :  { %937 = shalt.err (%p1140_p5)  }
 0x3d2   :  { %939 = vsyncmov [#allocation3 + $0xe] }
 0x3d5   :  { %s940_s16 = vpop.sfrf %939 }
 0x3d6   :  { %p1141_p6 = scmp.ne.s32.totalorder %s940_s16, 0 }
 0x3d8   :  { %944 = shalt.err (%p1141_p6)  }
 0x3d9   :  { %946 = vsyncmov [#allocation3 + $0xf] }
 0x3dc   :  { %s947_s15 = vpop.sfrf %946 }
 0x3dd   :  { %p1142_p7 = scmp.ne.s32.totalorder %s947_s15, 0 }
 0x3df   :  { %951 = shalt.err (%p1142_p7)  }
 0x3e0   :  { %953 = vsyncmov [#allocation3 + $0x10] }
 0x3e3   :  { %s954_s14 = vpop.sfrf %953 }
 0x3e4   :  { %p1143_p8 = scmp.ne.s32.totalorder %s954_s14, 0 }
 0x3e6   :  { %958 = shalt.err (%p1143_p8)  }
 0x3e7   :  { %960 = vsyncmov [#allocation3 + $0x11] }
 0x3ea   :  { %s961_s24 = vpop.sfrf %960 }
 0x3eb   :  { %p1144_p9 = scmp.ne.s32.totalorder %s961_s24, 0 }
 0x3ed   :  { %965 = shalt.err (%p1144_p9)  }
 0x3ee   :  { %967 = vsyncmov [#allocation3 + $0x12] }
 0x3f1   :  { %s968_s2 = vpop.sfrf %967 }
 0x3f2   :  { %p1145_p10 = scmp.ne.s32.totalorder %s968_s2, 0 }
 0x3f4   :  { %972 = shalt.err (%p1145_p10)  }
 0x3f5   :  { %974 = vsyncmov [#allocation3 + $0x13] }
 0x3f8   :  { %s975_s0 = vpop.sfrf %974 }
 0x3f9   :  { %p1146_p11 = scmp.ne.s32.totalorder %s975_s0, 0 }
 0x3fb   :  { %979 = shalt.err (%p1146_p11)  }
 0x3fc   :  { %981 = vsyncmov [#allocation3 + $0x14] }
 0x3ff   :  { %s982_s3 = vpop.sfrf %981 }
 0x400   :  { %p1147_p12 = scmp.ne.s32.totalorder %s982_s3, 0 }
 0x402   :  { %986 = shalt.err (%p1147_p12)  }
 0x403   :  { %988 = vsyncmov [#allocation3 + $0x15] }
 0x406   :  { %s989_s4 = vpop.sfrf %988 }
 0x407   :  { %p1148_p13 = scmp.ne.s32.totalorder %s989_s4, 0 }
 0x409   :  { %993 = shalt.err (%p1148_p13)  }
 0x40a   :  { %995 = vsyncmov [#allocation3 + $0x16] }
 0x40d   :  { %s996_s25 = vpop.sfrf %995 }
 0x40e   :  { %p1149_p0 = scmp.ne.s32.totalorder %s996_s25, 0 }
 0x410   :  { %1000 = shalt.err (%p1149_p0)  }
 0x411   :  { %1002 = vsyncmov [#allocation3 + $0x17] }
 0x414   :  { %s1003_s27 = vpop.sfrf %1002 }
 0x415   :  { %p1150_p1 = scmp.ne.s32.totalorder %s1003_s27, 0 }
 0x417   :  { %1007 = shalt.err (%p1150_p1)  }
 0x418   :  { %1009 = vsyncmov [#allocation3 + $0x18] }
 0x41b   :  { %s1010_s5 = vpop.sfrf %1009 }
 0x41c   :  { %p1151_p2 = scmp.ne.s32.totalorder %s1010_s5, 0 }
 0x41e   :  { %1014 = shalt.err (%p1151_p2)  }
 0x41f   :  { %1016 = vsyncmov [#allocation3 + $0x19] }
 0x422   :  { %s1017_s6 = vpop.sfrf %1016 }
 0x423   :  { %p1152_p3 = scmp.ne.s32.totalorder %s1017_s6, 0 }
 0x425   :  { %1021 = shalt.err (%p1152_p3)  }
 0x426   :  { %1023 = vsyncmov [#allocation3 + $0x1a] }
 0x429   :  { %s1024_s29 = vpop.sfrf %1023 }
 0x42a   :  { %p1153_p4 = scmp.ne.s32.totalorder %s1024_s29, 0 }
 0x42c   :  { %1028 = shalt.err (%p1153_p4)  }
 0x42d   :  { %1030 = vsyncmov [#allocation3 + $0x1b] }
 0x430   :  { %s1031_s20 = vpop.sfrf %1030 }
 0x431   :  { %p1154_p5 = scmp.ne.s32.totalorder %s1031_s20, 0 }
 0x433   :  { %1035 = shalt.err (%p1154_p5)  }
 0x434   :  { %1037 = vsyncmov [#allocation3 + $0x1c] }
 0x437   :  { %s1038_s8 = vpop.sfrf %1037 }
 0x438   :  { %p1155_p6 = scmp.ne.s32.totalorder %s1038_s8, 0 }
 0x43a   :  { %1042 = shalt.err (%p1155_p6)  }
 0x43b   :  { %1044 = vsyncmov [#allocation3 + $0x1d] }
 0x43e   :  { %s1045_s19 = vpop.sfrf %1044 }
 0x43f   :  { %p1156_p7 = scmp.ne.s32.totalorder %s1045_s19, 0 }
 0x441   :  { %1049 = shalt.err (%p1156_p7)  }
 0x442   :  { %1051 = vsyncmov [#allocation3 + $0x1e] }
 0x445   :  { %s1052_s28 = vpop.sfrf %1051 }
 0x446   :  { %p1157_p8 = scmp.ne.s32.totalorder %s1052_s28, 0 }
 0x448   :  { %1056 = shalt.err (%p1157_p8)  }
 0x449   :  { %1058 = vsyncmov [#allocation3 + $0x1f] }
 0x44c   :  { %s1059_s21 = vpop.sfrf %1058 }
 0x44d   :  { %p1158_p9 = scmp.ne.s32.totalorder %s1059_s21, 0 }
 0x44f   :  { %1063 = shalt.err (%p1158_p9)  }

</bundles_post_ra>
